<compile_context>
chip_gen: v7x
topology: tpu7x:2x2x1
jax: 0.10.0
libtpu: 0.0.40
codegen_flags: <defaults>
</compile_context>

<pallas_src>
import functools

import jax
import jax.numpy as jnp
import numpy as np
from jax.experimental import pallas as pl
from jax.experimental.pallas import tpu as pltpu

RATIO = 8
KSIZE = 7
PAD = 3


def cbam_kernel(x_ref, w1t_ref, w2t_ref, wsp_ref, o_ref, pad_ref, sa_ref, *, H, W):
    # x_ref:   (TB, C, H*W)  VMEM, lane-dense
    # w1t_ref: (C, C//R)     VMEM  (fc1 weight, transposed)
    # w2t_ref: (C//R, C)     VMEM  (fc2 weight, transposed)
    # wsp_ref: (2*7*7,)      SMEM  (spatial conv weight, flattened OIHW, O=1)
    # o_ref:   (TB, C, H*W)  VMEM
    # pad_ref: (2, TB, H+6, W+6) VMEM scratch (zero-padded avg/max maps)
    # sa_ref:  (TB, 1, H*W)  VMEM scratch (flattened spatial-attention map)
    TB, C, HW = x_ref.shape
    WP = W + 2 * PAD
    HP = H + 2 * PAD

    x = x_ref[...]                          # (TB, C, HW)  single lane-dense load

    # ---------------- Channel attention (batched, row-major MLP) -------------
    # Both reference branches consume the identical avg-pooled vector
    # ("max_pool" is AdaptiveAvgPool2d), so sigmoid(avg+max) == sigmoid(2*avg).
    pooled = jnp.mean(x, axis=2)            # (TB, C)
    h = jnp.maximum(
        jnp.dot(pooled, w1t_ref[...], preferred_element_type=jnp.float32), 0.0)
    ca_pre = jnp.dot(h, w2t_ref[...], preferred_element_type=jnp.float32)
    ca = jax.nn.sigmoid(2.0 * ca_pre)       # (TB, C)

    x1 = x * ca[:, :, None]                 # (TB, C, HW) per-channel gating

    # ---------------- Spatial attention --------------------------------------
    avg_flat = jnp.mean(x1, axis=1)         # (TB, HW) mean over channels
    max_flat = jnp.max(x1, axis=1)          # (TB, HW) max  over channels

    # Zero only the 3-wide halo of the padded scratch (interior is fully
    # overwritten below, every grid step), instead of clearing the whole buffer.
    pad_ref[:, :, 0:PAD, :] = jnp.zeros((2, TB, PAD, WP), jnp.float32)
    pad_ref[:, :, PAD + H:HP, :] = jnp.zeros((2, TB, PAD, WP), jnp.float32)
    pad_ref[:, :, PAD:PAD + H, 0:PAD] = jnp.zeros((2, TB, H, PAD), jnp.float32)
    pad_ref[:, :, PAD:PAD + H, PAD + W:WP] = jnp.zeros((2, TB, H, PAD), jnp.float32)

    # Scatter the lane-dense channel-stat maps row by row into the padded 2-D
    # scratch (only the 7x7 conv needs the 2-D spatial view).
    for y in range(H):
        pad_ref[0, :, PAD + y, PAD:PAD + W] = avg_flat[:, y * W:(y + 1) * W]
        pad_ref[1, :, PAD + y, PAD:PAD + W] = max_flat[:, y * W:(y + 1) * W]

    # 7x7 conv (in=2, out=1, padding=3, no bias): one padded row-slab load per
    # (channel, ky); the 7 kx shifts are in-register lane slices of the slab.
    acc = jnp.zeros((TB, H, W), jnp.float32)
    for c in range(2):
        for ky in range(KSIZE):
            slab = pad_ref[c, :, ky:ky + H, :]              # (TB, H, W+6)
            for kx in range(KSIZE):
                w = wsp_ref[c * KSIZE * KSIZE + ky * KSIZE + kx]
                acc = acc + w * slab[:, :, kx:kx + W]

    sa2d = jax.nn.sigmoid(acc)              # (TB, H, W)

    # Re-flatten the spatial-attention map to lane-dense (TB, 1, HW) through a
    # small VMEM scratch so the final gated store stays unmasked / lane-dense.
    for y in range(H):
        sa_ref[:, 0:1, y * W:(y + 1) * W] = sa2d[:, y:y + 1, :]

    o_ref[...] = (x1 * sa_ref[...]).astype(o_ref.dtype)    # single lane-dense store


def cbam_forward(x, w1, w2, wsp, *, batch_block=None):
    B, C, H, W = x.shape
    Cr = w1.shape[0]
    HW = H * W

    x_flat = x.reshape(B, C, HW)            # lane-dense layout for the kernel
    w1t = jnp.transpose(w1)                 # (C, Cr)
    w2t = jnp.transpose(w2)                 # (Cr, C)
    wsp_flat = wsp.reshape(-1)              # (2 * KSIZE * KSIZE,)

    if batch_block is None:
        # Amortize per-step overhead with ~1 MiB blocks, but keep >=2 grid
        # steps when B>=2 so both TensorCores (v7x megacore) get work.
        per_image_bytes = C * HW * x.dtype.itemsize
        tb = max(1, min(B, (1 << 20) // max(per_image_bytes, 1)))
        if B >= 2:
            tb = min(tb, max(1, B // 2))
        while B % tb:                       # use a divisor of B (no ragged blocks)
            tb -= 1
    else:
        tb = batch_block
    grid_b = B // tb

    kernel = functools.partial(cbam_kernel, H=H, W=W)

    out_flat = pl.pallas_call(
        kernel,
        out_shape=jax.ShapeDtypeStruct((B, C, HW), x.dtype),
        grid=(grid_b,),
        in_specs=[
            pl.BlockSpec((tb, C, HW), lambda b: (b, 0, 0)),
            pl.BlockSpec((C, Cr), lambda b: (0, 0)),
            pl.BlockSpec((Cr, C), lambda b: (0, 0)),
            pl.BlockSpec(memory_space=pltpu.MemorySpace.SMEM),
        ],
        out_specs=pl.BlockSpec((tb, C, HW), lambda b: (b, 0, 0)),
        scratch_shapes=[
            pltpu.VMEM((2, tb, H + 2 * PAD, W + 2 * PAD), jnp.float32),
            pltpu.VMEM((tb, 1, HW), jnp.float32),
        ],
        compiler_params=pltpu.CompilerParams(
            dimension_semantics=("parallel",),
        ),
    )(x_flat, w1t, w2t, wsp_flat)
    return out_flat.reshape(B, C, H, W)


def cbam_reference(x, w1, w2, wsp):
    """Pure-JAX reference mirroring the PyTorch forward exactly."""
    B, C, H, W = x.shape
    pooled = x.mean(axis=(2, 3))            # (B, C)  (both "pools" are avg pool)

    def mlp(p):
        return jnp.maximum(p @ w1.T, 0.0) @ w2.T

    ca = jax.nn.sigmoid(mlp(pooled) + mlp(pooled))  # (B, C)
    x1 = x * ca[:, :, None, None]

    avg = x1.mean(axis=1)
    mx = x1.max(axis=1)
    maps = jnp.stack([avg, mx], axis=1)     # (B, 2, H, W)
    padded = jnp.pad(maps, ((0, 0), (0, 0), (PAD, PAD), (PAD, PAD)))
    conv = jnp.zeros((B, H, W), jnp.float32)
    for c in range(2):
        for ky in range(KSIZE):
            for kx in range(KSIZE):
                conv = conv + wsp[c, ky, kx] * padded[:, c, ky:ky + H, kx:kx + W]
    sa = jax.nn.sigmoid(conv)[:, None, :, :]
    return x1 * sa


if __name__ == "__main__":
    B, C, H, W = 2, 16, 16, 16              # channel must be divisible by RATIO=8

    key = jax.random.PRNGKey(0)
    kx, k1, k2, k3 = jax.random.split(key, 4)

    x = jax.random.normal(kx, (B, C, H, W), dtype=jnp.float32)
    # Deterministic synthetic parameters (shapes per the module's __init__):
    w1 = 0.10 * jax.random.normal(k1, (C // RATIO, C), dtype=jnp.float32)     # fc1
    w2 = 0.10 * jax.random.normal(k2, (C, C // RATIO), dtype=jnp.float32)     # fc2
    wsp = 0.05 * jax.random.normal(k3, (2, KSIZE, KSIZE), dtype=jnp.float32)  # 7x7 conv

    out = cbam_forward(x, w1, w2, wsp)
    out = jax.block_until_ready(out)

    ref = cbam_reference(x, w1, w2, wsp)
    np.testing.assert_allclose(np.asarray(out), np.asarray(ref), rtol=1e-5, atol=1e-5)

    print("KERNEL_OK")
</pallas_src>

<mosaic_0001>
module attributes {stable_mosaic.version = 11 : i64} {
  func.func @cbam_kernel(%arg0: i32, %arg1: memref<1x16x256xf32, #tpu.memory_space<vmem>>, %arg2: memref<16x2xf32, #tpu.memory_space<vmem>>, %arg3: memref<2x16xf32, #tpu.memory_space<vmem>>, %arg4: memref<98xf32, #tpu.memory_space<smem>>, %arg5: memref<1x16x256xf32, #tpu.memory_space<vmem>>, %arg6: memref<2x1x22x22xf32, #tpu.memory_space<vmem>>, %arg7: memref<1x1x256xf32, #tpu.memory_space<vmem>>) attributes {dimension_semantics = [#tpu.dimension_semantics<parallel>], iteration_bounds = array<i64: 2>, scalar_prefetch = 0 : i64, scratch_operands = 2 : i64, tpu.core_type = #tpu.core_type<tc>, window_params = [{transform_indices = @transform_0, window_bounds = array<i64: 1, 16, 256>}, {pipeline_mode = #tpu.pipeline_mode<synchronous>, transform_indices = @transform_1, window_bounds = array<i64: 16, 2>}, {pipeline_mode = #tpu.pipeline_mode<synchronous>, transform_indices = @transform_2, window_bounds = array<i64: 2, 16>}, {transform_indices = @transform_3, window_bounds = array<i64: 98>}, {transform_indices = @transform_4, window_bounds = array<i64: 1, 16, 256>}]} {
    %c0 = arith.constant 0 : index
    %c0_0 = arith.constant 0 : index
    %c0_1 = arith.constant 0 : index
    %0 = vector.load %arg1[%c0, %c0_0, %c0_1] : memref<1x16x256xf32, #tpu.memory_space<vmem>>, vector<1x16x256xf32>
    %cst = arith.constant dense<0.000000e+00> : vector<1x16xf32>
    %1 = vector.multi_reduction <add>, %0, %cst [2] : vector<1x16x256xf32> to vector<1x16xf32>
    %cst_2 = arith.constant 2.560000e+02 : f32
    %2 = vector.broadcast %cst_2 : f32 to vector<1x16xf32>
    %3 = arith.divf %1, %2 : vector<1x16xf32>
    %c0_3 = arith.constant 0 : index
    %c0_4 = arith.constant 0 : index
    %4 = vector.load %arg2[%c0_3, %c0_4] : memref<16x2xf32, #tpu.memory_space<vmem>>, vector<16x2xf32>
    %cst_5 = arith.constant dense<0.000000e+00> : vector<1x2xf32>
    %5 = tpu.matmul %3, %4, %cst_5 {dimension_numbers = #tpu.dot_dimension_numbers<[1], [0], [0], [1], [0, 0, 1, 1], [], []>} : vector<1x16xf32>, vector<16x2xf32>, vector<1x2xf32> -> vector<1x2xf32>
    %cst_6 = arith.constant 0.000000e+00 : f32
    %6 = vector.broadcast %cst_6 : f32 to vector<1x2xf32>
    %7 = arith.maximumf %5, %6 : vector<1x2xf32>
    %c0_7 = arith.constant 0 : index
    %c0_8 = arith.constant 0 : index
    %8 = vector.load %arg3[%c0_7, %c0_8] : memref<2x16xf32, #tpu.memory_space<vmem>>, vector<2x16xf32>
    %cst_9 = arith.constant dense<0.000000e+00> : vector<1x16xf32>
    %9 = tpu.matmul %7, %8, %cst_9 {dimension_numbers = #tpu.dot_dimension_numbers<[1], [0], [0], [1], [0, 0, 1, 1], [], []>} : vector<1x2xf32>, vector<2x16xf32>, vector<1x16xf32> -> vector<1x16xf32>
    %cst_10 = arith.constant 2.000000e+00 : f32
    %10 = vector.broadcast %cst_10 : f32 to vector<1x16xf32>
    %11 = arith.mulf %10, %9 : vector<1x16xf32>
    %12 = arith.negf %11 : vector<1x16xf32>
    %13 = math.exp %12 : vector<1x16xf32>
    %cst_11 = arith.constant 1.000000e+00 : f32
    %14 = vector.broadcast %cst_11 : f32 to vector<1x16xf32>
    %15 = arith.addf %14, %13 : vector<1x16xf32>
    %16 = arith.divf %14, %15 : vector<1x16xf32>
    %17 = vector.shape_cast %16 : vector<1x16xf32> to vector<1x16x1xf32>
    %18 = vector.broadcast %17 : vector<1x16x1xf32> to vector<1x16x256xf32>
    %19 = arith.mulf %0, %18 : vector<1x16x256xf32>
    %cst_12 = arith.constant dense<0.000000e+00> : vector<1x256xf32>
    %20 = vector.multi_reduction <add>, %19, %cst_12 [1] : vector<1x16x256xf32> to vector<1x256xf32>
    %cst_13 = arith.constant 1.600000e+01 : f32
    %21 = vector.broadcast %cst_13 : f32 to vector<1x256xf32>
    %22 = arith.divf %20, %21 : vector<1x256xf32>
    %cst_14 = arith.constant dense<0xFF800000> : vector<1x256xf32>
    %23 = vector.multi_reduction <maximumf>, %19, %cst_14 [1] : vector<1x16x256xf32> to vector<1x256xf32>
    %cst_15 = arith.constant 0.000000e+00 : f32
    %24 = vector.broadcast %cst_15 : f32 to vector<2x1x3x22xf32>
    %c0_16 = arith.constant 0 : index
    %c0_17 = arith.constant 0 : index
    %c0_18 = arith.constant 0 : index
    %c0_19 = arith.constant 0 : index
    %25 = vector.load %arg6[%c0_16, %c0_17, %c0_18, %c0_19] : memref<2x1x22x22xf32, #tpu.memory_space<vmem>>, vector<2x1x3x22xf32>
    tpu.vector_store %arg6[%c0_16, %c0_17, %c0_18, %c0_19], %24 {strides = array<i32>} : memref<2x1x22x22xf32, #tpu.memory_space<vmem>>, vector<2x1x3x22xf32>,
    %cst_20 = arith.constant 0.000000e+00 : f32
    %26 = vector.broadcast %cst_20 : f32 to vector<2x1x3x22xf32>
    %c0_21 = arith.constant 0 : index
    %c0_22 = arith.constant 0 : index
    %c19 = arith.constant 19 : index
    %c0_23 = arith.constant 0 : index
    %27 = vector.load %arg6[%c0_21, %c0_22, %c19, %c0_23] : memref<2x1x22x22xf32, #tpu.memory_space<vmem>>, vector<2x1x3x22xf32>
    tpu.vector_store %arg6[%c0_21, %c0_22, %c19, %c0_23], %26 {strides = array<i32>} : memref<2x1x22x22xf32, #tpu.memory_space<vmem>>, vector<2x1x3x22xf32>,
    %cst_24 = arith.constant 0.000000e+00 : f32
    %28 = vector.broadcast %cst_24 : f32 to vector<2x1x16x3xf32>
    %c0_25 = arith.constant 0 : index
    %c0_26 = arith.constant 0 : index
    %c3 = arith.constant 3 : index
    %c0_27 = arith.constant 0 : index
    %29 = vector.load %arg6[%c0_25, %c0_26, %c3, %c0_27] : memref<2x1x22x22xf32, #tpu.memory_space<vmem>>, vector<2x1x16x3xf32>
    tpu.vector_store %arg6[%c0_25, %c0_26, %c3, %c0_27], %28 {strides = array<i32>} : memref<2x1x22x22xf32, #tpu.memory_space<vmem>>, vector<2x1x16x3xf32>,
    %cst_28 = arith.constant 0.000000e+00 : f32
    %30 = vector.broadcast %cst_28 : f32 to vector<2x1x16x3xf32>
    %c0_29 = arith.constant 0 : index
    %c0_30 = arith.constant 0 : index
    %c3_31 = arith.constant 3 : index
    %c19_32 = arith.constant 19 : index
    %31 = vector.load %arg6[%c0_29, %c0_30, %c3_31, %c19_32] : memref<2x1x22x22xf32, #tpu.memory_space<vmem>>, vector<2x1x16x3xf32>
    tpu.vector_store %arg6[%c0_29, %c0_30, %c3_31, %c19_32], %30 {strides = array<i32>} : memref<2x1x22x22xf32, #tpu.memory_space<vmem>>, vector<2x1x16x3xf32>,
    %32 = vector.extract_strided_slice %22 {offsets = [0, 0], sizes = [1, 16], strides = [1, 1]} : vector<1x256xf32> to vector<1x16xf32>
    %c0_33 = arith.constant 0 : index
    %c0_34 = arith.constant 0 : index
    %c3_35 = arith.constant 3 : index
    %c3_36 = arith.constant 3 : index
    %33 = vector.load %arg6[%c0_33, %c0_34, %c3_35, %c3_36] : memref<2x1x22x22xf32, #tpu.memory_space<vmem>>, vector<1x1x1x16xf32>
    %34 = vector.shape_cast %33 : vector<1x1x1x16xf32> to vector<1x16xf32>
    %35 = vector.shape_cast %32 : vector<1x16xf32> to vector<1x1x1x16xf32>
    tpu.vector_store %arg6[%c0_33, %c0_34, %c3_35, %c3_36], %35 {strides = array<i32>} : memref<2x1x22x22xf32, #tpu.memory_space<vmem>>, vector<1x1x1x16xf32>,
    %36 = vector.extract_strided_slice %23 {offsets = [0, 0], sizes = [1, 16], strides = [1, 1]} : vector<1x256xf32> to vector<1x16xf32>
    %c1 = arith.constant 1 : index
    %c0_37 = arith.constant 0 : index
    %c3_38 = arith.constant 3 : index
    %c3_39 = arith.constant 3 : index
    %37 = vector.load %arg6[%c1, %c0_37, %c3_38, %c3_39] : memref<2x1x22x22xf32, #tpu.memory_space<vmem>>, vector<1x1x1x16xf32>
    %38 = vector.shape_cast %37 : vector<1x1x1x16xf32> to vector<1x16xf32>
    %39 = vector.shape_cast %36 : vector<1x16xf32> to vector<1x1x1x16xf32>
    tpu.vector_store %arg6[%c1, %c0_37, %c3_38, %c3_39], %39 {strides = array<i32>} : memref<2x1x22x22xf32, #tpu.memory_space<vmem>>, vector<1x1x1x16xf32>,
    %40 = vector.extract_strided_slice %22 {offsets = [0, 16], sizes = [1, 16], strides = [1, 1]} : vector<1x256xf32> to vector<1x16xf32>
    %c0_40 = arith.constant 0 : index
    %c0_41 = arith.constant 0 : index
    %c4 = arith.constant 4 : index
    %c3_42 = arith.constant 3 : index
    %41 = vector.load %arg6[%c0_40, %c0_41, %c4, %c3_42] : memref<2x1x22x22xf32, #tpu.memory_space<vmem>>, vector<1x1x1x16xf32>
    %42 = vector.shape_cast %41 : vector<1x1x1x16xf32> to vector<1x16xf32>
    %43 = vector.shape_cast %40 : vector<1x16xf32> to vector<1x1x1x16xf32>
    tpu.vector_store %arg6[%c0_40, %c0_41, %c4, %c3_42], %43 {strides = array<i32>} : memref<2x1x22x22xf32, #tpu.memory_space<vmem>>, vector<1x1x1x16xf32>,
    %44 = vector.extract_strided_slice %23 {offsets = [0, 16], sizes = [1, 16], strides = [1, 1]} : vector<1x256xf32> to vector<1x16xf32>
    %c1_43 = arith.constant 1 : index
    %c0_44 = arith.constant 0 : index
    %c4_45 = arith.constant 4 : index
    %c3_46 = arith.constant 3 : index
    %45 = vector.load %arg6[%c1_43, %c0_44, %c4_45, %c3_46] : memref<2x1x22x22xf32, #tpu.memory_space<vmem>>, vector<1x1x1x16xf32>
    %46 = vector.shape_cast %45 : vector<1x1x1x16xf32> to vector<1x16xf32>
    %47 = vector.shape_cast %44 : vector<1x16xf32> to vector<1x1x1x16xf32>
    tpu.vector_store %arg6[%c1_43, %c0_44, %c4_45, %c3_46], %47 {strides = array<i32>} : memref<2x1x22x22xf32, #tpu.memory_space<vmem>>, vector<1x1x1x16xf32>,
    %48 = vector.extract_strided_slice %22 {offsets = [0, 32], sizes = [1, 16], strides = [1, 1]} : vector<1x256xf32> to vector<1x16xf32>
    %c0_47 = arith.constant 0 : index
    %c0_48 = arith.constant 0 : index
    %c5 = arith.constant 5 : index
    %c3_49 = arith.constant 3 : index
    %49 = vector.load %arg6[%c0_47, %c0_48, %c5, %c3_49] : memref<2x1x22x22xf32, #tpu.memory_space<vmem>>, vector<1x1x1x16xf32>
    %50 = vector.shape_cast %49 : vector<1x1x1x16xf32> to vector<1x16xf32>
    %51 = vector.shape_cast %48 : vector<1x16xf32> to vector<1x1x1x16xf32>
    tpu.vector_store %arg6[%c0_47, %c0_48, %c5, %c3_49], %51 {strides = array<i32>} : memref<2x1x22x22xf32, #tpu.memory_space<vmem>>, vector<1x1x1x16xf32>,
    %52 = vector.extract_strided_slice %23 {offsets = [0, 32], sizes = [1, 16], strides = [1, 1]} : vector<1x256xf32> to vector<1x16xf32>
    %c1_50 = arith.constant 1 : index
    %c0_51 = arith.constant 0 : index
    %c5_52 = arith.constant 5 : index
    %c3_53 = arith.constant 3 : index
    %53 = vector.load %arg6[%c1_50, %c0_51, %c5_52, %c3_53] : memref<2x1x22x22xf32, #tpu.memory_space<vmem>>, vector<1x1x1x16xf32>
    %54 = vector.shape_cast %53 : vector<1x1x1x16xf32> to vector<1x16xf32>
    %55 = vector.shape_cast %52 : vector<1x16xf32> to vector<1x1x1x16xf32>
    tpu.vector_store %arg6[%c1_50, %c0_51, %c5_52, %c3_53], %55 {strides = array<i32>} : memref<2x1x22x22xf32, #tpu.memory_space<vmem>>, vector<1x1x1x16xf32>,
    %56 = vector.extract_strided_slice %22 {offsets = [0, 48], sizes = [1, 16], strides = [1, 1]} : vector<1x256xf32> to vector<1x16xf32>
    %c0_54 = arith.constant 0 : index
    %c0_55 = arith.constant 0 : index
    %c6 = arith.constant 6 : index
    %c3_56 = arith.constant 3 : index
    %57 = vector.load %arg6[%c0_54, %c0_55, %c6, %c3_56] : memref<2x1x22x22xf32, #tpu.memory_space<vmem>>, vector<1x1x1x16xf32>
    %58 = vector.shape_cast %57 : vector<1x1x1x16xf32> to vector<1x16xf32>
    %59 = vector.shape_cast %56 : vector<1x16xf32> to vector<1x1x1x16xf32>
    tpu.vector_store %arg6[%c0_54, %c0_55, %c6, %c3_56], %59 {strides = array<i32>} : memref<2x1x22x22xf32, #tpu.memory_space<vmem>>, vector<1x1x1x16xf32>,
    %60 = vector.extract_strided_slice %23 {offsets = [0, 48], sizes = [1, 16], strides = [1, 1]} : vector<1x256xf32> to vector<1x16xf32>
    %c1_57 = arith.constant 1 : index
    %c0_58 = arith.constant 0 : index
    %c6_59 = arith.constant 6 : index
    %c3_60 = arith.constant 3 : index
    %61 = vector.load %arg6[%c1_57, %c0_58, %c6_59, %c3_60] : memref<2x1x22x22xf32, #tpu.memory_space<vmem>>, vector<1x1x1x16xf32>
    %62 = vector.shape_cast %61 : vector<1x1x1x16xf32> to vector<1x16xf32>
    %63 = vector.shape_cast %60 : vector<1x16xf32> to vector<1x1x1x16xf32>
    tpu.vector_store %arg6[%c1_57, %c0_58, %c6_59, %c3_60], %63 {strides = array<i32>} : memref<2x1x22x22xf32, #tpu.memory_space<vmem>>, vector<1x1x1x16xf32>,
    %64 = vector.extract_strided_slice %22 {offsets = [0, 64], sizes = [1, 16], strides = [1, 1]} : vector<1x256xf32> to vector<1x16xf32>
    %c0_61 = arith.constant 0 : index
    %c0_62 = arith.constant 0 : index
    %c7 = arith.constant 7 : index
    %c3_63 = arith.constant 3 : index
    %65 = vector.load %arg6[%c0_61, %c0_62, %c7, %c3_63] : memref<2x1x22x22xf32, #tpu.memory_space<vmem>>, vector<1x1x1x16xf32>
    %66 = vector.shape_cast %65 : vector<1x1x1x16xf32> to vector<1x16xf32>
    %67 = vector.shape_cast %64 : vector<1x16xf32> to vector<1x1x1x16xf32>
    tpu.vector_store %arg6[%c0_61, %c0_62, %c7, %c3_63], %67 {strides = array<i32>} : memref<2x1x22x22xf32, #tpu.memory_space<vmem>>, vector<1x1x1x16xf32>,
    %68 = vector.extract_strided_slice %23 {offsets = [0, 64], sizes = [1, 16], strides = [1, 1]} : vector<1x256xf32> to vector<1x16xf32>
    %c1_64 = arith.constant 1 : index
    %c0_65 = arith.constant 0 : index
    %c7_66 = arith.constant 7 : index
    %c3_67 = arith.constant 3 : index
    %69 = vector.load %arg6[%c1_64, %c0_65, %c7_66, %c3_67] : memref<2x1x22x22xf32, #tpu.memory_space<vmem>>, vector<1x1x1x16xf32>
    %70 = vector.shape_cast %69 : vector<1x1x1x16xf32> to vector<1x16xf32>
    %71 = vector.shape_cast %68 : vector<1x16xf32> to vector<1x1x1x16xf32>
    tpu.vector_store %arg6[%c1_64, %c0_65, %c7_66, %c3_67], %71 {strides = array<i32>} : memref<2x1x22x22xf32, #tpu.memory_space<vmem>>, vector<1x1x1x16xf32>,
    %72 = vector.extract_strided_slice %22 {offsets = [0, 80], sizes = [1, 16], strides = [1, 1]} : vector<1x256xf32> to vector<1x16xf32>
    %c0_68 = arith.constant 0 : index
    %c0_69 = arith.constant 0 : index
    %c8 = arith.constant 8 : index
    %c3_70 = arith.constant 3 : index
    %73 = vector.load %arg6[%c0_68, %c0_69, %c8, %c3_70] : memref<2x1x22x22xf32, #tpu.memory_space<vmem>>, vector<1x1x1x16xf32>
    %74 = vector.shape_cast %73 : vector<1x1x1x16xf32> to vector<1x16xf32>
    %75 = vector.shape_cast %72 : vector<1x16xf32> to vector<1x1x1x16xf32>
    tpu.vector_store %arg6[%c0_68, %c0_69, %c8, %c3_70], %75 {strides = array<i32>} : memref<2x1x22x22xf32, #tpu.memory_space<vmem>>, vector<1x1x1x16xf32>,
    %76 = vector.extract_strided_slice %23 {offsets = [0, 80], sizes = [1, 16], strides = [1, 1]} : vector<1x256xf32> to vector<1x16xf32>
    %c1_71 = arith.constant 1 : index
    %c0_72 = arith.constant 0 : index
    %c8_73 = arith.constant 8 : index
    %c3_74 = arith.constant 3 : index
    %77 = vector.load %arg6[%c1_71, %c0_72, %c8_73, %c3_74] : memref<2x1x22x22xf32, #tpu.memory_space<vmem>>, vector<1x1x1x16xf32>
    %78 = vector.shape_cast %77 : vector<1x1x1x16xf32> to vector<1x16xf32>
    %79 = vector.shape_cast %76 : vector<1x16xf32> to vector<1x1x1x16xf32>
    tpu.vector_store %arg6[%c1_71, %c0_72, %c8_73, %c3_74], %79 {strides = array<i32>} : memref<2x1x22x22xf32, #tpu.memory_space<vmem>>, vector<1x1x1x16xf32>,
    %80 = vector.extract_strided_slice %22 {offsets = [0, 96], sizes = [1, 16], strides = [1, 1]} : vector<1x256xf32> to vector<1x16xf32>
    %c0_75 = arith.constant 0 : index
    %c0_76 = arith.constant 0 : index
    %c9 = arith.constant 9 : index
    %c3_77 = arith.constant 3 : index
    %81 = vector.load %arg6[%c0_75, %c0_76, %c9, %c3_77] : memref<2x1x22x22xf32, #tpu.memory_space<vmem>>, vector<1x1x1x16xf32>
    %82 = vector.shape_cast %81 : vector<1x1x1x16xf32> to vector<1x16xf32>
    %83 = vector.shape_cast %80 : vector<1x16xf32> to vector<1x1x1x16xf32>
    tpu.vector_store %arg6[%c0_75, %c0_76, %c9, %c3_77], %83 {strides = array<i32>} : memref<2x1x22x22xf32, #tpu.memory_space<vmem>>, vector<1x1x1x16xf32>,
    %84 = vector.extract_strided_slice %23 {offsets = [0, 96], sizes = [1, 16], strides = [1, 1]} : vector<1x256xf32> to vector<1x16xf32>
    %c1_78 = arith.constant 1 : index
    %c0_79 = arith.constant 0 : index
    %c9_80 = arith.constant 9 : index
    %c3_81 = arith.constant 3 : index
    %85 = vector.load %arg6[%c1_78, %c0_79, %c9_80, %c3_81] : memref<2x1x22x22xf32, #tpu.memory_space<vmem>>, vector<1x1x1x16xf32>
    %86 = vector.shape_cast %85 : vector<1x1x1x16xf32> to vector<1x16xf32>
    %87 = vector.shape_cast %84 : vector<1x16xf32> to vector<1x1x1x16xf32>
    tpu.vector_store %arg6[%c1_78, %c0_79, %c9_80, %c3_81], %87 {strides = array<i32>} : memref<2x1x22x22xf32, #tpu.memory_space<vmem>>, vector<1x1x1x16xf32>,
    %88 = vector.extract_strided_slice %22 {offsets = [0, 112], sizes = [1, 16], strides = [1, 1]} : vector<1x256xf32> to vector<1x16xf32>
    %c0_82 = arith.constant 0 : index
    %c0_83 = arith.constant 0 : index
    %c10 = arith.constant 10 : index
    %c3_84 = arith.constant 3 : index
    %89 = vector.load %arg6[%c0_82, %c0_83, %c10, %c3_84] : memref<2x1x22x22xf32, #tpu.memory_space<vmem>>, vector<1x1x1x16xf32>
    %90 = vector.shape_cast %89 : vector<1x1x1x16xf32> to vector<1x16xf32>
    %91 = vector.shape_cast %88 : vector<1x16xf32> to vector<1x1x1x16xf32>
    tpu.vector_store %arg6[%c0_82, %c0_83, %c10, %c3_84], %91 {strides = array<i32>} : memref<2x1x22x22xf32, #tpu.memory_space<vmem>>, vector<1x1x1x16xf32>,
    %92 = vector.extract_strided_slice %23 {offsets = [0, 112], sizes = [1, 16], strides = [1, 1]} : vector<1x256xf32> to vector<1x16xf32>
    %c1_85 = arith.constant 1 : index
    %c0_86 = arith.constant 0 : index
    %c10_87 = arith.constant 10 : index
    %c3_88 = arith.constant 3 : index
    %93 = vector.load %arg6[%c1_85, %c0_86, %c10_87, %c3_88] : memref<2x1x22x22xf32, #tpu.memory_space<vmem>>, vector<1x1x1x16xf32>
    %94 = vector.shape_cast %93 : vector<1x1x1x16xf32> to vector<1x16xf32>
    %95 = vector.shape_cast %92 : vector<1x16xf32> to vector<1x1x1x16xf32>
    tpu.vector_store %arg6[%c1_85, %c0_86, %c10_87, %c3_88], %95 {strides = array<i32>} : memref<2x1x22x22xf32, #tpu.memory_space<vmem>>, vector<1x1x1x16xf32>,
    %96 = vector.extract_strided_slice %22 {offsets = [0, 128], sizes = [1, 16], strides = [1, 1]} : vector<1x256xf32> to vector<1x16xf32>
    %c0_89 = arith.constant 0 : index
    %c0_90 = arith.constant 0 : index
    %c11 = arith.constant 11 : index
    %c3_91 = arith.constant 3 : index
    %97 = vector.load %arg6[%c0_89, %c0_90, %c11, %c3_91] : memref<2x1x22x22xf32, #tpu.memory_space<vmem>>, vector<1x1x1x16xf32>
    %98 = vector.shape_cast %97 : vector<1x1x1x16xf32> to vector<1x16xf32>
    %99 = vector.shape_cast %96 : vector<1x16xf32> to vector<1x1x1x16xf32>
    tpu.vector_store %arg6[%c0_89, %c0_90, %c11, %c3_91], %99 {strides = array<i32>} : memref<2x1x22x22xf32, #tpu.memory_space<vmem>>, vector<1x1x1x16xf32>,
    %100 = vector.extract_strided_slice %23 {offsets = [0, 128], sizes = [1, 16], strides = [1, 1]} : vector<1x256xf32> to vector<1x16xf32>
    %c1_92 = arith.constant 1 : index
    %c0_93 = arith.constant 0 : index
    %c11_94 = arith.constant 11 : index
    %c3_95 = arith.constant 3 : index
    %101 = vector.load %arg6[%c1_92, %c0_93, %c11_94, %c3_95] : memref<2x1x22x22xf32, #tpu.memory_space<vmem>>, vector<1x1x1x16xf32>
    %102 = vector.shape_cast %101 : vector<1x1x1x16xf32> to vector<1x16xf32>
    %103 = vector.shape_cast %100 : vector<1x16xf32> to vector<1x1x1x16xf32>
    tpu.vector_store %arg6[%c1_92, %c0_93, %c11_94, %c3_95], %103 {strides = array<i32>} : memref<2x1x22x22xf32, #tpu.memory_space<vmem>>, vector<1x1x1x16xf32>,
    %104 = vector.extract_strided_slice %22 {offsets = [0, 144], sizes = [1, 16], strides = [1, 1]} : vector<1x256xf32> to vector<1x16xf32>
    %c0_96 = arith.constant 0 : index
    %c0_97 = arith.constant 0 : index
    %c12 = arith.constant 12 : index
    %c3_98 = arith.constant 3 : index
    %105 = vector.load %arg6[%c0_96, %c0_97, %c12, %c3_98] : memref<2x1x22x22xf32, #tpu.memory_space<vmem>>, vector<1x1x1x16xf32>
    %106 = vector.shape_cast %105 : vector<1x1x1x16xf32> to vector<1x16xf32>
    %107 = vector.shape_cast %104 : vector<1x16xf32> to vector<1x1x1x16xf32>
    tpu.vector_store %arg6[%c0_96, %c0_97, %c12, %c3_98], %107 {strides = array<i32>} : memref<2x1x22x22xf32, #tpu.memory_space<vmem>>, vector<1x1x1x16xf32>,
    %108 = vector.extract_strided_slice %23 {offsets = [0, 144], sizes = [1, 16], strides = [1, 1]} : vector<1x256xf32> to vector<1x16xf32>
    %c1_99 = arith.constant 1 : index
    %c0_100 = arith.constant 0 : index
    %c12_101 = arith.constant 12 : index
    %c3_102 = arith.constant 3 : index
    %109 = vector.load %arg6[%c1_99, %c0_100, %c12_101, %c3_102] : memref<2x1x22x22xf32, #tpu.memory_space<vmem>>, vector<1x1x1x16xf32>
    %110 = vector.shape_cast %109 : vector<1x1x1x16xf32> to vector<1x16xf32>
    %111 = vector.shape_cast %108 : vector<1x16xf32> to vector<1x1x1x16xf32>
    tpu.vector_store %arg6[%c1_99, %c0_100, %c12_101, %c3_102], %111 {strides = array<i32>} : memref<2x1x22x22xf32, #tpu.memory_space<vmem>>, vector<1x1x1x16xf32>,
    %112 = vector.extract_strided_slice %22 {offsets = [0, 160], sizes = [1, 16], strides = [1, 1]} : vector<1x256xf32> to vector<1x16xf32>
    %c0_103 = arith.constant 0 : index
    %c0_104 = arith.constant 0 : index
    %c13 = arith.constant 13 : index
    %c3_105 = arith.constant 3 : index
    %113 = vector.load %arg6[%c0_103, %c0_104, %c13, %c3_105] : memref<2x1x22x22xf32, #tpu.memory_space<vmem>>, vector<1x1x1x16xf32>
    %114 = vector.shape_cast %113 : vector<1x1x1x16xf32> to vector<1x16xf32>
    %115 = vector.shape_cast %112 : vector<1x16xf32> to vector<1x1x1x16xf32>
    tpu.vector_store %arg6[%c0_103, %c0_104, %c13, %c3_105], %115 {strides = array<i32>} : memref<2x1x22x22xf32, #tpu.memory_space<vmem>>, vector<1x1x1x16xf32>,
    %116 = vector.extract_strided_slice %23 {offsets = [0, 160], sizes = [1, 16], strides = [1, 1]} : vector<1x256xf32> to vector<1x16xf32>
    %c1_106 = arith.constant 1 : index
    %c0_107 = arith.constant 0 : index
    %c13_108 = arith.constant 13 : index
    %c3_109 = arith.constant 3 : index
    %117 = vector.load %arg6[%c1_106, %c0_107, %c13_108, %c3_109] : memref<2x1x22x22xf32, #tpu.memory_space<vmem>>, vector<1x1x1x16xf32>
    %118 = vector.shape_cast %117 : vector<1x1x1x16xf32> to vector<1x16xf32>
    %119 = vector.shape_cast %116 : vector<1x16xf32> to vector<1x1x1x16xf32>
    tpu.vector_store %arg6[%c1_106, %c0_107, %c13_108, %c3_109], %119 {strides = array<i32>} : memref<2x1x22x22xf32, #tpu.memory_space<vmem>>, vector<1x1x1x16xf32>,
    %120 = vector.extract_strided_slice %22 {offsets = [0, 176], sizes = [1, 16], strides = [1, 1]} : vector<1x256xf32> to vector<1x16xf32>
    %c0_110 = arith.constant 0 : index
    %c0_111 = arith.constant 0 : index
    %c14 = arith.constant 14 : index
    %c3_112 = arith.constant 3 : index
    %121 = vector.load %arg6[%c0_110, %c0_111, %c14, %c3_112] : memref<2x1x22x22xf32, #tpu.memory_space<vmem>>, vector<1x1x1x16xf32>
    %122 = vector.shape_cast %121 : vector<1x1x1x16xf32> to vector<1x16xf32>
    %123 = vector.shape_cast %120 : vector<1x16xf32> to vector<1x1x1x16xf32>
    tpu.vector_store %arg6[%c0_110, %c0_111, %c14, %c3_112], %123 {strides = array<i32>} : memref<2x1x22x22xf32, #tpu.memory_space<vmem>>, vector<1x1x1x16xf32>,
    %124 = vector.extract_strided_slice %23 {offsets = [0, 176], sizes = [1, 16], strides = [1, 1]} : vector<1x256xf32> to vector<1x16xf32>
    %c1_113 = arith.constant 1 : index
    %c0_114 = arith.constant 0 : index
    %c14_115 = arith.constant 14 : index
    %c3_116 = arith.constant 3 : index
    %125 = vector.load %arg6[%c1_113, %c0_114, %c14_115, %c3_116] : memref<2x1x22x22xf32, #tpu.memory_space<vmem>>, vector<1x1x1x16xf32>
    %126 = vector.shape_cast %125 : vector<1x1x1x16xf32> to vector<1x16xf32>
    %127 = vector.shape_cast %124 : vector<1x16xf32> to vector<1x1x1x16xf32>
    tpu.vector_store %arg6[%c1_113, %c0_114, %c14_115, %c3_116], %127 {strides = array<i32>} : memref<2x1x22x22xf32, #tpu.memory_space<vmem>>, vector<1x1x1x16xf32>,
    %128 = vector.extract_strided_slice %22 {offsets = [0, 192], sizes = [1, 16], strides = [1, 1]} : vector<1x256xf32> to vector<1x16xf32>
    %c0_117 = arith.constant 0 : index
    %c0_118 = arith.constant 0 : index
    %c15 = arith.constant 15 : index
    %c3_119 = arith.constant 3 : index
    %129 = vector.load %arg6[%c0_117, %c0_118, %c15, %c3_119] : memref<2x1x22x22xf32, #tpu.memory_space<vmem>>, vector<1x1x1x16xf32>
    %130 = vector.shape_cast %129 : vector<1x1x1x16xf32> to vector<1x16xf32>
    %131 = vector.shape_cast %128 : vector<1x16xf32> to vector<1x1x1x16xf32>
    tpu.vector_store %arg6[%c0_117, %c0_118, %c15, %c3_119], %131 {strides = array<i32>} : memref<2x1x22x22xf32, #tpu.memory_space<vmem>>, vector<1x1x1x16xf32>,
    %132 = vector.extract_strided_slice %23 {offsets = [0, 192], sizes = [1, 16], strides = [1, 1]} : vector<1x256xf32> to vector<1x16xf32>
    %c1_120 = arith.constant 1 : index
    %c0_121 = arith.constant 0 : index
    %c15_122 = arith.constant 15 : index
    %c3_123 = arith.constant 3 : index
    %133 = vector.load %arg6[%c1_120, %c0_121, %c15_122, %c3_123] : memref<2x1x22x22xf32, #tpu.memory_space<vmem>>, vector<1x1x1x16xf32>
    %134 = vector.shape_cast %133 : vector<1x1x1x16xf32> to vector<1x16xf32>
    %135 = vector.shape_cast %132 : vector<1x16xf32> to vector<1x1x1x16xf32>
    tpu.vector_store %arg6[%c1_120, %c0_121, %c15_122, %c3_123], %135 {strides = array<i32>} : memref<2x1x22x22xf32, #tpu.memory_space<vmem>>, vector<1x1x1x16xf32>,
    %136 = vector.extract_strided_slice %22 {offsets = [0, 208], sizes = [1, 16], strides = [1, 1]} : vector<1x256xf32> to vector<1x16xf32>
    %c0_124 = arith.constant 0 : index
    %c0_125 = arith.constant 0 : index
    %c16 = arith.constant 16 : index
    %c3_126 = arith.constant 3 : index
    %137 = vector.load %arg6[%c0_124, %c0_125, %c16, %c3_126] : memref<2x1x22x22xf32, #tpu.memory_space<vmem>>, vector<1x1x1x16xf32>
    %138 = vector.shape_cast %137 : vector<1x1x1x16xf32> to vector<1x16xf32>
    %139 = vector.shape_cast %136 : vector<1x16xf32> to vector<1x1x1x16xf32>
    tpu.vector_store %arg6[%c0_124, %c0_125, %c16, %c3_126], %139 {strides = array<i32>} : memref<2x1x22x22xf32, #tpu.memory_space<vmem>>, vector<1x1x1x16xf32>,
    %140 = vector.extract_strided_slice %23 {offsets = [0, 208], sizes = [1, 16], strides = [1, 1]} : vector<1x256xf32> to vector<1x16xf32>
    %c1_127 = arith.constant 1 : index
    %c0_128 = arith.constant 0 : index
    %c16_129 = arith.constant 16 : index
    %c3_130 = arith.constant 3 : index
    %141 = vector.load %arg6[%c1_127, %c0_128, %c16_129, %c3_130] : memref<2x1x22x22xf32, #tpu.memory_space<vmem>>, vector<1x1x1x16xf32>
    %142 = vector.shape_cast %141 : vector<1x1x1x16xf32> to vector<1x16xf32>
    %143 = vector.shape_cast %140 : vector<1x16xf32> to vector<1x1x1x16xf32>
    tpu.vector_store %arg6[%c1_127, %c0_128, %c16_129, %c3_130], %143 {strides = array<i32>} : memref<2x1x22x22xf32, #tpu.memory_space<vmem>>, vector<1x1x1x16xf32>,
    %144 = vector.extract_strided_slice %22 {offsets = [0, 224], sizes = [1, 16], strides = [1, 1]} : vector<1x256xf32> to vector<1x16xf32>
    %c0_131 = arith.constant 0 : index
    %c0_132 = arith.constant 0 : index
    %c17 = arith.constant 17 : index
    %c3_133 = arith.constant 3 : index
    %145 = vector.load %arg6[%c0_131, %c0_132, %c17, %c3_133] : memref<2x1x22x22xf32, #tpu.memory_space<vmem>>, vector<1x1x1x16xf32>
    %146 = vector.shape_cast %145 : vector<1x1x1x16xf32> to vector<1x16xf32>
    %147 = vector.shape_cast %144 : vector<1x16xf32> to vector<1x1x1x16xf32>
    tpu.vector_store %arg6[%c0_131, %c0_132, %c17, %c3_133], %147 {strides = array<i32>} : memref<2x1x22x22xf32, #tpu.memory_space<vmem>>, vector<1x1x1x16xf32>,
    %148 = vector.extract_strided_slice %23 {offsets = [0, 224], sizes = [1, 16], strides = [1, 1]} : vector<1x256xf32> to vector<1x16xf32>
    %c1_134 = arith.constant 1 : index
    %c0_135 = arith.constant 0 : index
    %c17_136 = arith.constant 17 : index
    %c3_137 = arith.constant 3 : index
    %149 = vector.load %arg6[%c1_134, %c0_135, %c17_136, %c3_137] : memref<2x1x22x22xf32, #tpu.memory_space<vmem>>, vector<1x1x1x16xf32>
    %150 = vector.shape_cast %149 : vector<1x1x1x16xf32> to vector<1x16xf32>
    %151 = vector.shape_cast %148 : vector<1x16xf32> to vector<1x1x1x16xf32>
    tpu.vector_store %arg6[%c1_134, %c0_135, %c17_136, %c3_137], %151 {strides = array<i32>} : memref<2x1x22x22xf32, #tpu.memory_space<vmem>>, vector<1x1x1x16xf32>,
    %152 = vector.extract_strided_slice %22 {offsets = [0, 240], sizes = [1, 16], strides = [1, 1]} : vector<1x256xf32> to vector<1x16xf32>
    %c0_138 = arith.constant 0 : index
    %c0_139 = arith.constant 0 : index
    %c18 = arith.constant 18 : index
    %c3_140 = arith.constant 3 : index
    %153 = vector.load %arg6[%c0_138, %c0_139, %c18, %c3_140] : memref<2x1x22x22xf32, #tpu.memory_space<vmem>>, vector<1x1x1x16xf32>
    %154 = vector.shape_cast %153 : vector<1x1x1x16xf32> to vector<1x16xf32>
    %155 = vector.shape_cast %152 : vector<1x16xf32> to vector<1x1x1x16xf32>
    tpu.vector_store %arg6[%c0_138, %c0_139, %c18, %c3_140], %155 {strides = array<i32>} : memref<2x1x22x22xf32, #tpu.memory_space<vmem>>, vector<1x1x1x16xf32>,
    %156 = vector.extract_strided_slice %23 {offsets = [0, 240], sizes = [1, 16], strides = [1, 1]} : vector<1x256xf32> to vector<1x16xf32>
    %c1_141 = arith.constant 1 : index
    %c0_142 = arith.constant 0 : index
    %c18_143 = arith.constant 18 : index
    %c3_144 = arith.constant 3 : index
    %157 = vector.load %arg6[%c1_141, %c0_142, %c18_143, %c3_144] : memref<2x1x22x22xf32, #tpu.memory_space<vmem>>, vector<1x1x1x16xf32>
    %158 = vector.shape_cast %157 : vector<1x1x1x16xf32> to vector<1x16xf32>
    %159 = vector.shape_cast %156 : vector<1x16xf32> to vector<1x1x1x16xf32>
    tpu.vector_store %arg6[%c1_141, %c0_142, %c18_143, %c3_144], %159 {strides = array<i32>} : memref<2x1x22x22xf32, #tpu.memory_space<vmem>>, vector<1x1x1x16xf32>,
    %cst_145 = arith.constant 0.000000e+00 : f32
    %160 = vector.broadcast %cst_145 : f32 to vector<1x16x16xf32>
    %c0_146 = arith.constant 0 : index
    %c0_147 = arith.constant 0 : index
    %c0_148 = arith.constant 0 : index
    %c0_149 = arith.constant 0 : index
    %161 = vector.load %arg6[%c0_146, %c0_147, %c0_148, %c0_149] : memref<2x1x22x22xf32, #tpu.memory_space<vmem>>, vector<1x1x16x22xf32>
    %162 = vector.shape_cast %161 : vector<1x1x16x22xf32> to vector<1x16x22xf32>
    %c0_150 = arith.constant 0 : index
    %163 = memref.load %arg4[%c0_150] : memref<98xf32, #tpu.memory_space<smem>>
    %164 = vector.extract_strided_slice %162 {offsets = [0, 0, 0], sizes = [1, 16, 16], strides = [1, 1, 1]} : vector<1x16x22xf32> to vector<1x16x16xf32>
    %165 = vector.broadcast %163 : f32 to vector<1x16x16xf32>
    %166 = arith.mulf %165, %164 : vector<1x16x16xf32>
    %167 = arith.addf %160, %166 : vector<1x16x16xf32>
    %c1_151 = arith.constant 1 : index
    %168 = memref.load %arg4[%c1_151] : memref<98xf32, #tpu.memory_space<smem>>
    %169 = vector.extract_strided_slice %162 {offsets = [0, 0, 1], sizes = [1, 16, 16], strides = [1, 1, 1]} : vector<1x16x22xf32> to vector<1x16x16xf32>
    %170 = vector.broadcast %168 : f32 to vector<1x16x16xf32>
    %171 = arith.mulf %170, %169 : vector<1x16x16xf32>
    %172 = arith.addf %167, %171 : vector<1x16x16xf32>
    %c2 = arith.constant 2 : index
    %173 = memref.load %arg4[%c2] : memref<98xf32, #tpu.memory_space<smem>>
    %174 = vector.extract_strided_slice %162 {offsets = [0, 0, 2], sizes = [1, 16, 16], strides = [1, 1, 1]} : vector<1x16x22xf32> to vector<1x16x16xf32>
    %175 = vector.broadcast %173 : f32 to vector<1x16x16xf32>
    %176 = arith.mulf %175, %174 : vector<1x16x16xf32>
    %177 = arith.addf %172, %176 : vector<1x16x16xf32>
    %c3_152 = arith.constant 3 : index
    %178 = memref.load %arg4[%c3_152] : memref<98xf32, #tpu.memory_space<smem>>
    %179 = vector.extract_strided_slice %162 {offsets = [0, 0, 3], sizes = [1, 16, 16], strides = [1, 1, 1]} : vector<1x16x22xf32> to vector<1x16x16xf32>
    %180 = vector.broadcast %178 : f32 to vector<1x16x16xf32>
    %181 = arith.mulf %180, %179 : vector<1x16x16xf32>
    %182 = arith.addf %177, %181 : vector<1x16x16xf32>
    %c4_153 = arith.constant 4 : index
    %183 = memref.load %arg4[%c4_153] : memref<98xf32, #tpu.memory_space<smem>>
    %184 = vector.extract_strided_slice %162 {offsets = [0, 0, 4], sizes = [1, 16, 16], strides = [1, 1, 1]} : vector<1x16x22xf32> to vector<1x16x16xf32>
    %185 = vector.broadcast %183 : f32 to vector<1x16x16xf32>
    %186 = arith.mulf %185, %184 : vector<1x16x16xf32>
    %187 = arith.addf %182, %186 : vector<1x16x16xf32>
    %c5_154 = arith.constant 5 : index
    %188 = memref.load %arg4[%c5_154] : memref<98xf32, #tpu.memory_space<smem>>
    %189 = vector.extract_strided_slice %162 {offsets = [0, 0, 5], sizes = [1, 16, 16], strides = [1, 1, 1]} : vector<1x16x22xf32> to vector<1x16x16xf32>
    %190 = vector.broadcast %188 : f32 to vector<1x16x16xf32>
    %191 = arith.mulf %190, %189 : vector<1x16x16xf32>
    %192 = arith.addf %187, %191 : vector<1x16x16xf32>
    %c6_155 = arith.constant 6 : index
    %193 = memref.load %arg4[%c6_155] : memref<98xf32, #tpu.memory_space<smem>>
    %194 = vector.extract_strided_slice %162 {offsets = [0, 0, 6], sizes = [1, 16, 16], strides = [1, 1, 1]} : vector<1x16x22xf32> to vector<1x16x16xf32>
    %195 = vector.broadcast %193 : f32 to vector<1x16x16xf32>
    %196 = arith.mulf %195, %194 : vector<1x16x16xf32>
    %197 = arith.addf %192, %196 : vector<1x16x16xf32>
    %c0_156 = arith.constant 0 : index
    %c0_157 = arith.constant 0 : index
    %c1_158 = arith.constant 1 : index
    %c0_159 = arith.constant 0 : index
    %198 = vector.load %arg6[%c0_156, %c0_157, %c1_158, %c0_159] : memref<2x1x22x22xf32, #tpu.memory_space<vmem>>, vector<1x1x16x22xf32>
    %199 = vector.shape_cast %198 : vector<1x1x16x22xf32> to vector<1x16x22xf32>
    %c7_160 = arith.constant 7 : index
    %200 = memref.load %arg4[%c7_160] : memref<98xf32, #tpu.memory_space<smem>>
    %201 = vector.extract_strided_slice %199 {offsets = [0, 0, 0], sizes = [1, 16, 16], strides = [1, 1, 1]} : vector<1x16x22xf32> to vector<1x16x16xf32>
    %202 = vector.broadcast %200 : f32 to vector<1x16x16xf32>
    %203 = arith.mulf %202, %201 : vector<1x16x16xf32>
    %204 = arith.addf %197, %203 : vector<1x16x16xf32>
    %c8_161 = arith.constant 8 : index
    %205 = memref.load %arg4[%c8_161] : memref<98xf32, #tpu.memory_space<smem>>
    %206 = vector.extract_strided_slice %199 {offsets = [0, 0, 1], sizes = [1, 16, 16], strides = [1, 1, 1]} : vector<1x16x22xf32> to vector<1x16x16xf32>
    %207 = vector.broadcast %205 : f32 to vector<1x16x16xf32>
    %208 = arith.mulf %207, %206 : vector<1x16x16xf32>
    %209 = arith.addf %204, %208 : vector<1x16x16xf32>
    %c9_162 = arith.constant 9 : index
    %210 = memref.load %arg4[%c9_162] : memref<98xf32, #tpu.memory_space<smem>>
    %211 = vector.extract_strided_slice %199 {offsets = [0, 0, 2], sizes = [1, 16, 16], strides = [1, 1, 1]} : vector<1x16x22xf32> to vector<1x16x16xf32>
    %212 = vector.broadcast %210 : f32 to vector<1x16x16xf32>
    %213 = arith.mulf %212, %211 : vector<1x16x16xf32>
    %214 = arith.addf %209, %213 : vector<1x16x16xf32>
    %c10_163 = arith.constant 10 : index
    %215 = memref.load %arg4[%c10_163] : memref<98xf32, #tpu.memory_space<smem>>
    %216 = vector.extract_strided_slice %199 {offsets = [0, 0, 3], sizes = [1, 16, 16], strides = [1, 1, 1]} : vector<1x16x22xf32> to vector<1x16x16xf32>
    %217 = vector.broadcast %215 : f32 to vector<1x16x16xf32>
    %218 = arith.mulf %217, %216 : vector<1x16x16xf32>
    %219 = arith.addf %214, %218 : vector<1x16x16xf32>
    %c11_164 = arith.constant 11 : index
    %220 = memref.load %arg4[%c11_164] : memref<98xf32, #tpu.memory_space<smem>>
    %221 = vector.extract_strided_slice %199 {offsets = [0, 0, 4], sizes = [1, 16, 16], strides = [1, 1, 1]} : vector<1x16x22xf32> to vector<1x16x16xf32>
    %222 = vector.broadcast %220 : f32 to vector<1x16x16xf32>
    %223 = arith.mulf %222, %221 : vector<1x16x16xf32>
    %224 = arith.addf %219, %223 : vector<1x16x16xf32>
    %c12_165 = arith.constant 12 : index
    %225 = memref.load %arg4[%c12_165] : memref<98xf32, #tpu.memory_space<smem>>
    %226 = vector.extract_strided_slice %199 {offsets = [0, 0, 5], sizes = [1, 16, 16], strides = [1, 1, 1]} : vector<1x16x22xf32> to vector<1x16x16xf32>
    %227 = vector.broadcast %225 : f32 to vector<1x16x16xf32>
    %228 = arith.mulf %227, %226 : vector<1x16x16xf32>
    %229 = arith.addf %224, %228 : vector<1x16x16xf32>
    %c13_166 = arith.constant 13 : index
    %230 = memref.load %arg4[%c13_166] : memref<98xf32, #tpu.memory_space<smem>>
    %231 = vector.extract_strided_slice %199 {offsets = [0, 0, 6], sizes = [1, 16, 16], strides = [1, 1, 1]} : vector<1x16x22xf32> to vector<1x16x16xf32>
    %232 = vector.broadcast %230 : f32 to vector<1x16x16xf32>
    %233 = arith.mulf %232, %231 : vector<1x16x16xf32>
    %234 = arith.addf %229, %233 : vector<1x16x16xf32>
    %c0_167 = arith.constant 0 : index
    %c0_168 = arith.constant 0 : index
    %c2_169 = arith.constant 2 : index
    %c0_170 = arith.constant 0 : index
    %235 = vector.load %arg6[%c0_167, %c0_168, %c2_169, %c0_170] : memref<2x1x22x22xf32, #tpu.memory_space<vmem>>, vector<1x1x16x22xf32>
    %236 = vector.shape_cast %235 : vector<1x1x16x22xf32> to vector<1x16x22xf32>
    %c14_171 = arith.constant 14 : index
    %237 = memref.load %arg4[%c14_171] : memref<98xf32, #tpu.memory_space<smem>>
    %238 = vector.extract_strided_slice %236 {offsets = [0, 0, 0], sizes = [1, 16, 16], strides = [1, 1, 1]} : vector<1x16x22xf32> to vector<1x16x16xf32>
    %239 = vector.broadcast %237 : f32 to vector<1x16x16xf32>
    %240 = arith.mulf %239, %238 : vector<1x16x16xf32>
    %241 = arith.addf %234, %240 : vector<1x16x16xf32>
    %c15_172 = arith.constant 15 : index
    %242 = memref.load %arg4[%c15_172] : memref<98xf32, #tpu.memory_space<smem>>
    %243 = vector.extract_strided_slice %236 {offsets = [0, 0, 1], sizes = [1, 16, 16], strides = [1, 1, 1]} : vector<1x16x22xf32> to vector<1x16x16xf32>
    %244 = vector.broadcast %242 : f32 to vector<1x16x16xf32>
    %245 = arith.mulf %244, %243 : vector<1x16x16xf32>
    %246 = arith.addf %241, %245 : vector<1x16x16xf32>
    %c16_173 = arith.constant 16 : index
    %247 = memref.load %arg4[%c16_173] : memref<98xf32, #tpu.memory_space<smem>>
    %248 = vector.extract_strided_slice %236 {offsets = [0, 0, 2], sizes = [1, 16, 16], strides = [1, 1, 1]} : vector<1x16x22xf32> to vector<1x16x16xf32>
    %249 = vector.broadcast %247 : f32 to vector<1x16x16xf32>
    %250 = arith.mulf %249, %248 : vector<1x16x16xf32>
    %251 = arith.addf %246, %250 : vector<1x16x16xf32>
    %c17_174 = arith.constant 17 : index
    %252 = memref.load %arg4[%c17_174] : memref<98xf32, #tpu.memory_space<smem>>
    %253 = vector.extract_strided_slice %236 {offsets = [0, 0, 3], sizes = [1, 16, 16], strides = [1, 1, 1]} : vector<1x16x22xf32> to vector<1x16x16xf32>
    %254 = vector.broadcast %252 : f32 to vector<1x16x16xf32>
    %255 = arith.mulf %254, %253 : vector<1x16x16xf32>
    %256 = arith.addf %251, %255 : vector<1x16x16xf32>
    %c18_175 = arith.constant 18 : index
    %257 = memref.load %arg4[%c18_175] : memref<98xf32, #tpu.memory_space<smem>>
    %258 = vector.extract_strided_slice %236 {offsets = [0, 0, 4], sizes = [1, 16, 16], strides = [1, 1, 1]} : vector<1x16x22xf32> to vector<1x16x16xf32>
    %259 = vector.broadcast %257 : f32 to vector<1x16x16xf32>
    %260 = arith.mulf %259, %258 : vector<1x16x16xf32>
    %261 = arith.addf %256, %260 : vector<1x16x16xf32>
    %c19_176 = arith.constant 19 : index
    %262 = memref.load %arg4[%c19_176] : memref<98xf32, #tpu.memory_space<smem>>
    %263 = vector.extract_strided_slice %236 {offsets = [0, 0, 5], sizes = [1, 16, 16], strides = [1, 1, 1]} : vector<1x16x22xf32> to vector<1x16x16xf32>
    %264 = vector.broadcast %262 : f32 to vector<1x16x16xf32>
    %265 = arith.mulf %264, %263 : vector<1x16x16xf32>
    %266 = arith.addf %261, %265 : vector<1x16x16xf32>
    %c20 = arith.constant 20 : index
    %267 = memref.load %arg4[%c20] : memref<98xf32, #tpu.memory_space<smem>>
    %268 = vector.extract_strided_slice %236 {offsets = [0, 0, 6], sizes = [1, 16, 16], strides = [1, 1, 1]} : vector<1x16x22xf32> to vector<1x16x16xf32>
    %269 = vector.broadcast %267 : f32 to vector<1x16x16xf32>
    %270 = arith.mulf %269, %268 : vector<1x16x16xf32>
    %271 = arith.addf %266, %270 : vector<1x16x16xf32>
    %c0_177 = arith.constant 0 : index
    %c0_178 = arith.constant 0 : index
    %c3_179 = arith.constant 3 : index
    %c0_180 = arith.constant 0 : index
    %272 = vector.load %arg6[%c0_177, %c0_178, %c3_179, %c0_180] : memref<2x1x22x22xf32, #tpu.memory_space<vmem>>, vector<1x1x16x22xf32>
    %273 = vector.shape_cast %272 : vector<1x1x16x22xf32> to vector<1x16x22xf32>
    %c21 = arith.constant 21 : index
    %274 = memref.load %arg4[%c21] : memref<98xf32, #tpu.memory_space<smem>>
    %275 = vector.extract_strided_slice %273 {offsets = [0, 0, 0], sizes = [1, 16, 16], strides = [1, 1, 1]} : vector<1x16x22xf32> to vector<1x16x16xf32>
    %276 = vector.broadcast %274 : f32 to vector<1x16x16xf32>
    %277 = arith.mulf %276, %275 : vector<1x16x16xf32>
    %278 = arith.addf %271, %277 : vector<1x16x16xf32>
    %c22 = arith.constant 22 : index
    %279 = memref.load %arg4[%c22] : memref<98xf32, #tpu.memory_space<smem>>
    %280 = vector.extract_strided_slice %273 {offsets = [0, 0, 1], sizes = [1, 16, 16], strides = [1, 1, 1]} : vector<1x16x22xf32> to vector<1x16x16xf32>
    %281 = vector.broadcast %279 : f32 to vector<1x16x16xf32>
    %282 = arith.mulf %281, %280 : vector<1x16x16xf32>
    %283 = arith.addf %278, %282 : vector<1x16x16xf32>
    %c23 = arith.constant 23 : index
    %284 = memref.load %arg4[%c23] : memref<98xf32, #tpu.memory_space<smem>>
    %285 = vector.extract_strided_slice %273 {offsets = [0, 0, 2], sizes = [1, 16, 16], strides = [1, 1, 1]} : vector<1x16x22xf32> to vector<1x16x16xf32>
    %286 = vector.broadcast %284 : f32 to vector<1x16x16xf32>
    %287 = arith.mulf %286, %285 : vector<1x16x16xf32>
    %288 = arith.addf %283, %287 : vector<1x16x16xf32>
    %c24 = arith.constant 24 : index
    %289 = memref.load %arg4[%c24] : memref<98xf32, #tpu.memory_space<smem>>
    %290 = vector.extract_strided_slice %273 {offsets = [0, 0, 3], sizes = [1, 16, 16], strides = [1, 1, 1]} : vector<1x16x22xf32> to vector<1x16x16xf32>
    %291 = vector.broadcast %289 : f32 to vector<1x16x16xf32>
    %292 = arith.mulf %291, %290 : vector<1x16x16xf32>
    %293 = arith.addf %288, %292 : vector<1x16x16xf32>
    %c25 = arith.constant 25 : index
    %294 = memref.load %arg4[%c25] : memref<98xf32, #tpu.memory_space<smem>>
    %295 = vector.extract_strided_slice %273 {offsets = [0, 0, 4], sizes = [1, 16, 16], strides = [1, 1, 1]} : vector<1x16x22xf32> to vector<1x16x16xf32>
    %296 = vector.broadcast %294 : f32 to vector<1x16x16xf32>
    %297 = arith.mulf %296, %295 : vector<1x16x16xf32>
    %298 = arith.addf %293, %297 : vector<1x16x16xf32>
    %c26 = arith.constant 26 : index
    %299 = memref.load %arg4[%c26] : memref<98xf32, #tpu.memory_space<smem>>
    %300 = vector.extract_strided_slice %273 {offsets = [0, 0, 5], sizes = [1, 16, 16], strides = [1, 1, 1]} : vector<1x16x22xf32> to vector<1x16x16xf32>
    %301 = vector.broadcast %299 : f32 to vector<1x16x16xf32>
    %302 = arith.mulf %301, %300 : vector<1x16x16xf32>
    %303 = arith.addf %298, %302 : vector<1x16x16xf32>
    %c27 = arith.constant 27 : index
    %304 = memref.load %arg4[%c27] : memref<98xf32, #tpu.memory_space<smem>>
    %305 = vector.extract_strided_slice %273 {offsets = [0, 0, 6], sizes = [1, 16, 16], strides = [1, 1, 1]} : vector<1x16x22xf32> to vector<1x16x16xf32>
    %306 = vector.broadcast %304 : f32 to vector<1x16x16xf32>
    %307 = arith.mulf %306, %305 : vector<1x16x16xf32>
    %308 = arith.addf %303, %307 : vector<1x16x16xf32>
    %c0_181 = arith.constant 0 : index
    %c0_182 = arith.constant 0 : index
    %c4_183 = arith.constant 4 : index
    %c0_184 = arith.constant 0 : index
    %309 = vector.load %arg6[%c0_181, %c0_182, %c4_183, %c0_184] : memref<2x1x22x22xf32, #tpu.memory_space<vmem>>, vector<1x1x16x22xf32>
    %310 = vector.shape_cast %309 : vector<1x1x16x22xf32> to vector<1x16x22xf32>
    %c28 = arith.constant 28 : index
    %311 = memref.load %arg4[%c28] : memref<98xf32, #tpu.memory_space<smem>>
    %312 = vector.extract_strided_slice %310 {offsets = [0, 0, 0], sizes = [1, 16, 16], strides = [1, 1, 1]} : vector<1x16x22xf32> to vector<1x16x16xf32>
    %313 = vector.broadcast %311 : f32 to vector<1x16x16xf32>
    %314 = arith.mulf %313, %312 : vector<1x16x16xf32>
    %315 = arith.addf %308, %314 : vector<1x16x16xf32>
    %c29 = arith.constant 29 : index
    %316 = memref.load %arg4[%c29] : memref<98xf32, #tpu.memory_space<smem>>
    %317 = vector.extract_strided_slice %310 {offsets = [0, 0, 1], sizes = [1, 16, 16], strides = [1, 1, 1]} : vector<1x16x22xf32> to vector<1x16x16xf32>
    %318 = vector.broadcast %316 : f32 to vector<1x16x16xf32>
    %319 = arith.mulf %318, %317 : vector<1x16x16xf32>
    %320 = arith.addf %315, %319 : vector<1x16x16xf32>
    %c30 = arith.constant 30 : index
    %321 = memref.load %arg4[%c30] : memref<98xf32, #tpu.memory_space<smem>>
    %322 = vector.extract_strided_slice %310 {offsets = [0, 0, 2], sizes = [1, 16, 16], strides = [1, 1, 1]} : vector<1x16x22xf32> to vector<1x16x16xf32>
    %323 = vector.broadcast %321 : f32 to vector<1x16x16xf32>
    %324 = arith.mulf %323, %322 : vector<1x16x16xf32>
    %325 = arith.addf %320, %324 : vector<1x16x16xf32>
    %c31 = arith.constant 31 : index
    %326 = memref.load %arg4[%c31] : memref<98xf32, #tpu.memory_space<smem>>
    %327 = vector.extract_strided_slice %310 {offsets = [0, 0, 3], sizes = [1, 16, 16], strides = [1, 1, 1]} : vector<1x16x22xf32> to vector<1x16x16xf32>
    %328 = vector.broadcast %326 : f32 to vector<1x16x16xf32>
    %329 = arith.mulf %328, %327 : vector<1x16x16xf32>
    %330 = arith.addf %325, %329 : vector<1x16x16xf32>
    %c32 = arith.constant 32 : index
    %331 = memref.load %arg4[%c32] : memref<98xf32, #tpu.memory_space<smem>>
    %332 = vector.extract_strided_slice %310 {offsets = [0, 0, 4], sizes = [1, 16, 16], strides = [1, 1, 1]} : vector<1x16x22xf32> to vector<1x16x16xf32>
    %333 = vector.broadcast %331 : f32 to vector<1x16x16xf32>
    %334 = arith.mulf %333, %332 : vector<1x16x16xf32>
    %335 = arith.addf %330, %334 : vector<1x16x16xf32>
    %c33 = arith.constant 33 : index
    %336 = memref.load %arg4[%c33] : memref<98xf32, #tpu.memory_space<smem>>
    %337 = vector.extract_strided_slice %310 {offsets = [0, 0, 5], sizes = [1, 16, 16], strides = [1, 1, 1]} : vector<1x16x22xf32> to vector<1x16x16xf32>
    %338 = vector.broadcast %336 : f32 to vector<1x16x16xf32>
    %339 = arith.mulf %338, %337 : vector<1x16x16xf32>
    %340 = arith.addf %335, %339 : vector<1x16x16xf32>
    %c34 = arith.constant 34 : index
    %341 = memref.load %arg4[%c34] : memref<98xf32, #tpu.memory_space<smem>>
    %342 = vector.extract_strided_slice %310 {offsets = [0, 0, 6], sizes = [1, 16, 16], strides = [1, 1, 1]} : vector<1x16x22xf32> to vector<1x16x16xf32>
    %343 = vector.broadcast %341 : f32 to vector<1x16x16xf32>
    %344 = arith.mulf %343, %342 : vector<1x16x16xf32>
    %345 = arith.addf %340, %344 : vector<1x16x16xf32>
    %c0_185 = arith.constant 0 : index
    %c0_186 = arith.constant 0 : index
    %c5_187 = arith.constant 5 : index
    %c0_188 = arith.constant 0 : index
    %346 = vector.load %arg6[%c0_185, %c0_186, %c5_187, %c0_188] : memref<2x1x22x22xf32, #tpu.memory_space<vmem>>, vector<1x1x16x22xf32>
    %347 = vector.shape_cast %346 : vector<1x1x16x22xf32> to vector<1x16x22xf32>
    %c35 = arith.constant 35 : index
    %348 = memref.load %arg4[%c35] : memref<98xf32, #tpu.memory_space<smem>>
    %349 = vector.extract_strided_slice %347 {offsets = [0, 0, 0], sizes = [1, 16, 16], strides = [1, 1, 1]} : vector<1x16x22xf32> to vector<1x16x16xf32>
    %350 = vector.broadcast %348 : f32 to vector<1x16x16xf32>
    %351 = arith.mulf %350, %349 : vector<1x16x16xf32>
    %352 = arith.addf %345, %351 : vector<1x16x16xf32>
    %c36 = arith.constant 36 : index
    %353 = memref.load %arg4[%c36] : memref<98xf32, #tpu.memory_space<smem>>
    %354 = vector.extract_strided_slice %347 {offsets = [0, 0, 1], sizes = [1, 16, 16], strides = [1, 1, 1]} : vector<1x16x22xf32> to vector<1x16x16xf32>
    %355 = vector.broadcast %353 : f32 to vector<1x16x16xf32>
    %356 = arith.mulf %355, %354 : vector<1x16x16xf32>
    %357 = arith.addf %352, %356 : vector<1x16x16xf32>
    %c37 = arith.constant 37 : index
    %358 = memref.load %arg4[%c37] : memref<98xf32, #tpu.memory_space<smem>>
    %359 = vector.extract_strided_slice %347 {offsets = [0, 0, 2], sizes = [1, 16, 16], strides = [1, 1, 1]} : vector<1x16x22xf32> to vector<1x16x16xf32>
    %360 = vector.broadcast %358 : f32 to vector<1x16x16xf32>
    %361 = arith.mulf %360, %359 : vector<1x16x16xf32>
    %362 = arith.addf %357, %361 : vector<1x16x16xf32>
    %c38 = arith.constant 38 : index
    %363 = memref.load %arg4[%c38] : memref<98xf32, #tpu.memory_space<smem>>
    %364 = vector.extract_strided_slice %347 {offsets = [0, 0, 3], sizes = [1, 16, 16], strides = [1, 1, 1]} : vector<1x16x22xf32> to vector<1x16x16xf32>
    %365 = vector.broadcast %363 : f32 to vector<1x16x16xf32>
    %366 = arith.mulf %365, %364 : vector<1x16x16xf32>
    %367 = arith.addf %362, %366 : vector<1x16x16xf32>
    %c39 = arith.constant 39 : index
    %368 = memref.load %arg4[%c39] : memref<98xf32, #tpu.memory_space<smem>>
    %369 = vector.extract_strided_slice %347 {offsets = [0, 0, 4], sizes = [1, 16, 16], strides = [1, 1, 1]} : vector<1x16x22xf32> to vector<1x16x16xf32>
    %370 = vector.broadcast %368 : f32 to vector<1x16x16xf32>
    %371 = arith.mulf %370, %369 : vector<1x16x16xf32>
    %372 = arith.addf %367, %371 : vector<1x16x16xf32>
    %c40 = arith.constant 40 : index
    %373 = memref.load %arg4[%c40] : memref<98xf32, #tpu.memory_space<smem>>
    %374 = vector.extract_strided_slice %347 {offsets = [0, 0, 5], sizes = [1, 16, 16], strides = [1, 1, 1]} : vector<1x16x22xf32> to vector<1x16x16xf32>
    %375 = vector.broadcast %373 : f32 to vector<1x16x16xf32>
    %376 = arith.mulf %375, %374 : vector<1x16x16xf32>
    %377 = arith.addf %372, %376 : vector<1x16x16xf32>
    %c41 = arith.constant 41 : index
    %378 = memref.load %arg4[%c41] : memref<98xf32, #tpu.memory_space<smem>>
    %379 = vector.extract_strided_slice %347 {offsets = [0, 0, 6], sizes = [1, 16, 16], strides = [1, 1, 1]} : vector<1x16x22xf32> to vector<1x16x16xf32>
    %380 = vector.broadcast %378 : f32 to vector<1x16x16xf32>
    %381 = arith.mulf %380, %379 : vector<1x16x16xf32>
    %382 = arith.addf %377, %381 : vector<1x16x16xf32>
    %c0_189 = arith.constant 0 : index
    %c0_190 = arith.constant 0 : index
    %c6_191 = arith.constant 6 : index
    %c0_192 = arith.constant 0 : index
    %383 = vector.load %arg6[%c0_189, %c0_190, %c6_191, %c0_192] : memref<2x1x22x22xf32, #tpu.memory_space<vmem>>, vector<1x1x16x22xf32>
    %384 = vector.shape_cast %383 : vector<1x1x16x22xf32> to vector<1x16x22xf32>
    %c42 = arith.constant 42 : index
    %385 = memref.load %arg4[%c42] : memref<98xf32, #tpu.memory_space<smem>>
    %386 = vector.extract_strided_slice %384 {offsets = [0, 0, 0], sizes = [1, 16, 16], strides = [1, 1, 1]} : vector<1x16x22xf32> to vector<1x16x16xf32>
    %387 = vector.broadcast %385 : f32 to vector<1x16x16xf32>
    %388 = arith.mulf %387, %386 : vector<1x16x16xf32>
    %389 = arith.addf %382, %388 : vector<1x16x16xf32>
    %c43 = arith.constant 43 : index
    %390 = memref.load %arg4[%c43] : memref<98xf32, #tpu.memory_space<smem>>
    %391 = vector.extract_strided_slice %384 {offsets = [0, 0, 1], sizes = [1, 16, 16], strides = [1, 1, 1]} : vector<1x16x22xf32> to vector<1x16x16xf32>
    %392 = vector.broadcast %390 : f32 to vector<1x16x16xf32>
    %393 = arith.mulf %392, %391 : vector<1x16x16xf32>
    %394 = arith.addf %389, %393 : vector<1x16x16xf32>
    %c44 = arith.constant 44 : index
    %395 = memref.load %arg4[%c44] : memref<98xf32, #tpu.memory_space<smem>>
    %396 = vector.extract_strided_slice %384 {offsets = [0, 0, 2], sizes = [1, 16, 16], strides = [1, 1, 1]} : vector<1x16x22xf32> to vector<1x16x16xf32>
    %397 = vector.broadcast %395 : f32 to vector<1x16x16xf32>
    %398 = arith.mulf %397, %396 : vector<1x16x16xf32>
    %399 = arith.addf %394, %398 : vector<1x16x16xf32>
    %c45 = arith.constant 45 : index
    %400 = memref.load %arg4[%c45] : memref<98xf32, #tpu.memory_space<smem>>
    %401 = vector.extract_strided_slice %384 {offsets = [0, 0, 3], sizes = [1, 16, 16], strides = [1, 1, 1]} : vector<1x16x22xf32> to vector<1x16x16xf32>
    %402 = vector.broadcast %400 : f32 to vector<1x16x16xf32>
    %403 = arith.mulf %402, %401 : vector<1x16x16xf32>
    %404 = arith.addf %399, %403 : vector<1x16x16xf32>
    %c46 = arith.constant 46 : index
    %405 = memref.load %arg4[%c46] : memref<98xf32, #tpu.memory_space<smem>>
    %406 = vector.extract_strided_slice %384 {offsets = [0, 0, 4], sizes = [1, 16, 16], strides = [1, 1, 1]} : vector<1x16x22xf32> to vector<1x16x16xf32>
    %407 = vector.broadcast %405 : f32 to vector<1x16x16xf32>
    %408 = arith.mulf %407, %406 : vector<1x16x16xf32>
    %409 = arith.addf %404, %408 : vector<1x16x16xf32>
    %c47 = arith.constant 47 : index
    %410 = memref.load %arg4[%c47] : memref<98xf32, #tpu.memory_space<smem>>
    %411 = vector.extract_strided_slice %384 {offsets = [0, 0, 5], sizes = [1, 16, 16], strides = [1, 1, 1]} : vector<1x16x22xf32> to vector<1x16x16xf32>
    %412 = vector.broadcast %410 : f32 to vector<1x16x16xf32>
    %413 = arith.mulf %412, %411 : vector<1x16x16xf32>
    %414 = arith.addf %409, %413 : vector<1x16x16xf32>
    %c48 = arith.constant 48 : index
    %415 = memref.load %arg4[%c48] : memref<98xf32, #tpu.memory_space<smem>>
    %416 = vector.extract_strided_slice %384 {offsets = [0, 0, 6], sizes = [1, 16, 16], strides = [1, 1, 1]} : vector<1x16x22xf32> to vector<1x16x16xf32>
    %417 = vector.broadcast %415 : f32 to vector<1x16x16xf32>
    %418 = arith.mulf %417, %416 : vector<1x16x16xf32>
    %419 = arith.addf %414, %418 : vector<1x16x16xf32>
    %c1_193 = arith.constant 1 : index
    %c0_194 = arith.constant 0 : index
    %c0_195 = arith.constant 0 : index
    %c0_196 = arith.constant 0 : index
    %420 = vector.load %arg6[%c1_193, %c0_194, %c0_195, %c0_196] : memref<2x1x22x22xf32, #tpu.memory_space<vmem>>, vector<1x1x16x22xf32>
    %421 = vector.shape_cast %420 : vector<1x1x16x22xf32> to vector<1x16x22xf32>
    %c49 = arith.constant 49 : index
    %422 = memref.load %arg4[%c49] : memref<98xf32, #tpu.memory_space<smem>>
    %423 = vector.extract_strided_slice %421 {offsets = [0, 0, 0], sizes = [1, 16, 16], strides = [1, 1, 1]} : vector<1x16x22xf32> to vector<1x16x16xf32>
    %424 = vector.broadcast %422 : f32 to vector<1x16x16xf32>
    %425 = arith.mulf %424, %423 : vector<1x16x16xf32>
    %426 = arith.addf %419, %425 : vector<1x16x16xf32>
    %c50 = arith.constant 50 : index
    %427 = memref.load %arg4[%c50] : memref<98xf32, #tpu.memory_space<smem>>
    %428 = vector.extract_strided_slice %421 {offsets = [0, 0, 1], sizes = [1, 16, 16], strides = [1, 1, 1]} : vector<1x16x22xf32> to vector<1x16x16xf32>
    %429 = vector.broadcast %427 : f32 to vector<1x16x16xf32>
    %430 = arith.mulf %429, %428 : vector<1x16x16xf32>
    %431 = arith.addf %426, %430 : vector<1x16x16xf32>
    %c51 = arith.constant 51 : index
    %432 = memref.load %arg4[%c51] : memref<98xf32, #tpu.memory_space<smem>>
    %433 = vector.extract_strided_slice %421 {offsets = [0, 0, 2], sizes = [1, 16, 16], strides = [1, 1, 1]} : vector<1x16x22xf32> to vector<1x16x16xf32>
    %434 = vector.broadcast %432 : f32 to vector<1x16x16xf32>
    %435 = arith.mulf %434, %433 : vector<1x16x16xf32>
    %436 = arith.addf %431, %435 : vector<1x16x16xf32>
    %c52 = arith.constant 52 : index
    %437 = memref.load %arg4[%c52] : memref<98xf32, #tpu.memory_space<smem>>
    %438 = vector.extract_strided_slice %421 {offsets = [0, 0, 3], sizes = [1, 16, 16], strides = [1, 1, 1]} : vector<1x16x22xf32> to vector<1x16x16xf32>
    %439 = vector.broadcast %437 : f32 to vector<1x16x16xf32>
    %440 = arith.mulf %439, %438 : vector<1x16x16xf32>
    %441 = arith.addf %436, %440 : vector<1x16x16xf32>
    %c53 = arith.constant 53 : index
    %442 = memref.load %arg4[%c53] : memref<98xf32, #tpu.memory_space<smem>>
    %443 = vector.extract_strided_slice %421 {offsets = [0, 0, 4], sizes = [1, 16, 16], strides = [1, 1, 1]} : vector<1x16x22xf32> to vector<1x16x16xf32>
    %444 = vector.broadcast %442 : f32 to vector<1x16x16xf32>
    %445 = arith.mulf %444, %443 : vector<1x16x16xf32>
    %446 = arith.addf %441, %445 : vector<1x16x16xf32>
    %c54 = arith.constant 54 : index
    %447 = memref.load %arg4[%c54] : memref<98xf32, #tpu.memory_space<smem>>
    %448 = vector.extract_strided_slice %421 {offsets = [0, 0, 5], sizes = [1, 16, 16], strides = [1, 1, 1]} : vector<1x16x22xf32> to vector<1x16x16xf32>
    %449 = vector.broadcast %447 : f32 to vector<1x16x16xf32>
    %450 = arith.mulf %449, %448 : vector<1x16x16xf32>
    %451 = arith.addf %446, %450 : vector<1x16x16xf32>
    %c55 = arith.constant 55 : index
    %452 = memref.load %arg4[%c55] : memref<98xf32, #tpu.memory_space<smem>>
    %453 = vector.extract_strided_slice %421 {offsets = [0, 0, 6], sizes = [1, 16, 16], strides = [1, 1, 1]} : vector<1x16x22xf32> to vector<1x16x16xf32>
    %454 = vector.broadcast %452 : f32 to vector<1x16x16xf32>
    %455 = arith.mulf %454, %453 : vector<1x16x16xf32>
    %456 = arith.addf %451, %455 : vector<1x16x16xf32>
    %c1_197 = arith.constant 1 : index
    %c0_198 = arith.constant 0 : index
    %c1_199 = arith.constant 1 : index
    %c0_200 = arith.constant 0 : index
    %457 = vector.load %arg6[%c1_197, %c0_198, %c1_199, %c0_200] : memref<2x1x22x22xf32, #tpu.memory_space<vmem>>, vector<1x1x16x22xf32>
    %458 = vector.shape_cast %457 : vector<1x1x16x22xf32> to vector<1x16x22xf32>
    %c56 = arith.constant 56 : index
    %459 = memref.load %arg4[%c56] : memref<98xf32, #tpu.memory_space<smem>>
    %460 = vector.extract_strided_slice %458 {offsets = [0, 0, 0], sizes = [1, 16, 16], strides = [1, 1, 1]} : vector<1x16x22xf32> to vector<1x16x16xf32>
    %461 = vector.broadcast %459 : f32 to vector<1x16x16xf32>
    %462 = arith.mulf %461, %460 : vector<1x16x16xf32>
    %463 = arith.addf %456, %462 : vector<1x16x16xf32>
    %c57 = arith.constant 57 : index
    %464 = memref.load %arg4[%c57] : memref<98xf32, #tpu.memory_space<smem>>
    %465 = vector.extract_strided_slice %458 {offsets = [0, 0, 1], sizes = [1, 16, 16], strides = [1, 1, 1]} : vector<1x16x22xf32> to vector<1x16x16xf32>
    %466 = vector.broadcast %464 : f32 to vector<1x16x16xf32>
    %467 = arith.mulf %466, %465 : vector<1x16x16xf32>
    %468 = arith.addf %463, %467 : vector<1x16x16xf32>
    %c58 = arith.constant 58 : index
    %469 = memref.load %arg4[%c58] : memref<98xf32, #tpu.memory_space<smem>>
    %470 = vector.extract_strided_slice %458 {offsets = [0, 0, 2], sizes = [1, 16, 16], strides = [1, 1, 1]} : vector<1x16x22xf32> to vector<1x16x16xf32>
    %471 = vector.broadcast %469 : f32 to vector<1x16x16xf32>
    %472 = arith.mulf %471, %470 : vector<1x16x16xf32>
    %473 = arith.addf %468, %472 : vector<1x16x16xf32>
    %c59 = arith.constant 59 : index
    %474 = memref.load %arg4[%c59] : memref<98xf32, #tpu.memory_space<smem>>
    %475 = vector.extract_strided_slice %458 {offsets = [0, 0, 3], sizes = [1, 16, 16], strides = [1, 1, 1]} : vector<1x16x22xf32> to vector<1x16x16xf32>
    %476 = vector.broadcast %474 : f32 to vector<1x16x16xf32>
    %477 = arith.mulf %476, %475 : vector<1x16x16xf32>
    %478 = arith.addf %473, %477 : vector<1x16x16xf32>
    %c60 = arith.constant 60 : index
    %479 = memref.load %arg4[%c60] : memref<98xf32, #tpu.memory_space<smem>>
    %480 = vector.extract_strided_slice %458 {offsets = [0, 0, 4], sizes = [1, 16, 16], strides = [1, 1, 1]} : vector<1x16x22xf32> to vector<1x16x16xf32>
    %481 = vector.broadcast %479 : f32 to vector<1x16x16xf32>
    %482 = arith.mulf %481, %480 : vector<1x16x16xf32>
    %483 = arith.addf %478, %482 : vector<1x16x16xf32>
    %c61 = arith.constant 61 : index
    %484 = memref.load %arg4[%c61] : memref<98xf32, #tpu.memory_space<smem>>
    %485 = vector.extract_strided_slice %458 {offsets = [0, 0, 5], sizes = [1, 16, 16], strides = [1, 1, 1]} : vector<1x16x22xf32> to vector<1x16x16xf32>
    %486 = vector.broadcast %484 : f32 to vector<1x16x16xf32>
    %487 = arith.mulf %486, %485 : vector<1x16x16xf32>
    %488 = arith.addf %483, %487 : vector<1x16x16xf32>
    %c62 = arith.constant 62 : index
    %489 = memref.load %arg4[%c62] : memref<98xf32, #tpu.memory_space<smem>>
    %490 = vector.extract_strided_slice %458 {offsets = [0, 0, 6], sizes = [1, 16, 16], strides = [1, 1, 1]} : vector<1x16x22xf32> to vector<1x16x16xf32>
    %491 = vector.broadcast %489 : f32 to vector<1x16x16xf32>
    %492 = arith.mulf %491, %490 : vector<1x16x16xf32>
    %493 = arith.addf %488, %492 : vector<1x16x16xf32>
    %c1_201 = arith.constant 1 : index
    %c0_202 = arith.constant 0 : index
    %c2_203 = arith.constant 2 : index
    %c0_204 = arith.constant 0 : index
    %494 = vector.load %arg6[%c1_201, %c0_202, %c2_203, %c0_204] : memref<2x1x22x22xf32, #tpu.memory_space<vmem>>, vector<1x1x16x22xf32>
    %495 = vector.shape_cast %494 : vector<1x1x16x22xf32> to vector<1x16x22xf32>
    %c63 = arith.constant 63 : index
    %496 = memref.load %arg4[%c63] : memref<98xf32, #tpu.memory_space<smem>>
    %497 = vector.extract_strided_slice %495 {offsets = [0, 0, 0], sizes = [1, 16, 16], strides = [1, 1, 1]} : vector<1x16x22xf32> to vector<1x16x16xf32>
    %498 = vector.broadcast %496 : f32 to vector<1x16x16xf32>
    %499 = arith.mulf %498, %497 : vector<1x16x16xf32>
    %500 = arith.addf %493, %499 : vector<1x16x16xf32>
    %c64 = arith.constant 64 : index
    %501 = memref.load %arg4[%c64] : memref<98xf32, #tpu.memory_space<smem>>
    %502 = vector.extract_strided_slice %495 {offsets = [0, 0, 1], sizes = [1, 16, 16], strides = [1, 1, 1]} : vector<1x16x22xf32> to vector<1x16x16xf32>
    %503 = vector.broadcast %501 : f32 to vector<1x16x16xf32>
    %504 = arith.mulf %503, %502 : vector<1x16x16xf32>
    %505 = arith.addf %500, %504 : vector<1x16x16xf32>
    %c65 = arith.constant 65 : index
    %506 = memref.load %arg4[%c65] : memref<98xf32, #tpu.memory_space<smem>>
    %507 = vector.extract_strided_slice %495 {offsets = [0, 0, 2], sizes = [1, 16, 16], strides = [1, 1, 1]} : vector<1x16x22xf32> to vector<1x16x16xf32>
    %508 = vector.broadcast %506 : f32 to vector<1x16x16xf32>
    %509 = arith.mulf %508, %507 : vector<1x16x16xf32>
    %510 = arith.addf %505, %509 : vector<1x16x16xf32>
    %c66 = arith.constant 66 : index
    %511 = memref.load %arg4[%c66] : memref<98xf32, #tpu.memory_space<smem>>
    %512 = vector.extract_strided_slice %495 {offsets = [0, 0, 3], sizes = [1, 16, 16], strides = [1, 1, 1]} : vector<1x16x22xf32> to vector<1x16x16xf32>
    %513 = vector.broadcast %511 : f32 to vector<1x16x16xf32>
    %514 = arith.mulf %513, %512 : vector<1x16x16xf32>
    %515 = arith.addf %510, %514 : vector<1x16x16xf32>
    %c67 = arith.constant 67 : index
    %516 = memref.load %arg4[%c67] : memref<98xf32, #tpu.memory_space<smem>>
    %517 = vector.extract_strided_slice %495 {offsets = [0, 0, 4], sizes = [1, 16, 16], strides = [1, 1, 1]} : vector<1x16x22xf32> to vector<1x16x16xf32>
    %518 = vector.broadcast %516 : f32 to vector<1x16x16xf32>
    %519 = arith.mulf %518, %517 : vector<1x16x16xf32>
    %520 = arith.addf %515, %519 : vector<1x16x16xf32>
    %c68 = arith.constant 68 : index
    %521 = memref.load %arg4[%c68] : memref<98xf32, #tpu.memory_space<smem>>
    %522 = vector.extract_strided_slice %495 {offsets = [0, 0, 5], sizes = [1, 16, 16], strides = [1, 1, 1]} : vector<1x16x22xf32> to vector<1x16x16xf32>
    %523 = vector.broadcast %521 : f32 to vector<1x16x16xf32>
    %524 = arith.mulf %523, %522 : vector<1x16x16xf32>
    %525 = arith.addf %520, %524 : vector<1x16x16xf32>
    %c69 = arith.constant 69 : index
    %526 = memref.load %arg4[%c69] : memref<98xf32, #tpu.memory_space<smem>>
    %527 = vector.extract_strided_slice %495 {offsets = [0, 0, 6], sizes = [1, 16, 16], strides = [1, 1, 1]} : vector<1x16x22xf32> to vector<1x16x16xf32>
    %528 = vector.broadcast %526 : f32 to vector<1x16x16xf32>
    %529 = arith.mulf %528, %527 : vector<1x16x16xf32>
    %530 = arith.addf %525, %529 : vector<1x16x16xf32>
    %c1_205 = arith.constant 1 : index
    %c0_206 = arith.constant 0 : index
    %c3_207 = arith.constant 3 : index
    %c0_208 = arith.constant 0 : index
    %531 = vector.load %arg6[%c1_205, %c0_206, %c3_207, %c0_208] : memref<2x1x22x22xf32, #tpu.memory_space<vmem>>, vector<1x1x16x22xf32>
    %532 = vector.shape_cast %531 : vector<1x1x16x22xf32> to vector<1x16x22xf32>
    %c70 = arith.constant 70 : index
    %533 = memref.load %arg4[%c70] : memref<98xf32, #tpu.memory_space<smem>>
    %534 = vector.extract_strided_slice %532 {offsets = [0, 0, 0], sizes = [1, 16, 16], strides = [1, 1, 1]} : vector<1x16x22xf32> to vector<1x16x16xf32>
    %535 = vector.broadcast %533 : f32 to vector<1x16x16xf32>
    %536 = arith.mulf %535, %534 : vector<1x16x16xf32>
    %537 = arith.addf %530, %536 : vector<1x16x16xf32>
    %c71 = arith.constant 71 : index
    %538 = memref.load %arg4[%c71] : memref<98xf32, #tpu.memory_space<smem>>
    %539 = vector.extract_strided_slice %532 {offsets = [0, 0, 1], sizes = [1, 16, 16], strides = [1, 1, 1]} : vector<1x16x22xf32> to vector<1x16x16xf32>
    %540 = vector.broadcast %538 : f32 to vector<1x16x16xf32>
    %541 = arith.mulf %540, %539 : vector<1x16x16xf32>
    %542 = arith.addf %537, %541 : vector<1x16x16xf32>
    %c72 = arith.constant 72 : index
    %543 = memref.load %arg4[%c72] : memref<98xf32, #tpu.memory_space<smem>>
    %544 = vector.extract_strided_slice %532 {offsets = [0, 0, 2], sizes = [1, 16, 16], strides = [1, 1, 1]} : vector<1x16x22xf32> to vector<1x16x16xf32>
    %545 = vector.broadcast %543 : f32 to vector<1x16x16xf32>
    %546 = arith.mulf %545, %544 : vector<1x16x16xf32>
    %547 = arith.addf %542, %546 : vector<1x16x16xf32>
    %c73 = arith.constant 73 : index
    %548 = memref.load %arg4[%c73] : memref<98xf32, #tpu.memory_space<smem>>
    %549 = vector.extract_strided_slice %532 {offsets = [0, 0, 3], sizes = [1, 16, 16], strides = [1, 1, 1]} : vector<1x16x22xf32> to vector<1x16x16xf32>
    %550 = vector.broadcast %548 : f32 to vector<1x16x16xf32>
    %551 = arith.mulf %550, %549 : vector<1x16x16xf32>
    %552 = arith.addf %547, %551 : vector<1x16x16xf32>
    %c74 = arith.constant 74 : index
    %553 = memref.load %arg4[%c74] : memref<98xf32, #tpu.memory_space<smem>>
    %554 = vector.extract_strided_slice %532 {offsets = [0, 0, 4], sizes = [1, 16, 16], strides = [1, 1, 1]} : vector<1x16x22xf32> to vector<1x16x16xf32>
    %555 = vector.broadcast %553 : f32 to vector<1x16x16xf32>
    %556 = arith.mulf %555, %554 : vector<1x16x16xf32>
    %557 = arith.addf %552, %556 : vector<1x16x16xf32>
    %c75 = arith.constant 75 : index
    %558 = memref.load %arg4[%c75] : memref<98xf32, #tpu.memory_space<smem>>
    %559 = vector.extract_strided_slice %532 {offsets = [0, 0, 5], sizes = [1, 16, 16], strides = [1, 1, 1]} : vector<1x16x22xf32> to vector<1x16x16xf32>
    %560 = vector.broadcast %558 : f32 to vector<1x16x16xf32>
    %561 = arith.mulf %560, %559 : vector<1x16x16xf32>
    %562 = arith.addf %557, %561 : vector<1x16x16xf32>
    %c76 = arith.constant 76 : index
    %563 = memref.load %arg4[%c76] : memref<98xf32, #tpu.memory_space<smem>>
    %564 = vector.extract_strided_slice %532 {offsets = [0, 0, 6], sizes = [1, 16, 16], strides = [1, 1, 1]} : vector<1x16x22xf32> to vector<1x16x16xf32>
    %565 = vector.broadcast %563 : f32 to vector<1x16x16xf32>
    %566 = arith.mulf %565, %564 : vector<1x16x16xf32>
    %567 = arith.addf %562, %566 : vector<1x16x16xf32>
    %c1_209 = arith.constant 1 : index
    %c0_210 = arith.constant 0 : index
    %c4_211 = arith.constant 4 : index
    %c0_212 = arith.constant 0 : index
    %568 = vector.load %arg6[%c1_209, %c0_210, %c4_211, %c0_212] : memref<2x1x22x22xf32, #tpu.memory_space<vmem>>, vector<1x1x16x22xf32>
    %569 = vector.shape_cast %568 : vector<1x1x16x22xf32> to vector<1x16x22xf32>
    %c77 = arith.constant 77 : index
    %570 = memref.load %arg4[%c77] : memref<98xf32, #tpu.memory_space<smem>>
    %571 = vector.extract_strided_slice %569 {offsets = [0, 0, 0], sizes = [1, 16, 16], strides = [1, 1, 1]} : vector<1x16x22xf32> to vector<1x16x16xf32>
    %572 = vector.broadcast %570 : f32 to vector<1x16x16xf32>
    %573 = arith.mulf %572, %571 : vector<1x16x16xf32>
    %574 = arith.addf %567, %573 : vector<1x16x16xf32>
    %c78 = arith.constant 78 : index
    %575 = memref.load %arg4[%c78] : memref<98xf32, #tpu.memory_space<smem>>
    %576 = vector.extract_strided_slice %569 {offsets = [0, 0, 1], sizes = [1, 16, 16], strides = [1, 1, 1]} : vector<1x16x22xf32> to vector<1x16x16xf32>
    %577 = vector.broadcast %575 : f32 to vector<1x16x16xf32>
    %578 = arith.mulf %577, %576 : vector<1x16x16xf32>
    %579 = arith.addf %574, %578 : vector<1x16x16xf32>
    %c79 = arith.constant 79 : index
    %580 = memref.load %arg4[%c79] : memref<98xf32, #tpu.memory_space<smem>>
    %581 = vector.extract_strided_slice %569 {offsets = [0, 0, 2], sizes = [1, 16, 16], strides = [1, 1, 1]} : vector<1x16x22xf32> to vector<1x16x16xf32>
    %582 = vector.broadcast %580 : f32 to vector<1x16x16xf32>
    %583 = arith.mulf %582, %581 : vector<1x16x16xf32>
    %584 = arith.addf %579, %583 : vector<1x16x16xf32>
    %c80 = arith.constant 80 : index
    %585 = memref.load %arg4[%c80] : memref<98xf32, #tpu.memory_space<smem>>
    %586 = vector.extract_strided_slice %569 {offsets = [0, 0, 3], sizes = [1, 16, 16], strides = [1, 1, 1]} : vector<1x16x22xf32> to vector<1x16x16xf32>
    %587 = vector.broadcast %585 : f32 to vector<1x16x16xf32>
    %588 = arith.mulf %587, %586 : vector<1x16x16xf32>
    %589 = arith.addf %584, %588 : vector<1x16x16xf32>
    %c81 = arith.constant 81 : index
    %590 = memref.load %arg4[%c81] : memref<98xf32, #tpu.memory_space<smem>>
    %591 = vector.extract_strided_slice %569 {offsets = [0, 0, 4], sizes = [1, 16, 16], strides = [1, 1, 1]} : vector<1x16x22xf32> to vector<1x16x16xf32>
    %592 = vector.broadcast %590 : f32 to vector<1x16x16xf32>
    %593 = arith.mulf %592, %591 : vector<1x16x16xf32>
    %594 = arith.addf %589, %593 : vector<1x16x16xf32>
    %c82 = arith.constant 82 : index
    %595 = memref.load %arg4[%c82] : memref<98xf32, #tpu.memory_space<smem>>
    %596 = vector.extract_strided_slice %569 {offsets = [0, 0, 5], sizes = [1, 16, 16], strides = [1, 1, 1]} : vector<1x16x22xf32> to vector<1x16x16xf32>
    %597 = vector.broadcast %595 : f32 to vector<1x16x16xf32>
    %598 = arith.mulf %597, %596 : vector<1x16x16xf32>
    %599 = arith.addf %594, %598 : vector<1x16x16xf32>
    %c83 = arith.constant 83 : index
    %600 = memref.load %arg4[%c83] : memref<98xf32, #tpu.memory_space<smem>>
    %601 = vector.extract_strided_slice %569 {offsets = [0, 0, 6], sizes = [1, 16, 16], strides = [1, 1, 1]} : vector<1x16x22xf32> to vector<1x16x16xf32>
    %602 = vector.broadcast %600 : f32 to vector<1x16x16xf32>
    %603 = arith.mulf %602, %601 : vector<1x16x16xf32>
    %604 = arith.addf %599, %603 : vector<1x16x16xf32>
    %c1_213 = arith.constant 1 : index
    %c0_214 = arith.constant 0 : index
    %c5_215 = arith.constant 5 : index
    %c0_216 = arith.constant 0 : index
    %605 = vector.load %arg6[%c1_213, %c0_214, %c5_215, %c0_216] : memref<2x1x22x22xf32, #tpu.memory_space<vmem>>, vector<1x1x16x22xf32>
    %606 = vector.shape_cast %605 : vector<1x1x16x22xf32> to vector<1x16x22xf32>
    %c84 = arith.constant 84 : index
    %607 = memref.load %arg4[%c84] : memref<98xf32, #tpu.memory_space<smem>>
    %608 = vector.extract_strided_slice %606 {offsets = [0, 0, 0], sizes = [1, 16, 16], strides = [1, 1, 1]} : vector<1x16x22xf32> to vector<1x16x16xf32>
    %609 = vector.broadcast %607 : f32 to vector<1x16x16xf32>
    %610 = arith.mulf %609, %608 : vector<1x16x16xf32>
    %611 = arith.addf %604, %610 : vector<1x16x16xf32>
    %c85 = arith.constant 85 : index
    %612 = memref.load %arg4[%c85] : memref<98xf32, #tpu.memory_space<smem>>
    %613 = vector.extract_strided_slice %606 {offsets = [0, 0, 1], sizes = [1, 16, 16], strides = [1, 1, 1]} : vector<1x16x22xf32> to vector<1x16x16xf32>
    %614 = vector.broadcast %612 : f32 to vector<1x16x16xf32>
    %615 = arith.mulf %614, %613 : vector<1x16x16xf32>
    %616 = arith.addf %611, %615 : vector<1x16x16xf32>
    %c86 = arith.constant 86 : index
    %617 = memref.load %arg4[%c86] : memref<98xf32, #tpu.memory_space<smem>>
    %618 = vector.extract_strided_slice %606 {offsets = [0, 0, 2], sizes = [1, 16, 16], strides = [1, 1, 1]} : vector<1x16x22xf32> to vector<1x16x16xf32>
    %619 = vector.broadcast %617 : f32 to vector<1x16x16xf32>
    %620 = arith.mulf %619, %618 : vector<1x16x16xf32>
    %621 = arith.addf %616, %620 : vector<1x16x16xf32>
    %c87 = arith.constant 87 : index
    %622 = memref.load %arg4[%c87] : memref<98xf32, #tpu.memory_space<smem>>
    %623 = vector.extract_strided_slice %606 {offsets = [0, 0, 3], sizes = [1, 16, 16], strides = [1, 1, 1]} : vector<1x16x22xf32> to vector<1x16x16xf32>
    %624 = vector.broadcast %622 : f32 to vector<1x16x16xf32>
    %625 = arith.mulf %624, %623 : vector<1x16x16xf32>
    %626 = arith.addf %621, %625 : vector<1x16x16xf32>
    %c88 = arith.constant 88 : index
    %627 = memref.load %arg4[%c88] : memref<98xf32, #tpu.memory_space<smem>>
    %628 = vector.extract_strided_slice %606 {offsets = [0, 0, 4], sizes = [1, 16, 16], strides = [1, 1, 1]} : vector<1x16x22xf32> to vector<1x16x16xf32>
    %629 = vector.broadcast %627 : f32 to vector<1x16x16xf32>
    %630 = arith.mulf %629, %628 : vector<1x16x16xf32>
    %631 = arith.addf %626, %630 : vector<1x16x16xf32>
    %c89 = arith.constant 89 : index
    %632 = memref.load %arg4[%c89] : memref<98xf32, #tpu.memory_space<smem>>
    %633 = vector.extract_strided_slice %606 {offsets = [0, 0, 5], sizes = [1, 16, 16], strides = [1, 1, 1]} : vector<1x16x22xf32> to vector<1x16x16xf32>
    %634 = vector.broadcast %632 : f32 to vector<1x16x16xf32>
    %635 = arith.mulf %634, %633 : vector<1x16x16xf32>
    %636 = arith.addf %631, %635 : vector<1x16x16xf32>
    %c90 = arith.constant 90 : index
    %637 = memref.load %arg4[%c90] : memref<98xf32, #tpu.memory_space<smem>>
    %638 = vector.extract_strided_slice %606 {offsets = [0, 0, 6], sizes = [1, 16, 16], strides = [1, 1, 1]} : vector<1x16x22xf32> to vector<1x16x16xf32>
    %639 = vector.broadcast %637 : f32 to vector<1x16x16xf32>
    %640 = arith.mulf %639, %638 : vector<1x16x16xf32>
    %641 = arith.addf %636, %640 : vector<1x16x16xf32>
    %c1_217 = arith.constant 1 : index
    %c0_218 = arith.constant 0 : index
    %c6_219 = arith.constant 6 : index
    %c0_220 = arith.constant 0 : index
    %642 = vector.load %arg6[%c1_217, %c0_218, %c6_219, %c0_220] : memref<2x1x22x22xf32, #tpu.memory_space<vmem>>, vector<1x1x16x22xf32>
    %643 = vector.shape_cast %642 : vector<1x1x16x22xf32> to vector<1x16x22xf32>
    %c91 = arith.constant 91 : index
    %644 = memref.load %arg4[%c91] : memref<98xf32, #tpu.memory_space<smem>>
    %645 = vector.extract_strided_slice %643 {offsets = [0, 0, 0], sizes = [1, 16, 16], strides = [1, 1, 1]} : vector<1x16x22xf32> to vector<1x16x16xf32>
    %646 = vector.broadcast %644 : f32 to vector<1x16x16xf32>
    %647 = arith.mulf %646, %645 : vector<1x16x16xf32>
    %648 = arith.addf %641, %647 : vector<1x16x16xf32>
    %c92 = arith.constant 92 : index
    %649 = memref.load %arg4[%c92] : memref<98xf32, #tpu.memory_space<smem>>
    %650 = vector.extract_strided_slice %643 {offsets = [0, 0, 1], sizes = [1, 16, 16], strides = [1, 1, 1]} : vector<1x16x22xf32> to vector<1x16x16xf32>
    %651 = vector.broadcast %649 : f32 to vector<1x16x16xf32>
    %652 = arith.mulf %651, %650 : vector<1x16x16xf32>
    %653 = arith.addf %648, %652 : vector<1x16x16xf32>
    %c93 = arith.constant 93 : index
    %654 = memref.load %arg4[%c93] : memref<98xf32, #tpu.memory_space<smem>>
    %655 = vector.extract_strided_slice %643 {offsets = [0, 0, 2], sizes = [1, 16, 16], strides = [1, 1, 1]} : vector<1x16x22xf32> to vector<1x16x16xf32>
    %656 = vector.broadcast %654 : f32 to vector<1x16x16xf32>
    %657 = arith.mulf %656, %655 : vector<1x16x16xf32>
    %658 = arith.addf %653, %657 : vector<1x16x16xf32>
    %c94 = arith.constant 94 : index
    %659 = memref.load %arg4[%c94] : memref<98xf32, #tpu.memory_space<smem>>
    %660 = vector.extract_strided_slice %643 {offsets = [0, 0, 3], sizes = [1, 16, 16], strides = [1, 1, 1]} : vector<1x16x22xf32> to vector<1x16x16xf32>
    %661 = vector.broadcast %659 : f32 to vector<1x16x16xf32>
    %662 = arith.mulf %661, %660 : vector<1x16x16xf32>
    %663 = arith.addf %658, %662 : vector<1x16x16xf32>
    %c95 = arith.constant 95 : index
    %664 = memref.load %arg4[%c95] : memref<98xf32, #tpu.memory_space<smem>>
    %665 = vector.extract_strided_slice %643 {offsets = [0, 0, 4], sizes = [1, 16, 16], strides = [1, 1, 1]} : vector<1x16x22xf32> to vector<1x16x16xf32>
    %666 = vector.broadcast %664 : f32 to vector<1x16x16xf32>
    %667 = arith.mulf %666, %665 : vector<1x16x16xf32>
    %668 = arith.addf %663, %667 : vector<1x16x16xf32>
    %c96 = arith.constant 96 : index
    %669 = memref.load %arg4[%c96] : memref<98xf32, #tpu.memory_space<smem>>
    %670 = vector.extract_strided_slice %643 {offsets = [0, 0, 5], sizes = [1, 16, 16], strides = [1, 1, 1]} : vector<1x16x22xf32> to vector<1x16x16xf32>
    %671 = vector.broadcast %669 : f32 to vector<1x16x16xf32>
    %672 = arith.mulf %671, %670 : vector<1x16x16xf32>
    %673 = arith.addf %668, %672 : vector<1x16x16xf32>
    %c97 = arith.constant 97 : index
    %674 = memref.load %arg4[%c97] : memref<98xf32, #tpu.memory_space<smem>>
    %675 = vector.extract_strided_slice %643 {offsets = [0, 0, 6], sizes = [1, 16, 16], strides = [1, 1, 1]} : vector<1x16x22xf32> to vector<1x16x16xf32>
    %676 = vector.broadcast %674 : f32 to vector<1x16x16xf32>
    %677 = arith.mulf %676, %675 : vector<1x16x16xf32>
    %678 = arith.addf %673, %677 : vector<1x16x16xf32>
    %679 = arith.negf %678 : vector<1x16x16xf32>
    %680 = math.exp %679 : vector<1x16x16xf32>
    %cst_221 = arith.constant 1.000000e+00 : f32
    %681 = vector.broadcast %cst_221 : f32 to vector<1x16x16xf32>
    %682 = arith.addf %681, %680 : vector<1x16x16xf32>
    %683 = arith.divf %681, %682 : vector<1x16x16xf32>
    %684 = vector.extract_strided_slice %683 {offsets = [0, 0, 0], sizes = [1, 1, 16], strides = [1, 1, 1]} : vector<1x16x16xf32> to vector<1x1x16xf32>
    %c0_222 = arith.constant 0 : index
    %c0_223 = arith.constant 0 : index
    %c0_224 = arith.constant 0 : index
    %685 = vector.load %arg7[%c0_222, %c0_223, %c0_224] : memref<1x1x256xf32, #tpu.memory_space<vmem>>, vector<1x1x16xf32>
    tpu.vector_store %arg7[%c0_222, %c0_223, %c0_224], %684 {strides = array<i32>} : memref<1x1x256xf32, #tpu.memory_space<vmem>>, vector<1x1x16xf32>,
    %686 = vector.extract_strided_slice %683 {offsets = [0, 1, 0], sizes = [1, 1, 16], strides = [1, 1, 1]} : vector<1x16x16xf32> to vector<1x1x16xf32>
    %c0_225 = arith.constant 0 : index
    %c0_226 = arith.constant 0 : index
    %c16_227 = arith.constant 16 : index
    %687 = vector.load %arg7[%c0_225, %c0_226, %c16_227] : memref<1x1x256xf32, #tpu.memory_space<vmem>>, vector<1x1x16xf32>
    tpu.vector_store %arg7[%c0_225, %c0_226, %c16_227], %686 {strides = array<i32>} : memref<1x1x256xf32, #tpu.memory_space<vmem>>, vector<1x1x16xf32>,
    %688 = vector.extract_strided_slice %683 {offsets = [0, 2, 0], sizes = [1, 1, 16], strides = [1, 1, 1]} : vector<1x16x16xf32> to vector<1x1x16xf32>
    %c0_228 = arith.constant 0 : index
    %c0_229 = arith.constant 0 : index
    %c32_230 = arith.constant 32 : index
    %689 = vector.load %arg7[%c0_228, %c0_229, %c32_230] : memref<1x1x256xf32, #tpu.memory_space<vmem>>, vector<1x1x16xf32>
    tpu.vector_store %arg7[%c0_228, %c0_229, %c32_230], %688 {strides = array<i32>} : memref<1x1x256xf32, #tpu.memory_space<vmem>>, vector<1x1x16xf32>,
    %690 = vector.extract_strided_slice %683 {offsets = [0, 3, 0], sizes = [1, 1, 16], strides = [1, 1, 1]} : vector<1x16x16xf32> to vector<1x1x16xf32>
    %c0_231 = arith.constant 0 : index
    %c0_232 = arith.constant 0 : index
    %c48_233 = arith.constant 48 : index
    %691 = vector.load %arg7[%c0_231, %c0_232, %c48_233] : memref<1x1x256xf32, #tpu.memory_space<vmem>>, vector<1x1x16xf32>
    tpu.vector_store %arg7[%c0_231, %c0_232, %c48_233], %690 {strides = array<i32>} : memref<1x1x256xf32, #tpu.memory_space<vmem>>, vector<1x1x16xf32>,
    %692 = vector.extract_strided_slice %683 {offsets = [0, 4, 0], sizes = [1, 1, 16], strides = [1, 1, 1]} : vector<1x16x16xf32> to vector<1x1x16xf32>
    %c0_234 = arith.constant 0 : index
    %c0_235 = arith.constant 0 : index
    %c64_236 = arith.constant 64 : index
    %693 = vector.load %arg7[%c0_234, %c0_235, %c64_236] : memref<1x1x256xf32, #tpu.memory_space<vmem>>, vector<1x1x16xf32>
    tpu.vector_store %arg7[%c0_234, %c0_235, %c64_236], %692 {strides = array<i32>} : memref<1x1x256xf32, #tpu.memory_space<vmem>>, vector<1x1x16xf32>,
    %694 = vector.extract_strided_slice %683 {offsets = [0, 5, 0], sizes = [1, 1, 16], strides = [1, 1, 1]} : vector<1x16x16xf32> to vector<1x1x16xf32>
    %c0_237 = arith.constant 0 : index
    %c0_238 = arith.constant 0 : index
    %c80_239 = arith.constant 80 : index
    %695 = vector.load %arg7[%c0_237, %c0_238, %c80_239] : memref<1x1x256xf32, #tpu.memory_space<vmem>>, vector<1x1x16xf32>
    tpu.vector_store %arg7[%c0_237, %c0_238, %c80_239], %694 {strides = array<i32>} : memref<1x1x256xf32, #tpu.memory_space<vmem>>, vector<1x1x16xf32>,
    %696 = vector.extract_strided_slice %683 {offsets = [0, 6, 0], sizes = [1, 1, 16], strides = [1, 1, 1]} : vector<1x16x16xf32> to vector<1x1x16xf32>
    %c0_240 = arith.constant 0 : index
    %c0_241 = arith.constant 0 : index
    %c96_242 = arith.constant 96 : index
    %697 = vector.load %arg7[%c0_240, %c0_241, %c96_242] : memref<1x1x256xf32, #tpu.memory_space<vmem>>, vector<1x1x16xf32>
    tpu.vector_store %arg7[%c0_240, %c0_241, %c96_242], %696 {strides = array<i32>} : memref<1x1x256xf32, #tpu.memory_space<vmem>>, vector<1x1x16xf32>,
    %698 = vector.extract_strided_slice %683 {offsets = [0, 7, 0], sizes = [1, 1, 16], strides = [1, 1, 1]} : vector<1x16x16xf32> to vector<1x1x16xf32>
    %c0_243 = arith.constant 0 : index
    %c0_244 = arith.constant 0 : index
    %c112 = arith.constant 112 : index
    %699 = vector.load %arg7[%c0_243, %c0_244, %c112] : memref<1x1x256xf32, #tpu.memory_space<vmem>>, vector<1x1x16xf32>
    tpu.vector_store %arg7[%c0_243, %c0_244, %c112], %698 {strides = array<i32>} : memref<1x1x256xf32, #tpu.memory_space<vmem>>, vector<1x1x16xf32>,
    %700 = vector.extract_strided_slice %683 {offsets = [0, 8, 0], sizes = [1, 1, 16], strides = [1, 1, 1]} : vector<1x16x16xf32> to vector<1x1x16xf32>
    %c0_245 = arith.constant 0 : index
    %c0_246 = arith.constant 0 : index
    %c128 = arith.constant 128 : index
    %701 = vector.load %arg7[%c0_245, %c0_246, %c128] : memref<1x1x256xf32, #tpu.memory_space<vmem>>, vector<1x1x16xf32>
    tpu.vector_store %arg7[%c0_245, %c0_246, %c128], %700 {strides = array<i32>} : memref<1x1x256xf32, #tpu.memory_space<vmem>>, vector<1x1x16xf32>,
    %702 = vector.extract_strided_slice %683 {offsets = [0, 9, 0], sizes = [1, 1, 16], strides = [1, 1, 1]} : vector<1x16x16xf32> to vector<1x1x16xf32>
    %c0_247 = arith.constant 0 : index
    %c0_248 = arith.constant 0 : index
    %c144 = arith.constant 144 : index
    %703 = vector.load %arg7[%c0_247, %c0_248, %c144] : memref<1x1x256xf32, #tpu.memory_space<vmem>>, vector<1x1x16xf32>
    tpu.vector_store %arg7[%c0_247, %c0_248, %c144], %702 {strides = array<i32>} : memref<1x1x256xf32, #tpu.memory_space<vmem>>, vector<1x1x16xf32>,
    %704 = vector.extract_strided_slice %683 {offsets = [0, 10, 0], sizes = [1, 1, 16], strides = [1, 1, 1]} : vector<1x16x16xf32> to vector<1x1x16xf32>
    %c0_249 = arith.constant 0 : index
    %c0_250 = arith.constant 0 : index
    %c160 = arith.constant 160 : index
    %705 = vector.load %arg7[%c0_249, %c0_250, %c160] : memref<1x1x256xf32, #tpu.memory_space<vmem>>, vector<1x1x16xf32>
    tpu.vector_store %arg7[%c0_249, %c0_250, %c160], %704 {strides = array<i32>} : memref<1x1x256xf32, #tpu.memory_space<vmem>>, vector<1x1x16xf32>,
    %706 = vector.extract_strided_slice %683 {offsets = [0, 11, 0], sizes = [1, 1, 16], strides = [1, 1, 1]} : vector<1x16x16xf32> to vector<1x1x16xf32>
    %c0_251 = arith.constant 0 : index
    %c0_252 = arith.constant 0 : index
    %c176 = arith.constant 176 : index
    %707 = vector.load %arg7[%c0_251, %c0_252, %c176] : memref<1x1x256xf32, #tpu.memory_space<vmem>>, vector<1x1x16xf32>
    tpu.vector_store %arg7[%c0_251, %c0_252, %c176], %706 {strides = array<i32>} : memref<1x1x256xf32, #tpu.memory_space<vmem>>, vector<1x1x16xf32>,
    %708 = vector.extract_strided_slice %683 {offsets = [0, 12, 0], sizes = [1, 1, 16], strides = [1, 1, 1]} : vector<1x16x16xf32> to vector<1x1x16xf32>
    %c0_253 = arith.constant 0 : index
    %c0_254 = arith.constant 0 : index
    %c192 = arith.constant 192 : index
    %709 = vector.load %arg7[%c0_253, %c0_254, %c192] : memref<1x1x256xf32, #tpu.memory_space<vmem>>, vector<1x1x16xf32>
    tpu.vector_store %arg7[%c0_253, %c0_254, %c192], %708 {strides = array<i32>} : memref<1x1x256xf32, #tpu.memory_space<vmem>>, vector<1x1x16xf32>,
    %710 = vector.extract_strided_slice %683 {offsets = [0, 13, 0], sizes = [1, 1, 16], strides = [1, 1, 1]} : vector<1x16x16xf32> to vector<1x1x16xf32>
    %c0_255 = arith.constant 0 : index
    %c0_256 = arith.constant 0 : index
    %c208 = arith.constant 208 : index
    %711 = vector.load %arg7[%c0_255, %c0_256, %c208] : memref<1x1x256xf32, #tpu.memory_space<vmem>>, vector<1x1x16xf32>
    tpu.vector_store %arg7[%c0_255, %c0_256, %c208], %710 {strides = array<i32>} : memref<1x1x256xf32, #tpu.memory_space<vmem>>, vector<1x1x16xf32>,
    %712 = vector.extract_strided_slice %683 {offsets = [0, 14, 0], sizes = [1, 1, 16], strides = [1, 1, 1]} : vector<1x16x16xf32> to vector<1x1x16xf32>
    %c0_257 = arith.constant 0 : index
    %c0_258 = arith.constant 0 : index
    %c224 = arith.constant 224 : index
    %713 = vector.load %arg7[%c0_257, %c0_258, %c224] : memref<1x1x256xf32, #tpu.memory_space<vmem>>, vector<1x1x16xf32>
    tpu.vector_store %arg7[%c0_257, %c0_258, %c224], %712 {strides = array<i32>} : memref<1x1x256xf32, #tpu.memory_space<vmem>>, vector<1x1x16xf32>,
    %714 = vector.extract_strided_slice %683 {offsets = [0, 15, 0], sizes = [1, 1, 16], strides = [1, 1, 1]} : vector<1x16x16xf32> to vector<1x1x16xf32>
    %c0_259 = arith.constant 0 : index
    %c0_260 = arith.constant 0 : index
    %c240 = arith.constant 240 : index
    %715 = vector.load %arg7[%c0_259, %c0_260, %c240] : memref<1x1x256xf32, #tpu.memory_space<vmem>>, vector<1x1x16xf32>
    tpu.vector_store %arg7[%c0_259, %c0_260, %c240], %714 {strides = array<i32>} : memref<1x1x256xf32, #tpu.memory_space<vmem>>, vector<1x1x16xf32>,
    %c0_261 = arith.constant 0 : index
    %c0_262 = arith.constant 0 : index
    %c0_263 = arith.constant 0 : index
    %716 = vector.load %arg7[%c0_261, %c0_262, %c0_263] : memref<1x1x256xf32, #tpu.memory_space<vmem>>, vector<1x1x256xf32>
    %717 = vector.broadcast %716 : vector<1x1x256xf32> to vector<1x16x256xf32>
    %718 = arith.mulf %19, %717 : vector<1x16x256xf32>
    %c0_264 = arith.constant 0 : index
    %c0_265 = arith.constant 0 : index
    %c0_266 = arith.constant 0 : index
    %719 = vector.load %arg5[%c0_264, %c0_265, %c0_266] : memref<1x16x256xf32, #tpu.memory_space<vmem>>, vector<1x16x256xf32>
    tpu.vector_store %arg5[%c0_264, %c0_265, %c0_266], %718 {strides = array<i32>} : memref<1x16x256xf32, #tpu.memory_space<vmem>>, vector<1x16x256xf32>,
    return
  }
  func.func @transform_0(%arg0: i32) -> (i32, i32, i32) {
    %c0_i32 = arith.constant 0 : i32
    %c0_i32_0 = arith.constant 0 : i32
    %c0_i32_1 = arith.constant 0 : i32
    return %arg0, %c0_i32, %c0_i32_0 : i32, i32, i32
  }
  func.func @transform_1(%arg0: i32) -> (i32, i32) {
    %c0_i32 = arith.constant 0 : i32
    %c0_i32_0 = arith.constant 0 : i32
    %c0_i32_1 = arith.constant 0 : i32
    return %c0_i32, %c0_i32_0 : i32, i32
  }
  func.func @transform_2(%arg0: i32) -> (i32, i32) {
    %c0_i32 = arith.constant 0 : i32
    %c0_i32_0 = arith.constant 0 : i32
    %c0_i32_1 = arith.constant 0 : i32
    return %c0_i32, %c0_i32_0 : i32, i32
  }
  func.func @transform_3(%arg0: i32) -> i32 {
    %c0_i32 = arith.constant 0 : i32
    %c0_i32_0 = arith.constant 0 : i32
    return %c0_i32 : i32
  }
  func.func @transform_4(%arg0: i32) -> (i32, i32, i32) {
    %c0_i32 = arith.constant 0 : i32
    %c0_i32_0 = arith.constant 0 : i32
    %c0_i32_1 = arith.constant 0 : i32
    return %arg0, %c0_i32, %c0_i32_0 : i32, i32, i32
  }
}

</mosaic_0001>

<bundles_post_ra>
// kernel: tpu_custom_call.1
= control target key start
LH: loop header
LB: loop body
LE: loop exit
PB: predicated region body
PF: predicated region fallthrough
CT: control target
= control target key end

     0   :  { %9 = vsyncpa [#allocation5], 0  ;;  %s3933_s0 = inlined_call_operand.hbm [shape: f32[2,16,256], index: 0, kind: input, shape index: {}]   ;;  %s3934_s1 = inlined_call_operand.vmem [shape: f32[16,2], index: 1, kind: input, shape index: {}]   ;;  %s3935_s2 = inlined_call_operand.vmem [shape: f32[2,16], index: 2, kind: input, shape index: {}]   ;;  %s3936_s3 = inlined_call_operand.vmem [shape: f32[98], index: 3, kind: input, shape index: {}]   ;;  %s3937_s4 = inlined_call_operand.hbm [shape: f32[2,16,256], index: 4, kind: output, shape index: {}]  }
   0x1   :  { %11 = vsyncpa [#allocation5 + $0x1], 0 }
   0x2   :  { %12 = vsyncpa [#allocation7], 0 }
   0x3   :  { %13 = vsyncpa [#allocation6], 0 }
   0x4   :  { %15 = vsyncpa [#allocation6 + $0x1], 0  ;;  %s2634_s15 = smov 0   ;;  %s2636_s16 = smov 0  }
   0x5   :  { %s2638_s17 = smov 0   ;;  %s2640_s18 = smov 0  }
   0x6 LB: > { %s2655_s19 = sadd.s32 4294967295, %s2576_s18   ;;  %s2217_s20 = sadd.s32 4294967294, %s2576_s18   ;;  %s2576_s18 = sphi %s2640_s18, %s4028_s18   ;;  %s2572_s17 = sphi %s2638_s17, %s4027_s17   ;;  %s2568_s16 = sphi %s2636_s16, %s4026_s16   ;;  %s2564_s15 = sphi %s2634_s15, %s4025_s15  }
   0x7   : > { %s2659_s21 = sadd.s32 1, %s2576_s18   ;;  %s28_s22 = sadd.s32 1, %s2572_s17 }
   0x8   : > { %s25_s23 = ssub.s32 %s2576_s18, %s2659_s21  ;;  %p35_p0 = scmp.ne.s32.totalorder %s2572_s17, %s2568_s16 }
   0x9   : > { %p26_p1 = scmp.eq.s32.totalorder %s25_s23, 0  ;;  %p36_p2 = scmp.eq.s32.totalorder %s2576_s18, 0 }
   0xa   : > { %p41_p3 = scmp.ne.s32.totalorder %s2568_s16, %s2564_s15  ;;  %p3939_p4 = scmp.eq.s32.totalorder %s2655_s19, 0 }
   0xb   : > { %s2671_s24 = scalar_select %p26_p1, %s2572_s17, %s28_s22  }
   0xc   : > { %p2673_p5 = por %p36_p2, %p35_p0  ;;  %p2679_p6 = por %p3939_p4, %p41_p3 }
   0xd   : > { %p128_p7 = scmp.eq.s32.totalorder %s2655_s19, 1  ;;  %p134_p8 = scmp.eq.s32.totalorder %s2217_s20, 1 }
   0xe   : > { %s3955_s26 = scalar_select %p2679_p6, 1, 0 }
   0xf   : > { %p2218_p9 = scmp.ge.s32.totalorder %s2576_s18, 1  ;;  %p141_p10 = scmp.lt.s32.totalorder %s2576_s18, 3 }
  0x10   : > { %p2686_p11 = por %p128_p7, %p35_p0  ;;  %p2690_p12 = por %p134_p8, %p41_p3 }
  0x11   : > { %p2694_p13 = pnand %p2218_p9, %p141_p10  ;;  %s160_s6 = sshll.u32 %s3936_s3, 4  ;;  %s161_s6 = int_to_ptr.vmem [resolvable:$true] %s160_s6 }
  0x12   : > { %s3956_s27 = scalar_select %p2686_p11, 1, 0 }
  0x13   : > { %s3957_s28 = scalar_select %p2690_p12, 1, 0 }
  0x14   : > { %p2366_p1 = pneg %p2694_p13  ;;  %p2379_p2 = scmp.lt.s32.totalorder %s2576_s18, 2 }
  0x15   : > { %s171_s8 = sand.u32 1, %s2572_s17   ;;  %s2461_s11 = scalar_lea.vmem %s161_s6, 16 }
  0x16   : > { %p2707_p7 = pnand %p2366_p1, %p3939_p4  ;;  %p2714_p3 = pnand %p2379_p2, %p2673_p5 }
  0x17   : > { %s2221_s10 = sshll.u32 %s171_s8, 5  ;;  %p2462_p8 = scmp.ne.s32.totalorder %s161_s6, %s2461_s11 }
  0x18   : > { %p2463_p9 = pneg %p2707_p7  ;;  %p2469_p12 = scmp.lt.s32.totalorder %s161_s6, %s161_s6 }
  0x19   : > { %p2470_p11 = scmp.lt.s32.totalorder %s2461_s11, %s2461_s11 }
  0x1a   : > { %p2464_p10 = pnand %p2463_p9, %p2462_p8 }
  0x1b   : > { %p2471_p1 = por %p2470_p11, %p2469_p12 }
  0x1c   : > { %p2465_p0 = pneg %p2464_p10 }
  0x1e   : > { %p2472_p4 = pnand %p2471_p1, %p2465_p0 }
  0x20   : > { %2475 = shalt.err (!%p2472_p4)
}
  0x21   : > { %s2578_s12 = smov [#allocation8]   ;;  %s2336_s13 = sshll.u32 %s2576_s18, 9 }
  0x22   : > { %2369 = dma.vmem_to_smem (!%p2707_p7), %s161_s6, 16, %s2578_s12, [#allocation7]  }
  0x23   : > { %s175_s14 = scalar_lea.vmem [#allocation4], %s2221_s10  ;;  %s2726_s25 = scalar_lea.hbm %s3933_s0, %s2336_s13 }
  0x24   : > { %s182_s20 = sshll.u32 %s175_s14, 4  ;;  %s2730_s30 = scalar_lea.sflag [#allocation5], %s171_s8  ;;  %s2728_s20 = int_to_ptr.vmem [resolvable:$true] %s182_s20 }
  0x25   : > { %s2476_s5 = scalar_lea.hbm %s2726_s25, 512  ;;  %p2478_p5 = pneg %p2714_p3 }
  0x26   : > { %p2477_p4 = scmp.ne.s32.totalorder %s2726_s25, %s2476_s5  ;;  %s2481_s10 = scalar_lea.hbm %s3933_s0, 1024 }
  0x27   : > { %p2482_p0 = scmp.lt.u32.totalorder %s2726_s25, %s3933_s0  ;;  %p2483_p2 = scmp.lt.u32.totalorder %s2481_s10, %s2476_s5 }
  0x28   : > { %p2479_p11 = pnand %p2478_p5, %p2477_p4  ;;  %p2485_p8 = scmp.lt.u32.totalorder %s2476_s5, %s2726_s25 }
  0x29   : > { %p2484_p7 = por %p2483_p2, %p2482_p0 }
  0x2a   : > { %p2480_p12 = pneg %p2479_p11 }
  0x2b   : > { %p2486_p9 = por %p2485_p8, %p2484_p7 }
  0x2d   : > { %p2487_p10 = pnand %p2486_p9, %p2480_p12 }
  0x2f   : > { %2490 = shalt.err (!%p2487_p10)
}
  0x30   : > { %s2491_s8 = scalar_lea.vmem %s2728_s20, 512  ;;  %s2579_s13 = smov [#allocation4]  }
  0x31   : > { %p2492_p1 = scmp.ne.s32.totalorder %s2728_s20, %s2491_s8  ;;  %s2496_s14 = sshll.u32 %s2579_s13, 4  ;;  %s2497_s14 = int_to_ptr.vmem [resolvable:$false] %s2496_s14 }
  0x32   : > { %s2498_s22 = scalar_lea.vmem %s2497_s14, 1024  ;;  %p2499_p6 = scmp.lt.s32.totalorder %s2728_s20, %s2497_s14 }
  0x33   : > { %p2494_p4 = pnand %p2492_p1, %p2478_p5  ;;  %p2500_p0 = scmp.lt.s32.totalorder %s2498_s22, %s2491_s8 }
  0x35   : > { %p2495_p11 = pneg %p2494_p4  ;;  %p2501_p2 = por %p2500_p0, %p2499_p6 }
  0x37   : > { %p2502_p7 = pnand %p2501_p2, %p2495_p11 }
  0x39   : > { %2505 = shalt.err (!%p2502_p7)
}
  0x3a   : > { %s2580_s23 = smov 256   ;;  %s2581_s5 = smov 16  }
  0x3b   : > { %2373 = dma.hbm_to_vmem [thread:$0]  (!%p2714_p3), %s2726_s25, 512, %s2728_s20, %s2730_s30, %s2580_s23, %s2580_s23, %s2581_s5  }
  0x3c   : > { %194 = sbr.rel (%p2694_p13) target bundleno = 1619 (0x653), region = 36 }
  0x43   : > { %s2761_s6 = sand.u32 1, %s2568_s16   ;;  %p3961_p6 = scmp.ne.s32.totalorder %s3955_s26, 0 }
  0x44   : > { %s2225_s7 = sshll.u32 %s2761_s6, 5  ;;  %s197_s10 = scalar_lea.sflag [#allocation5], %s2761_s6 }
  0x45   : > { %s200_s11 = scalar_lea.vmem [#allocation4], %s2225_s7 }
  0x46   : > { %2551 = dma.done.wait (%p3961_p6), %s197_s10, 512  }
  0x47   : > { %2553 = vsyncadd (%p3961_p6), %s197_s10, 4294966784  ;;  %p3962_p3 = scmp.eq.s32.totalorder %s2655_s19, 0 }
  0x49   : > { %2555 = dma.done.wait (%p3962_p3), [#allocation7], 16   ;;  %p3963_p13 = pmov %p3962_p3 }
  0x4b   : > { %2557 = vsyncadd (%p3963_p13), [#allocation7], 4294967280 }
  0x4c   : > { %209 = sfence }
  0x4d   : > { %v2775_v0 = vld [vmem:[%s200_s11] sm:$0xff]  ;;  %v2777_v1 = vld [vmem:[%s200_s11 + $0x8] sm:$0xff]  ;;  %v2779_v2 = vld [vmem:[%s200_s11 + $0x10] sm:$0xff]  ;;  %v2582_v9 = vmov 0.0|0.0   ;;  %vm2583_vm0 = vmmov 0   ;;  %v2584_v10 = vmov 0.0   ;;  %v3942_v11 = vlaneseq }
  0x4e   : > { %v234_v3 = vadd.f32 %v2777_v1, %v2775_v0  ;;  %v2783_v4 = vld [vmem:[%s200_s11 + $0x18] sm:$0xff]  ;;  %v243_v6 = vld [vmem:[%s3934_s1] sm:$0xff]  ;;  %2355 = vmatprep.subr.bf16.mxu0 %v2582_v9  ;;  %2347 = vmatprep.mubr.msk.f32.mxu0 %vm2583_vm0, %v2584_v10  ;;  %vm258_vm1 = vcmask 130112   ;;  %vm260_vm2 = vcmask 130048   ;;  %vm339_vm3 = vcmask 1041408   ;;  %s2585_s12 = smov 115  }
  0x4f   : > { %v237_v5 = vadd.f32 %v2783_v4, %v2779_v2  ;;  %v244_v7 = vld [vmem:[%s3934_s1 + $0x8] sm:$0xff]  ;;  %2350 = vmatprep.subr.mxu1 %v2584_v10  ;;  %2352 = vmatprep.mubr.msk.f32.mxu1 %vm2583_vm0, %v2584_v10  ;;  %v248_v12 = vand.u32 127, %v3942_v11  ;;  %v2798_v13 = vshrl.u32 %v3942_v11, 7  ;;  %v334_v24 = vld [vmem:[%s3935_s2] sm:$0x3]  ;;  %vm335_vm4 = vcmask 15360  }
  0x50   : > { %235 = vadd.xlane.f32.xlu0 %v234_v3  ;;  %v2356_v8 = vpack.c.bf16 %v244_v7, %v243_v6  ;;  %2351 = vmatpush3.msk.msra.mxu1 %vm339_vm3, %v334_v24  ;;  %vm471_vm5 = vcmask 23552   ;;  %vm476_vm6 = vcmask 179352   ;;  %vm466_vm7 = vcmask 174080   ;;  %s2586_s8 = smov 3   ;;  %s2587_s13 = smov 83  }
  0x51   : > { %3964 = vst [vmem:[#allocation13_spill] sm:$0xff] %v2798_v13  ;;  %v253_v14 = vadd.s32 4294967288, %v248_v12  ;;  %v251_v16 = vsub.s32 %v248_v12, %v2798_v13  ;;  %v3941_v34 = vsub.s32 0, %v2798_v13  ;;  %474 = vst.msk [vmem:[#allocation2 + $0x1b] sm:$0xff] %vm471_vm5, %v2584_v10  ;;  %s2588_s14 = smov 99   ;;  %s2589_s22 = smov 51  }
  0x52   : > { %2357 = vmatpush3.bf16.msra.mxu0 %v2356_v8  ;;  %472 = vst.msk [vmem:[#allocation2 + $0x3] sm:$0xff] %vm471_vm5, %v2584_v10  ;;  %473 = vst.msk [vmem:[#allocation2 + $0xb] sm:$0xff] %vm471_vm5, %v2584_v10  ;;  %s2590_s23 = smov 67   ;;  %s2591_s5 = smov 35   ;;  %vm485_vm8 = vcmask 147480  }
  0x53   : > { %v256_v18 = vsub.s32 %v253_v14, %v2798_v13  ;;  %475 = vst.msk [vmem:[#allocation2 + $0x23] sm:$0xff] %vm471_vm5, %v2584_v10  ;;  %s2592_s10 = smov 19   ;;  %s2876_s11 = sld [smem:[#allocation8 + $0x32]] }
  0x54   : > { %238 = vadd.xlane.f32.xlu0 %v237_v5  ;;  %479 = vst.msk [vmem:[#allocation2 + $0x1b] sm:$0xff] %vm476_vm6, %v2584_v10  ;;  %477 = vst.msk [vmem:[#allocation2 + $0x3] sm:$0xff] %vm476_vm6, %v2584_v10  ;;  %s2880_s26 = sld [smem:[#allocation8 + $0x33]]  ;;  %s2885_s29 = sld [smem:[#allocation8 + $0x34]] }
  0x55   : > { %478 = vst.msk [vmem:[#allocation2 + $0xb] sm:$0xff] %vm476_vm6, %v2584_v10  ;;  %480 = vst.msk [vmem:[#allocation2 + $0x23] sm:$0xff] %vm476_vm6, %v2584_v10  ;;  %s2890_s9 = sld [smem:[#allocation8 + $0x35]]  ;;  %s2593_s20 = smov 127  }
  0x56   : > { %468 = vst.msk [vmem:[#allocation2 + $0x18] sm:$0x7] %vm466_vm7, %v2584_v10  ;;  %467 = vst.msk [vmem:[#allocation2] sm:$0x7] %vm466_vm7, %v2584_v10  ;;  %s2896_s25 = sld [smem:[#allocation8 + $0x36]]  ;;  %s2594_s30 = smov 126  }
  0x57   : > { %469 = vst.msk [vmem:[#allocation2 + $0x13] sm:$0x7] %vm466_vm7, %v2584_v10  ;;  %470 = vst.msk [vmem:[#allocation2 + $0x2b] sm:$0x7] %vm466_vm7, %v2584_v10  ;;  %p4022_p12 = scmp.ne.s32.totalorder %s3956_s27, 0 }
  0x5a   : > { %v1282_v24 = vstv %s2880_s26  ;;  %s2935_s26 = sld [smem:[#allocation8 + $0x3d]] }
  0xdd   : > { %v236_v15 = vpop.xlane.xlu0 %235 }
  0xde   : > { %v241_v17 = vmul.f32 0.00390625, %v236_v15 }
  0xe0   : > { %v252_v21 = vrot.slane %v241_v17, %v251_v16 }
  0xe1   : > { %v239_v19 = vpop.xlane.xlu0 %238 }
  0xe2   : > { %v242_v20 = vmul.f32 0.00390625, %v239_v19  ;;  %v1268_v19 = vstv %s2876_s11  ;;  %s2928_s11 = sld [smem:[#allocation8 + $0x3c]] }
  0xe4   : > { %v257_v22 = vrot.slane %v242_v20, %v256_v18 }
  0xe6   : > { %v259_v23 = vsel %vm258_vm1, %v257_v22, %v252_v21 }
  0xe7   : > { %2348 = vmatmul.mubr.msk.f32.vlgmr.msra.gmra.mrb[0].mxu0 %vm260_vm2, %v259_v23 }
 0x1ba   : > { %v329_v25 = vpop.f32.mrb[0].mxu0 }
 0x1bb   : > { %v333_v26 = vmax.f32 %v329_v25, 0.0  ;;  %v2349_v27 = vpop.f32.mrb[1].mxu0 }
 0x1bd   : > { %2353 = vmatmul.mubr.msk.f32.vlgmr.msra.gmra.mrb[0].mxu1 %vm335_vm4, %v333_v26 }
 0x290   : > { %v409_v28 = vpop.f32.mrb[0].mxu1 }
 0x291   : > { %v2231_v29 = vmul.f32 -2.0, %v409_v28  ;;  %v2354_v30 = vpop.f32.mrb[1].mxu1  ;;  %v1296_v28 = vstv %s2885_s29  ;;  %s2942_s29 = sld [smem:[#allocation8 + $0x3e]] }
 0x293   : > { %v415_v31 = vmul.f32 1.442695, %v2231_v29 }
 0x295   : > { %2443 = vpow2.f32 %v415_v31 }
 0x29f   : > { %v2444_v32 = vpop.eup %2443 }
 0x2a0   : > { %v417_v33 = vadd.f32 1.0, %v2444_v32  ;;  %v1310_v32 = vstv %s2890_s9  ;;  %s2949_s9 = sld [smem:[#allocation8 + $0x40]] }
 0x2a2   : > { %2445 = vrcp.f32 %v417_v33 }
 0x2ac   : > { %v2446_v35 = vpop.eup %2445 }
 0x2ad   : > { %v423_v36 = vrot.slane %v2446_v35, %v3941_v34 }
 0x2af   : > { %425 = vbcast.lane.b32.xlu1 %v423_v36, 256 }
 0x2b3   : > { %429 = vbcast.lane.b32.xlu1 %v423_v36, 264 }
 0x321   : > { %v426_v37 = vpop.permute.xlu1 %425 }
 0x322   : > { %v2817_v39 = vmul.f32 %v426_v37, %v2775_v0  ;;  %v2828_v43 = vmul.f32 %v426_v37, %v2777_v1  ;;  %v1324_v37 = vstv %s2896_s25  ;;  %s2955_s25 = sld [smem:[#allocation8 + $0x41]] }
 0x324   : > { %3965 = vst [vmem:[#allocation14_spill] sm:$0xff] %v2817_v39  ;;  %3968 = vst [vmem:[#allocation17_spill] sm:$0xff] %v2828_v43 }
 0x325   : > { %v430_v38 = vpop.permute.xlu1 %429 }
 0x326   : > { %v2820_v40 = vmul.f32 %v430_v38, %v2779_v2  ;;  %v2823_v41 = vmul.f32 %v430_v38, %v2783_v4 }
 0x328   : > { %3966 = vst [vmem:[#allocation15_spill] sm:$0xff] %v2820_v40  ;;  %3967 = vst [vmem:[#allocation16_spill] sm:$0xff] %v2823_v41  ;;  %v452_v42 = vmax.f32 %v2817_v39, %v2820_v40  ;;  %v459_v46 = vmax.f32 %v2828_v43, %v2823_v41  ;;  %v435_v53 = vadd.f32 %v2820_v40, %v2817_v39 }
 0x329   : > { %v442_v58 = vadd.f32 %v2823_v41, %v2828_v43 }
 0x32a   : > { %v453_v44 = vrot.slane %v452_v42, 4  ;;  %v460_v49 = vrot.slane %v459_v46, 4  ;;  %v436_v55 = vrot.slane %v435_v53, 4 }
 0x32b   : > { %v443_v61 = vrot.slane %v442_v58, 4 }
 0x32c   : > { %v454_v45 = vmax.f32 %v452_v42, %v453_v44  ;;  %v461_v52 = vmax.f32 %v459_v46, %v460_v49  ;;  %v437_v57 = vadd.f32 %v436_v55, %v435_v53 }
 0x32d   : > { %v444_v0 = vadd.f32 %v443_v61, %v442_v58 }
 0x32e   : > { %v455_v47 = vrot.slane %v454_v45, 2  ;;  %v462_v54 = vrot.slane %v461_v52, 2  ;;  %v438_v60 = vrot.slane %v437_v57, 2 }
 0x32f   : > { %v445_v2 = vrot.slane %v444_v0, 2 }
 0x330   : > { %v456_v48 = vmax.f32 %v454_v45, %v455_v47  ;;  %v463_v56 = vmax.f32 %v461_v52, %v462_v54  ;;  %v439_v63 = vadd.f32 %v438_v60, %v437_v57 }
 0x331   : > { %v446_v4 = vadd.f32 %v445_v2, %v444_v0 }
 0x332   : > { %v457_v50 = vrot.slane %v456_v48, 1  ;;  %v464_v59 = vrot.slane %v463_v56, 1  ;;  %v440_v1 = vrot.slane %v439_v63, 1 }
 0x333   : > { %v447_v5 = vrot.slane %v446_v4, 1 }
 0x334   : > { %v458_v51 = vmax.f32 %v456_v48, %v457_v50  ;;  %v465_v62 = vmax.f32 %v463_v56, %v464_v59  ;;  %v441_v3 = vadd.f32 %v440_v1, %v439_v63 }
 0x335   : > { %v448_v7 = vadd.f32 %v447_v5, %v446_v4  ;;  %v1402_v4 = vstv %s2928_s11  ;;  %s2991_s11 = sld [smem:[#allocation8 + $0x2]] }
 0x336   : > { %497 = vrot.lane.b32.xlu1 %v458_v51, %s2585_s12  ;;  %488 = vrot.lane.b32.xlu0 %v458_v51, %s2586_s8  ;;  %v450_v6 = vmul.f32 0.0625, %v441_v3 }
 0x337   : > { %v451_v8 = vmul.f32 0.0625, %v448_v7 }
 0x33a   : > { %513 = vrot.lane.b32.xlu1 %v458_v51, %s2587_s13  ;;  %505 = vrot.lane.b32.xlu0 %v458_v51, %s2588_s14 }
 0x33e   : > { %529 = vrot.lane.b32.xlu1 %v458_v51, %s2589_s22  ;;  %521 = vrot.lane.b32.xlu0 %v458_v51, %s2590_s23 }
 0x342   : > { %537 = vrot.lane.b32.xlu1 %v458_v51, %s2591_s5  ;;  %545 = vrot.lane.b32.xlu0 %v458_v51, %s2592_s10 }
 0x346   : > { %555 = vrot.lane.b32.xlu1 %v465_v62, %s2586_s8  ;;  %563 = vrot.lane.b32.xlu0 %v465_v62, %s2585_s12 }
 0x34a   : > { %571 = vrot.lane.b32.xlu1 %v465_v62, %s2588_s14  ;;  %579 = vrot.lane.b32.xlu0 %v465_v62, %s2587_s13 }
 0x34e   : > { %587 = vrot.lane.b32.xlu1 %v465_v62, %s2590_s23  ;;  %595 = vrot.lane.b32.xlu0 %v465_v62, %s2589_s22 }
 0x352   : > { %603 = vrot.lane.b32.xlu1 %v465_v62, %s2591_s5  ;;  %611 = vrot.lane.b32.xlu0 %v465_v62, %s2592_s10 }
 0x356   : > { %493 = vrot.lane.b32.xlu1 %v450_v6, %s2585_s12  ;;  %482 = vrot.lane.b32.xlu0 %v450_v6, %s2586_s8 }
 0x35a   : > { %501 = vrot.lane.b32.xlu1 %v450_v6, %s2588_s14  ;;  %541 = vrot.lane.b32.xlu0 %v450_v6, %s2592_s10 }
 0x35e   : > { %509 = vrot.lane.b32.xlu1 %v450_v6, %s2587_s13  ;;  %559 = vrot.lane.b32.xlu0 %v451_v8, %s2585_s12  ;;  %s2902_s12 = sld [smem:[#allocation8 + $0x37]] }
 0x362   : > { %517 = vrot.lane.b32.xlu1 %v450_v6, %s2590_s23  ;;  %575 = vrot.lane.b32.xlu0 %v451_v8, %s2587_s13  ;;  %s2908_s13 = sld [smem:[#allocation8 + $0x39]] }
 0x364   : > { %v1338_v47 = vstv %s2902_s12  ;;  %s2963_s12 = sld [smem:[#allocation8 + $0x42]] }
 0x366   : > { %525 = vrot.lane.b32.xlu1 %v450_v6, %s2589_s22  ;;  %591 = vrot.lane.b32.xlu0 %v451_v8, %s2589_s22  ;;  %s2914_s22 = sld [smem:[#allocation8 + $0x3a]] }
 0x368   : > { %v1360_v53 = vstv %s2908_s13  ;;  %s2970_s13 = sld [smem:[#allocation8 + $0x43]] }
 0x36a   : > { %533 = vrot.lane.b32.xlu1 %v450_v6, %s2591_s5  ;;  %607 = vrot.lane.b32.xlu0 %v451_v8, %s2592_s10  ;;  %s2598_s10 = smov 122  }
 0x36c   : > { %v1374_v58 = vstv %s2914_s22  ;;  %s2977_s22 = sld [smem:[#allocation8 + $0x44]] }
 0x36e   : > { %550 = vrot.lane.b32.xlu1 %v451_v8, %s2586_s8  ;;  %s2595_s8 = smov 125  }
 0x372   : > { %567 = vrot.lane.b32.xlu1 %v451_v8, %s2588_s14  ;;  %s2596_s14 = smov 124  }
 0x376   : > { %583 = vrot.lane.b32.xlu1 %v451_v8, %s2590_s23  ;;  %s2597_s23 = smov 123  }
 0x37a   : > { %599 = vrot.lane.b32.xlu1 %v451_v8, %s2591_s5  ;;  %s2921_s5 = sld [smem:[#allocation8 + $0x3b]] }
 0x380   : > { %v1388_v63 = vstv %s2921_s5  ;;  %s2983_s5 = sld [smem:[#allocation8 + $0x1]] }
 0x3a8   : > { %v498_v9 = vpop.permute.xlu1 %497  ;;  %v489_v10 = vpop.permute.xlu0 %488 }
 0x3a9   : > { %500 = vst.msk [vmem:[#allocation2 + $0x1c] sm:$0x1] %vm485_vm8, %v498_v9  ;;  %492 = vst.msk [vmem:[#allocation2 + $0x1b] sm:$0x1] %vm485_vm8, %v489_v10  ;;  %v1416_v9 = vstv %s2935_s26  ;;  %s3000_s26 = sld [smem:[#allocation8 + $0x3]] }
 0x3ac   : > { %v514_v12 = vpop.permute.xlu1 %513  ;;  %v506_v14 = vpop.permute.xlu0 %505 }
 0x3ad   : > { %516 = vst.msk [vmem:[#allocation2 + $0x1e] sm:$0x1] %vm485_vm8, %v514_v12  ;;  %508 = vst.msk [vmem:[#allocation2 + $0x1d] sm:$0x1] %vm485_vm8, %v506_v14 }
 0x3b0   : > { %v530_v15 = vpop.permute.xlu1 %529  ;;  %v522_v16 = vpop.permute.xlu0 %521 }
 0x3b1   : > { %532 = vst.msk [vmem:[#allocation2 + $0x20] sm:$0x1] %vm485_vm8, %v530_v15  ;;  %524 = vst.msk [vmem:[#allocation2 + $0x1f] sm:$0x1] %vm485_vm8, %v522_v16  ;;  %v1430_v16 = vstv %s2942_s29  ;;  %s3007_s29 = sld [smem:[#allocation8 + $0x4]] }
 0x3b4   : > { %v538_v17 = vpop.permute.xlu1 %537  ;;  %v546_v18 = vpop.permute.xlu0 %545 }
 0x3b5   : > { %540 = vst.msk [vmem:[#allocation2 + $0x21] sm:$0x1] %vm485_vm8, %v538_v17  ;;  %548 = vst.msk [vmem:[#allocation2 + $0x22] sm:$0x1] %vm485_vm8, %v546_v18 }
 0x3b8   : > { %v556_v20 = vpop.permute.xlu1 %555  ;;  %v564_v21 = vpop.permute.xlu0 %563  ;;  %v1259_v22 = vld [vmem:[#allocation2 + $0x18] sm:$0xff] }
 0x3b9   : > { %558 = vst.msk [vmem:[#allocation2 + $0x23] sm:$0x1] %vm485_vm8, %v556_v20  ;;  %566 = vst.msk [vmem:[#allocation2 + $0x24] sm:$0x1] %vm485_vm8, %v564_v21  ;;  %v1269_v23 = vmul.f32 %v1268_v19, %v1259_v22  ;;  %v1283_v27 = vmul.f32 %v1282_v24, %v1259_v22  ;;  %v1297_v31 = vmul.f32 %v1296_v28, %v1259_v22  ;;  %v1351_v52 = vld [vmem:[#allocation2 + $0x19] sm:$0xff]  ;;  %v1452_v21 = vstv %s2949_s9  ;;  %s3014_s9 = sld [smem:[#allocation8 + $0x5]] }
 0x3ba   : > { %v1311_v36 = vmul.f32 %v1310_v32, %v1259_v22  ;;  %v1325_v45 = vmul.f32 %v1324_v37, %v1259_v22  ;;  %v1339_v50 = vmul.f32 %v1338_v47, %v1259_v22  ;;  %v1361_v56 = vmul.f32 %v1360_v53, %v1351_v52 }
 0x3bb   : > { %1273 = vrot.lane.b32.xlu1 %v1269_v23, %s2593_s20  ;;  %v1375_v61 = vmul.f32 %v1374_v58, %v1351_v52  ;;  %v1389_v2 = vmul.f32 %v1388_v63, %v1351_v52  ;;  %v1403_v7 = vmul.f32 %v1402_v4, %v1351_v52  ;;  %v1417_v14 = vmul.f32 %v1416_v9, %v1351_v52 }
 0x3bc   : > { %v572_v25 = vpop.permute.xlu1 %571  ;;  %v580_v26 = vpop.permute.xlu0 %579  ;;  %v1431_v18 = vmul.f32 %v1430_v16, %v1351_v52  ;;  %v2960_v20 = vld [vmem:[#allocation2 + $0x1a] sm:$0xff] }
 0x3bd   : > { %574 = vst.msk [vmem:[#allocation2 + $0x25] sm:$0x1] %vm485_vm8, %v572_v25  ;;  %582 = vst.msk [vmem:[#allocation2 + $0x26] sm:$0x1] %vm485_vm8, %v580_v26  ;;  %v1453_v23 = vmul.f32 %v1452_v21, %v2960_v20  ;;  %v1466_v25 = vstv %s2955_s25  ;;  %s3021_s25 = sld [smem:[#allocation8 + $0x6]] }
 0x3bf   : > { %1287 = vrot.lane.b32.xlu1 %v1283_v27, %s2594_s30  ;;  %v1467_v27 = vmul.f32 %v1466_v25, %v2960_v20 }
 0x3c0   : > { %v588_v29 = vpop.permute.xlu1 %587  ;;  %v596_v30 = vpop.permute.xlu0 %595 }
 0x3c1   : > { %590 = vst.msk [vmem:[#allocation2 + $0x27] sm:$0x1] %vm485_vm8, %v588_v29  ;;  %598 = vst.msk [vmem:[#allocation2 + $0x28] sm:$0x1] %vm485_vm8, %v596_v30  ;;  %v1480_v29 = vstv %s2963_s12  ;;  %s3030_s12 = sld [smem:[#allocation8 + $0x8]] }
 0x3c2   : > { %v1481_v30 = vmul.f32 %v1480_v29, %v2960_v20 }
 0x3c3   : > { %1301 = vrot.lane.b32.xlu1 %v1297_v31, %s2595_s8 }
 0x3c4   : > { %v604_v33 = vpop.permute.xlu1 %603  ;;  %v612_v35 = vpop.permute.xlu0 %611 }
 0x3c5   : > { %606 = vst.msk [vmem:[#allocation2 + $0x29] sm:$0x1] %vm485_vm8, %v604_v33  ;;  %614 = vst.msk [vmem:[#allocation2 + $0x2a] sm:$0x1] %vm485_vm8, %v612_v35 }
 0x3c7   : > { %1315 = vrot.lane.b32.xlu1 %v1311_v36, %s2596_s14  ;;  %v1508_v36 = vstv %s2977_s22  ;;  %s3046_s22 = sld [smem:[#allocation8 + $0xa]] }
 0x3c8   : > { %v494_v38 = vpop.permute.xlu1 %493  ;;  %v483_v42 = vpop.permute.xlu0 %482  ;;  %v1260_v44 = vld [vmem:[#allocation2 + $0x20] sm:$0xff] }
 0x3c9   : > { %496 = vst.msk [vmem:[#allocation2 + $0x4] sm:$0x1] %vm485_vm8, %v494_v38  ;;  %486 = vst.msk [vmem:[#allocation2 + $0x3] sm:$0x1] %vm485_vm8, %v483_v42  ;;  %v1270_v46 = vmul.f32 %v1268_v19, %v1260_v44  ;;  %v1284_v51 = vmul.f32 %v1282_v24, %v1260_v44  ;;  %v1298_v57 = vmul.f32 %v1296_v28, %v1260_v44  ;;  %v1352_v10 = vld [vmem:[#allocation2 + $0x21] sm:$0xff] }
 0x3ca   : > { %v1312_v62 = vmul.f32 %v1310_v32, %v1260_v44  ;;  %v1326_v3 = vmul.f32 %v1324_v37, %v1260_v44  ;;  %v1340_v8 = vmul.f32 %v1338_v47, %v1260_v44  ;;  %v1362_v15 = vmul.f32 %v1360_v53, %v1352_v10 }
 0x3cb   : > { %1329 = vrot.lane.b32.xlu1 %v1325_v45, %s2597_s23  ;;  %1275 = vrot.lane.b32.xlu0 %v1270_v46, %s2593_s20  ;;  %v1376_v19 = vmul.f32 %v1374_v58, %v1352_v10  ;;  %v1390_v24 = vmul.f32 %v1388_v63, %v1352_v10  ;;  %v1404_v28 = vmul.f32 %v1402_v4, %v1352_v10  ;;  %v1494_v32 = vstv %s2970_s13  ;;  %s3037_s13 = sld [smem:[#allocation8 + $0x9]] }
 0x3cc   : > { %v502_v48 = vpop.permute.xlu1 %501  ;;  %v542_v49 = vpop.permute.xlu0 %541  ;;  %v1418_v31 = vmul.f32 %v1416_v9, %v1352_v10  ;;  %v1495_v33 = vmul.f32 %v1494_v32, %v2960_v20  ;;  %v1432_v35 = vmul.f32 %v1430_v16, %v1352_v10  ;;  %v2989_v37 = vld [vmem:[#allocation2 + $0x22] sm:$0xff]  ;;  %v1509_v38 = vmul.f32 %v1508_v36, %v2960_v20 }
 0x3cd   : > { %504 = vst.msk [vmem:[#allocation2 + $0x5] sm:$0x1] %vm485_vm8, %v502_v48  ;;  %544 = vst.msk [vmem:[#allocation2 + $0xa] sm:$0x1] %vm485_vm8, %v542_v49  ;;  %v1454_v42 = vmul.f32 %v1452_v21, %v2989_v37  ;;  %v624_v45 = vstv %s2983_s5  ;;  %v1468_v46 = vmul.f32 %v1466_v25, %v2989_v37  ;;  %v638_v48 = vstv %s2991_s11  ;;  %s3053_s5 = sld [smem:[#allocation8 + $0xb]]  ;;  %s3060_s11 = sld [smem:[#allocation8 + $0xc]] }
 0x3ce   : > { %v1482_v49 = vmul.f32 %v1480_v29, %v2989_v37  ;;  %v1496_v52 = vmul.f32 %v1494_v32, %v2989_v37  ;;  %v680_v58 = vstv %s3014_s9  ;;  %s3083_s9 = sld [smem:[#allocation8 + $0x10]] }
 0x3cf   : > { %1343 = vrot.lane.b32.xlu1 %v1339_v50, %s2598_s10  ;;  %1289 = vrot.lane.b32.xlu0 %v1284_v51, %s2594_s30  ;;  %v652_v51 = vstv %s3000_s26  ;;  %s3067_s26 = sld [smem:[#allocation8 + $0xd]] }
 0x3d0   : > { %v510_v54 = vpop.permute.xlu1 %509  ;;  %v560_v55 = vpop.permute.xlu0 %559 }
 0x3d1   : > { %512 = vst.msk [vmem:[#allocation2 + $0x6] sm:$0x1] %vm485_vm8, %v510_v54  ;;  %562 = vst.msk [vmem:[#allocation2 + $0xc] sm:$0x1] %vm485_vm8, %v560_v55  ;;  %v666_v54 = vstv %s3007_s29  ;;  %v1510_v55 = vmul.f32 %v1508_v36, %v2989_v37  ;;  %v730_v4 = vstv %s3037_s13  ;;  %s3076_s29 = sld [smem:[#allocation8 + $0xf]]  ;;  %s3110_s13 = sld [smem:[#allocation8 + $0x13]] }
 0x3d3   : > { %1365 = vrot.lane.b32.xlu1 %v1361_v56, %s2593_s20  ;;  %1303 = vrot.lane.b32.xlu0 %v1298_v57, %s2595_s8  ;;  %v758_v10 = vstv %s3053_s5  ;;  %v772_v16 = vstv %s3060_s11  ;;  %s3130_s5 = sld [smem:[#allocation8 + $0x16]]  ;;  %s3141_s11 = sld [smem:[#allocation8 + $0x17]] }
 0x3d4   : > { %v518_v59 = vpop.permute.xlu1 %517  ;;  %v576_v60 = vpop.permute.xlu0 %575 }
 0x3d5   : > { %520 = vst.msk [vmem:[#allocation2 + $0x7] sm:$0x1] %vm485_vm8, %v518_v59  ;;  %578 = vst.msk [vmem:[#allocation2 + $0xe] sm:$0x1] %vm485_vm8, %v576_v60 }
 0x3d7   : > { %1379 = vrot.lane.b32.xlu1 %v1375_v61, %s2594_s30  ;;  %1317 = vrot.lane.b32.xlu0 %v1312_v62, %s2596_s14  ;;  %v694_v61 = vstv %s3021_s25  ;;  %s3092_s25 = sld [smem:[#allocation8 + $0x11]] }
 0x3d8   : > { %v526_v0 = vpop.permute.xlu1 %525  ;;  %v592_v1 = vpop.permute.xlu0 %591 }
 0x3d9   : > { %528 = vst.msk [vmem:[#allocation2 + $0x8] sm:$0x1] %vm485_vm8, %v526_v0  ;;  %594 = vst.msk [vmem:[#allocation2 + $0x10] sm:$0x1] %vm485_vm8, %v592_v1  ;;  %v716_v1 = vstv %s3030_s12  ;;  %s3101_s12 = sld [smem:[#allocation8 + $0x12]] }
 0x3db   : > { %1393 = vrot.lane.b32.xlu1 %v1389_v2, %s2595_s8  ;;  %1331 = vrot.lane.b32.xlu0 %v1326_v3, %s2597_s23 }
 0x3dc   : > { %v534_v5 = vpop.permute.xlu1 %533  ;;  %v608_v6 = vpop.permute.xlu0 %607  ;;  %v2997_v44 = vld [vmem:[#allocation2] sm:$0xff] }
 0x3dd   : > { %536 = vst.msk [vmem:[#allocation2 + $0x9] sm:$0x1] %vm485_vm8, %v534_v5  ;;  %610 = vst.msk [vmem:[#allocation2 + $0x12] sm:$0x1] %vm485_vm8, %v608_v6  ;;  %v625_v47 = vmul.f32 %v624_v45, %v2997_v44  ;;  %v639_v50 = vmul.f32 %v638_v48, %v2997_v44  ;;  %v653_v53 = vmul.f32 %v652_v51, %v2997_v44  ;;  %v836_v32 = vstv %s3092_s25  ;;  %s3187_s25 = sld [smem:[#allocation8 + $0x1b]] }
 0x3de   : > { %v667_v56 = vmul.f32 %v666_v54, %v2997_v44  ;;  %v681_v59 = vmul.f32 %v680_v58, %v2997_v44  ;;  %v695_v62 = vmul.f32 %v694_v61, %v2997_v44 }
 0x3df   : > { %1407 = vrot.lane.b32.xlu1 %v1403_v7, %s2596_s14  ;;  %1345 = vrot.lane.b32.xlu0 %v1340_v8, %s2598_s10  ;;  %v744_v7 = vstv %s3046_s22  ;;  %s3119_s22 = sld [smem:[#allocation8 + $0x14]] }
 0x3e0   : > { %v551_v12 = vpop.permute.xlu1 %550  ;;  %v3043_v0 = vld [vmem:[#allocation2 + $0x1] sm:$0xff] }
 0x3e1   : > { %553 = vst.msk [vmem:[#allocation2 + $0xb] sm:$0x1] %vm485_vm8, %v551_v12  ;;  %v717_v2 = vmul.f32 %v716_v1, %v3043_v0  ;;  %v731_v5 = vmul.f32 %v730_v4, %v3043_v0  ;;  %v745_v8 = vmul.f32 %v744_v7, %v3043_v0  ;;  %v759_v12 = vmul.f32 %v758_v10, %v3043_v0 }
 0x3e3   : > { %1421 = vrot.lane.b32.xlu1 %v1417_v14, %s2597_s23  ;;  %1367 = vrot.lane.b32.xlu0 %v1362_v15, %s2593_s20 }
 0x3e4   : > { %v568_v17 = vpop.permute.xlu1 %567 }
 0x3e5   : > { %570 = vst.msk [vmem:[#allocation2 + $0xd] sm:$0x1] %vm485_vm8, %v568_v17  ;;  %v773_v17 = vmul.f32 %v772_v16, %v3043_v0 }
 0x3e7   : > { %1435 = vrot.lane.b32.xlu1 %v1431_v18, %s2598_s10  ;;  %1381 = vrot.lane.b32.xlu0 %v1376_v19, %s2594_s30  ;;  %v786_v19 = vstv %s3067_s26  ;;  %s3154_s26 = sld [smem:[#allocation8 + $0x18]] }
 0x3e8   : > { %v584_v22 = vpop.permute.xlu1 %583  ;;  %v787_v21 = vmul.f32 %v786_v19, %v3043_v0 }
 0x3e9   : > { %586 = vst.msk [vmem:[#allocation2 + $0xf] sm:$0x1] %vm485_vm8, %v584_v22 }
 0x3eb   : > { %1457 = vrot.lane.b32.xlu1 %v1453_v23, %s2593_s20  ;;  %1395 = vrot.lane.b32.xlu0 %v1390_v24, %s2595_s8  ;;  %v3089_v23 = vld [vmem:[#allocation2 + $0x2] sm:$0xff]  ;;  %v808_v24 = vstv %s3076_s29  ;;  %s3165_s29 = sld [smem:[#allocation8 + $0x19]] }
 0x3ec   : > { %v600_v26 = vpop.permute.xlu1 %599 }
 0x3ed   : > { %602 = vst.msk [vmem:[#allocation2 + $0x11] sm:$0x1] %vm485_vm8, %v600_v26  ;;  %v809_v26 = vmul.f32 %v808_v24, %v3089_v23 }
 0x3ef   : > { %1471 = vrot.lane.b32.xlu1 %v1467_v27, %s2594_s30  ;;  %1409 = vrot.lane.b32.xlu0 %v1404_v28, %s2596_s14  ;;  %v822_v28 = vstv %s3083_s9  ;;  %s3176_s9 = sld [smem:[#allocation8 + $0x1a]] }
 0x3f0   : > { %v3027_v57 = vld [vmem:[#allocation2 + $0x8] sm:$0xff] }
 0x3f1   : > { %v626_v60 = vmul.f32 %v624_v45, %v3027_v57  ;;  %v640_v63 = vmul.f32 %v638_v48, %v3027_v57  ;;  %v654_v3 = vmul.f32 %v652_v51, %v3027_v57  ;;  %v668_v6 = vmul.f32 %v666_v54, %v3027_v57  ;;  %v3073_v15 = vld [vmem:[#allocation2 + $0x9] sm:$0xff] }
 0x3f2   : > { %v682_v9 = vmul.f32 %v680_v58, %v3027_v57  ;;  %v696_v14 = vmul.f32 %v694_v61, %v3027_v57  ;;  %v718_v18 = vmul.f32 %v716_v1, %v3073_v15  ;;  %v732_v22 = vmul.f32 %v730_v4, %v3073_v15 }
 0x3f3   : > { %1485 = vrot.lane.b32.xlu1 %v1481_v30, %s2595_s8  ;;  %1423 = vrot.lane.b32.xlu0 %v1418_v31, %s2597_s23  ;;  %v746_v27 = vmul.f32 %v744_v7, %v3073_v15  ;;  %v823_v30 = vmul.f32 %v822_v28, %v3089_v23  ;;  %v760_v31 = vmul.f32 %v758_v10, %v3073_v15  ;;  %v864_v48 = vstv %s3110_s13  ;;  %s3211_s13 = sld [smem:[#allocation8 + $0x1e]] }
 0x3f4   : > { %v774_v36 = vmul.f32 %v772_v16, %v3073_v15  ;;  %v865_v51 = vmul.f32 %v864_v48, %v3089_v23  ;;  %v928_v7 = vstv %s3154_s26  ;;  %s3257_s26 = sld [smem:[#allocation8 + $0x22]] }
 0x3f7   : > { %1499 = vrot.lane.b32.xlu1 %v1495_v33, %s2596_s14  ;;  %1437 = vrot.lane.b32.xlu0 %v1432_v35, %s2598_s10  ;;  %v837_v35 = vmul.f32 %v836_v32, %v3089_v23 }
 0x3fb   : > { %1513 = vrot.lane.b32.xlu1 %v1509_v38, %s2597_s23  ;;  %1459 = vrot.lane.b32.xlu0 %v1454_v42, %s2593_s20  ;;  %v850_v38 = vstv %s3101_s12  ;;  %s3200_s12 = sld [smem:[#allocation8 + $0x1d]] }
 0x3fc   : > { %v851_v45 = vmul.f32 %v850_v38, %v3089_v23 }
 0x3ff   : > { %1473 = vrot.lane.b32.xlu0 %v1468_v46, %s2594_s30  ;;  %629 = vrot.lane.b32.xlu1 %v625_v47, %s2593_s20  ;;  %v788_v46 = vmul.f32 %v786_v19, %v3073_v15  ;;  %v3127_v47 = vld [vmem:[#allocation2 + $0xa] sm:$0xff] }
 0x400   : > { %v824_v58 = vmul.f32 %v822_v28, %v3127_v47  ;;  %v838_v1 = vmul.f32 %v836_v32, %v3127_v47 }
 0x403   : > { %1487 = vrot.lane.b32.xlu0 %v1482_v49, %s2595_s8  ;;  %643 = vrot.lane.b32.xlu1 %v639_v50, %s2594_s30 }
 0x407   : > { %1501 = vrot.lane.b32.xlu0 %v1496_v52, %s2596_s14  ;;  %657 = vrot.lane.b32.xlu1 %v653_v53, %s2595_s8  ;;  %v810_v52 = vmul.f32 %v808_v24, %v3127_v47  ;;  %v878_v53 = vstv %s3119_s22  ;;  %s3224_s22 = sld [smem:[#allocation8 + $0x1f]] }
 0x408   : > { %v880_v19 = vmul.f32 %v878_v53, %v3127_v47 }
 0x40b   : > { %1515 = vrot.lane.b32.xlu0 %v1510_v55, %s2597_s23  ;;  %671 = vrot.lane.b32.xlu1 %v667_v56, %s2596_s14  ;;  %v879_v56 = vmul.f32 %v878_v53, %v3089_v23  ;;  %v1006_v53 = vstv %s3211_s13  ;;  %s3303_s13 = sld [smem:[#allocation8 + $0x27]] }
 0x40f   : > { %685 = vrot.lane.b32.xlu1 %v681_v59, %s2597_s23  ;;  %631 = vrot.lane.b32.xlu0 %v626_v60, %s2593_s20  ;;  %v3151_v59 = vld [vmem:[#allocation2 + $0x3] sm:$0xff]  ;;  %v900_v60 = vstv %s3130_s5  ;;  %s3235_s5 = sld [smem:[#allocation8 + $0x20]] }
 0x410   : > { %v929_v10 = vmul.f32 %v928_v7, %v3151_v59 }
 0x411   : > { %v1126_v13 = vstv %s3303_s13  ;;  %s3369_s13 = sld [smem:[#allocation8 + $0xe]] }
 0x413   : > { %699 = vrot.lane.b32.xlu1 %v695_v62, %s2598_s10  ;;  %645 = vrot.lane.b32.xlu0 %v640_v63, %s2594_s30  ;;  %v901_v63 = vmul.f32 %v900_v60, %v3151_v59 }
 0x417   : > { %721 = vrot.lane.b32.xlu1 %v717_v2, %s2593_s20  ;;  %659 = vrot.lane.b32.xlu0 %v654_v3, %s2595_s8  ;;  %v914_v2 = vstv %s3141_s11  ;;  %s3246_s11 = sld [smem:[#allocation8 + $0x21]] }
 0x41b   : > { %735 = vrot.lane.b32.xlu1 %v731_v5, %s2594_s30  ;;  %673 = vrot.lane.b32.xlu0 %v668_v6, %s2596_s14  ;;  %v915_v5 = vmul.f32 %v914_v2, %v3151_v59  ;;  %v852_v6 = vmul.f32 %v850_v38, %v3127_v47  ;;  %v3221_v38 = vld [vmem:[#allocation2 + $0x4] sm:$0xff] }
 0x41f   : > { %749 = vrot.lane.b32.xlu1 %v745_v8, %s2595_s8  ;;  %687 = vrot.lane.b32.xlu0 %v682_v9, %s2597_s23 }
 0x423   : > { %763 = vrot.lane.b32.xlu1 %v759_v12, %s2596_s14  ;;  %701 = vrot.lane.b32.xlu0 %v696_v14, %s2598_s10  ;;  %v866_v12 = vmul.f32 %v864_v48, %v3127_v47  ;;  %v942_v14 = vstv %s3165_s29  ;;  %s3270_s29 = sld [smem:[#allocation8 + $0x24]] }
 0x427   : > { %777 = vrot.lane.b32.xlu1 %v773_v17, %s2597_s23  ;;  %723 = vrot.lane.b32.xlu0 %v718_v18, %s2593_s20  ;;  %v943_v18 = vmul.f32 %v942_v14, %v3151_v59 }
 0x42b   : > { %791 = vrot.lane.b32.xlu1 %v787_v21, %s2598_s10  ;;  %737 = vrot.lane.b32.xlu0 %v732_v22, %s2594_s30  ;;  %v3197_v21 = vld [vmem:[#allocation2 + $0xb] sm:$0xff]  ;;  %v956_v22 = vstv %s3176_s9  ;;  %s3281_s9 = sld [smem:[#allocation8 + $0x25]] }
 0x42c   : > { %v902_v28 = vmul.f32 %v900_v60, %v3197_v21  ;;  %v1007_v60 = vmul.f32 %v1006_v53, %v3221_v38 }
 0x42d   : > { %v3096_v25 = vpop.permute.xlu1 %1273 }
 0x42f   : > { %813 = vrot.lane.b32.xlu1 %v809_v26, %s2593_s20  ;;  %751 = vrot.lane.b32.xlu0 %v746_v27, %s2595_s8  ;;  %v957_v27 = vmul.f32 %v956_v22, %v3151_v59 }
 0x431   : > { %v3105_v29 = vpop.permute.xlu1 %1287  ;;  %v1098_v34 = vstv %s3281_s9  ;;  %s3353_s9 = sld [smem:[#allocation8 + $0x2d]] }
 0x433   : > { %827 = vrot.lane.b32.xlu1 %v823_v30, %s2594_s30  ;;  %765 = vrot.lane.b32.xlu0 %v760_v31, %s2596_s14  ;;  %v970_v30 = vstv %s3187_s25  ;;  %s3283_s25 = sld [smem:[#allocation8]] }
 0x435   : > { %v3114_v33 = vpop.permute.xlu1 %1301 }
 0x437   : > { %841 = vrot.lane.b32.xlu1 %v837_v35, %s2595_s8  ;;  %779 = vrot.lane.b32.xlu0 %v774_v36, %s2597_s23  ;;  %v971_v35 = vmul.f32 %v970_v30, %v3151_v59  ;;  %v916_v36 = vmul.f32 %v914_v2, %v3197_v21 }
 0x439   : > { %v3123_v42 = vpop.permute.xlu1 %1315 }
 0x43b   : > { %855 = vrot.lane.b32.xlu1 %v851_v45, %s2596_s14  ;;  %793 = vrot.lane.b32.xlu0 %v788_v46, %s2598_s10  ;;  %v992_v45 = vstv %s3200_s12  ;;  %s3294_s12 = sld [smem:[#allocation8 + $0x26]] }
 0x43d   : > { %v3134_v49 = vpop.permute.xlu1 %1329  ;;  %v3136_v50 = vpop.permute.xlu0 %1275 }
 0x43f   : > { %869 = vrot.lane.b32.xlu1 %v865_v51, %s2597_s23  ;;  %815 = vrot.lane.b32.xlu0 %v810_v52, %s2593_s20  ;;  %v993_v51 = vmul.f32 %v992_v45, %v3221_v38  ;;  %v930_v52 = vmul.f32 %v928_v7, %v3197_v21  ;;  %v958_v7 = vmul.f32 %v956_v22, %v3197_v21 }
 0x441   : > { %v3145_v54 = vpop.permute.xlu1 %1343  ;;  %v3147_v55 = vpop.permute.xlu0 %1289  ;;  %v1112_v43 = vstv %s3294_s12  ;;  %s3367_s12 = sld [smem:[#allocation8 + $0x2f]] }
 0x443   : > { %883 = vrot.lane.b32.xlu1 %v879_v56, %s2598_s10  ;;  %829 = vrot.lane.b32.xlu0 %v824_v58, %s2594_s30 }
 0x445   : > { %v3158_v61 = vpop.permute.xlu1 %1365  ;;  %v3160_v62 = vpop.permute.xlu0 %1303 }
 0x447   : > { %905 = vrot.lane.b32.xlu1 %v901_v63, %s2593_s20  ;;  %843 = vrot.lane.b32.xlu0 %v838_v1, %s2595_s8  ;;  %v944_v63 = vmul.f32 %v942_v14, %v3197_v21  ;;  %v1020_v1 = vstv %s3224_s22  ;;  %s3314_s22 = sld [smem:[#allocation8 + $0x28]] }
 0x449   : > { %v3169_v3 = vpop.permute.xlu1 %1379  ;;  %v3171_v4 = vpop.permute.xlu0 %1317 }
 0x44b   : > { %919 = vrot.lane.b32.xlu1 %v915_v5, %s2594_s30  ;;  %857 = vrot.lane.b32.xlu0 %v852_v6, %s2596_s14  ;;  %v1021_v6 = vmul.f32 %v1020_v1, %v3221_v38 }
 0x44d   : > { %v3180_v8 = vpop.permute.xlu1 %1393  ;;  %v3182_v9 = vpop.permute.xlu0 %1331 }
 0x44f   : > { %933 = vrot.lane.b32.xlu1 %v929_v10, %s2595_s8  ;;  %871 = vrot.lane.b32.xlu0 %v866_v12, %s2597_s23  ;;  %v1034_v10 = vstv %s3235_s5  ;;  %s3316_s5 = sld [smem:[#allocation8 + $0x7]] }
 0x451   : > { %v3191_v16 = vpop.permute.xlu1 %1407  ;;  %v3193_v17 = vpop.permute.xlu0 %1345 }
 0x453   : > { %947 = vrot.lane.b32.xlu1 %v943_v18, %s2596_s14  ;;  %885 = vrot.lane.b32.xlu0 %v880_v19, %s2598_s10  ;;  %v1035_v18 = vmul.f32 %v1034_v10, %v3221_v38  ;;  %v972_v19 = vmul.f32 %v970_v30, %v3197_v21 }
 0x455   : > { %v3204_v24 = vpop.permute.xlu1 %1421  ;;  %v3206_v26 = vpop.permute.xlu0 %1367 }
 0x457   : > { %961 = vrot.lane.b32.xlu1 %v957_v27, %s2597_s23  ;;  %907 = vrot.lane.b32.xlu0 %v902_v28, %s2593_s20  ;;  %v1048_v27 = vstv %s3246_s11  ;;  %v3268_v28 = vld [vmem:[#allocation2 + $0xc] sm:$0xff]  ;;  %s3325_s11 = sld [smem:[#allocation8 + $0x29]] }
 0x458   : > { %v1036_v41 = vmul.f32 %v1034_v10, %v3268_v28  ;;  %v1050_v10 = vmul.f32 %v1048_v27, %v3268_v28 }
 0x459   : > { %v3215_v31 = vpop.permute.xlu1 %1435  ;;  %v3217_v32 = vpop.permute.xlu0 %1381 }
 0x45b   : > { %975 = vrot.lane.b32.xlu1 %v971_v35, %s2598_s10  ;;  %921 = vrot.lane.b32.xlu0 %v916_v36, %s2594_s30  ;;  %v1049_v36 = vmul.f32 %v1048_v27, %v3221_v38  ;;  %v710_v27 = vstv %s3316_s5  ;;  %s3386_s5 = sld [smem:[#allocation8 + $0x45]] }
 0x45d   : > { %v3228_v46 = vpop.permute.xlu1 %1457  ;;  %v3230_v48 = vpop.permute.xlu0 %1395 }
 0x45f   : > { %997 = vrot.lane.b32.xlu1 %v993_v51, %s2593_s20  ;;  %935 = vrot.lane.b32.xlu0 %v930_v52, %s2595_s8  ;;  %v994_v51 = vmul.f32 %v992_v45, %v3268_v28  ;;  %v1062_v52 = vstv %s3257_s26  ;;  %v1084_v45 = vstv %s3270_s29  ;;  %s3334_s26 = sld [smem:[#allocation8 + $0x2b]]  ;;  %s3343_s29 = sld [smem:[#allocation8 + $0x2c]] }
 0x461   : > { %v3239_v56 = vpop.permute.xlu1 %1471  ;;  %v3241_v58 = vpop.permute.xlu0 %1409 }
 0x463   : > { %1011 = vrot.lane.b32.xlu1 %v1007_v60, %s2594_s30  ;;  %949 = vrot.lane.b32.xlu0 %v944_v63, %s2596_s14  ;;  %v1063_v63 = vmul.f32 %v1062_v52, %v3221_v38 }
 0x465   : > { %v3250_v2 = vpop.permute.xlu1 %1485  ;;  %v3252_v5 = vpop.permute.xlu0 %1423 }
 0x467   : > { %1025 = vrot.lane.b32.xlu1 %v1021_v6, %s2595_s8  ;;  %963 = vrot.lane.b32.xlu0 %v958_v7, %s2597_s23  ;;  %v1008_v6 = vmul.f32 %v1006_v53, %v3268_v28  ;;  %v3291_v7 = vld [vmem:[#allocation2 + $0x5] sm:$0xff]  ;;  %v618_v53 = vstv %s3283_s25  ;;  %s3360_s25 = sld [smem:[#allocation8 + $0x2e]] }
 0x468   : > { %v619_v40 = vmul.f32 %v618_v53, %v2997_v44  ;;  %v1113_v39 = vmul.f32 %v1112_v43, %v3291_v7 }
 0x469   : > { %v3261_v12 = vpop.permute.xlu1 %1499  ;;  %v3263_v14 = vpop.permute.xlu0 %1437 }
 0x46a   : > { %3969 = vst [vmem:[#allocation18_spill] sm:$0xff] %v3263_v14  ;;  %v1204_v14 = vstv %s3353_s9  ;;  %s3418_s9 = sld [smem:[#allocation8 + $0x4a]] }
 0x46b   : > { %1039 = vrot.lane.b32.xlu1 %v1035_v18, %s2596_s14  ;;  %977 = vrot.lane.b32.xlu0 %v972_v19, %s2598_s10 }
 0x46d   : > { %v3274_v22 = vpop.permute.xlu1 %1513  ;;  %v3276_v35 = vpop.permute.xlu0 %1459 }
 0x46e   : > { %3970 = vst [vmem:[#allocation19_spill] sm:$0xff] %v3276_v35  ;;  %v3350_v35 = vld [vmem:[#allocation2 + $0x6] sm:$0xff] }
 0x46f   : > { %1053 = vrot.lane.b32.xlu1 %v1049_v36, %s2597_s23  ;;  %999 = vrot.lane.b32.xlu0 %v994_v51, %s2593_s20  ;;  %v1085_v36 = vmul.f32 %v1084_v45, %v3291_v7  ;;  %v1022_v51 = vmul.f32 %v1020_v1, %v3268_v28 }
 0x471   : > { %v630_v30 = vpop.permute.xlu1 %629  ;;  %v3287_v60 = vpop.permute.xlu0 %1473 }
 0x472   : > { %3971 = vst [vmem:[#allocation20_spill] sm:$0xff] %v3287_v60  ;;  %v635_v1 = vadd.f32 %v630_v30, %v619_v40  ;;  %v1127_v30 = vmul.f32 %v1126_v13, %v3291_v7  ;;  %v3332_v60 = vld [vmem:[#allocation2 + $0xd] sm:$0xff] }
 0x473   : > { %1067 = vrot.lane.b32.xlu1 %v1063_v63, %s2598_s10  ;;  %1013 = vrot.lane.b32.xlu0 %v1008_v6, %s2594_s30  ;;  %v1099_v6 = vmul.f32 %v1098_v34, %v3291_v7 }
 0x475   : > { %v644_v18 = vpop.permute.xlu1 %643  ;;  %v3298_v19 = vpop.permute.xlu0 %1487 }
 0x476   : > { %3972 = vst [vmem:[#allocation21_spill] sm:$0xff] %v3298_v19  ;;  %v649_v44 = vadd.f32 %v644_v18, %v635_v1  ;;  %v1140_v19 = vstv %s3314_s22  ;;  %s3377_s22 = sld [smem:[#allocation8 + $0x30]] }
 0x477   : > { %1089 = vrot.lane.b32.xlu1 %v1085_v36, %s2593_s20  ;;  %1027 = vrot.lane.b32.xlu0 %v1022_v51, %s2595_s8  ;;  %v1141_v1 = vmul.f32 %v1140_v19, %v3291_v7 }
 0x479   : > { %v658_v11 = vpop.permute.xlu1 %657  ;;  %v3308_v63 = vpop.permute.xlu0 %1501 }
 0x47a   : > { %3973 = vst [vmem:[#allocation22_spill] sm:$0xff] %v3308_v63 }
 0x47b   : > { %1103 = vrot.lane.b32.xlu1 %v1099_v6, %s2594_s30  ;;  %1041 = vrot.lane.b32.xlu0 %v1036_v41, %s2596_s14  ;;  %v663_v6 = vadd.f32 %v658_v11, %v649_v44  ;;  %v1154_v44 = vstv %s3325_s11  ;;  %s3395_s11 = sld [smem:[#allocation8 + $0x47]] }
 0x47d   : > { %v672_v36 = vpop.permute.xlu1 %671  ;;  %v3320_v51 = vpop.permute.xlu0 %1515 }
 0x47e   : > { %3974 = vst [vmem:[#allocation23_spill] sm:$0xff] %v3320_v51  ;;  %v1064_v51 = vmul.f32 %v1062_v52, %v3268_v28  ;;  %v677_v63 = vadd.f32 %v672_v36, %v663_v6  ;;  %v711_v52 = vmul.f32 %v710_v27, %v3043_v0  ;;  %v1176_v0 = vstv %s3334_s26  ;;  %s3402_s26 = sld [smem:[#allocation8 + $0x48]] }
 0x47f   : > { %1117 = vrot.lane.b32.xlu1 %v1113_v39, %s2595_s8  ;;  %1055 = vrot.lane.b32.xlu0 %v1050_v10, %s2597_s23  ;;  %v1086_v10 = vmul.f32 %v1084_v45, %v3332_v60  ;;  %v620_v45 = vmul.f32 %v618_v53, %v3027_v57 }
 0x481   : > { %v686_v41 = vpop.permute.xlu1 %685  ;;  %v632_v40 = vpop.permute.xlu0 %631 }
 0x482   : > { %v691_v39 = vadd.f32 %v686_v41, %v677_v63  ;;  %v1155_v41 = vmul.f32 %v1154_v44, %v3291_v7 }
 0x483   : > { %1131 = vrot.lane.b32.xlu1 %v1127_v30, %s2596_s14  ;;  %1069 = vrot.lane.b32.xlu0 %v1064_v51, %s2598_s10  ;;  %v1100_v30 = vmul.f32 %v1098_v34, %v3332_v60 }
 0x485   : > { %v700_v11 = vpop.permute.xlu1 %699  ;;  %v646_v18 = vpop.permute.xlu0 %645 }
 0x486   : > { %v705_v36 = vadd.f32 %v700_v11, %v691_v39  ;;  %v636_v39 = vadd.f32 %v632_v40, %v620_v45 }
 0x487   : > { %1145 = vrot.lane.b32.xlu1 %v1141_v1, %s2597_s23  ;;  %1091 = vrot.lane.b32.xlu0 %v1086_v10, %s2593_s20  ;;  %v1177_v10 = vmul.f32 %v1176_v0, %v3350_v35 }
 0x488   : > { %v713_v6 = vadd.f32 %v711_v52, %v705_v36  ;;  %v1114_v52 = vmul.f32 %v1112_v43, %v3332_v60  ;;  %v650_v34 = vadd.f32 %v646_v18, %v636_v39  ;;  %v1190_v36 = vstv %s3343_s29  ;;  %s3411_s29 = sld [smem:[#allocation8 + $0x49]] }
 0x489   : > { %v722_v51 = vpop.permute.xlu1 %721  ;;  %v660_v63 = vpop.permute.xlu0 %659  ;;  %v1191_v40 = vmul.f32 %v1190_v36, %v3350_v35 }
 0x48a   : > { %v664_v57 = vadd.f32 %v660_v63, %v650_v34  ;;  %v727_v43 = vadd.f32 %v722_v51, %v713_v6 }
 0x48b   : > { %1159 = vrot.lane.b32.xlu1 %v1155_v41, %s2598_s10  ;;  %1105 = vrot.lane.b32.xlu0 %v1100_v30, %s2594_s30  ;;  %v1128_v30 = vmul.f32 %v1126_v13, %v3332_v60  ;;  %v1142_v13 = vmul.f32 %v1140_v19, %v3332_v60  ;;  %v1156_v19 = vmul.f32 %v1154_v44, %v3332_v60 }
 0x48d   : > { %v736_v11 = vpop.permute.xlu1 %735  ;;  %v674_v1 = vpop.permute.xlu0 %673 }
 0x48e   : > { %v678_v45 = vadd.f32 %v674_v1, %v664_v57  ;;  %v712_v1 = vmul.f32 %v710_v27, %v3073_v15  ;;  %v1218_v57 = vstv %s3360_s25  ;;  %v1232_v27 = vstv %s3367_s12  ;;  %s3420_s25 = sld [smem:[#allocation8 + $0x15]]  ;;  %s3428_s12 = sld [smem:[#allocation8 + $0x4b]] }
 0x48f   : > { %1181 = vrot.lane.b32.xlu1 %v1177_v10, %s2593_s20  ;;  %1119 = vrot.lane.b32.xlu0 %v1114_v52, %s2595_s8  ;;  %v1205_v10 = vmul.f32 %v1204_v14, %v3350_v35  ;;  %v741_v52 = vadd.f32 %v736_v11, %v727_v43  ;;  %v3384_v11 = vld [vmem:[#allocation2 + $0xe] sm:$0xff] }
 0x491   : > { %v750_v53 = vpop.permute.xlu1 %749  ;;  %v688_v41 = vpop.permute.xlu0 %687 }
 0x492   : > { %v692_v18 = vadd.f32 %v688_v41, %v678_v45  ;;  %v755_v6 = vadd.f32 %v750_v53, %v741_v52  ;;  %v802_v45 = vstv %s3369_s13  ;;  %s3435_s13 = sld [smem:[#allocation8 + $0x4c]] }
 0x493   : > { %1195 = vrot.lane.b32.xlu1 %v1191_v40, %s2594_s30  ;;  %1133 = vrot.lane.b32.xlu0 %v1128_v30, %s2596_s14  ;;  %v1219_v30 = vmul.f32 %v1218_v57, %v3350_v35  ;;  %v803_v44 = vmul.f32 %v802_v45, %v3089_v23 }
 0x495   : > { %v764_v63 = vpop.permute.xlu1 %763  ;;  %v702_v39 = vpop.permute.xlu0 %701 }
 0x496   : > { %v706_v34 = vadd.f32 %v702_v39, %v692_v18  ;;  %v769_v15 = vadd.f32 %v764_v63, %v755_v6  ;;  %v1233_v39 = vmul.f32 %v1232_v27, %v3350_v35 }
 0x497   : > { %1209 = vrot.lane.b32.xlu1 %v1205_v10, %s2595_s8  ;;  %1147 = vrot.lane.b32.xlu0 %v1142_v13, %s2597_s23  ;;  %v1178_v10 = vmul.f32 %v1176_v0, %v3384_v11  ;;  %v1246_v13 = vstv %s3377_s22  ;;  %s3446_s22 = sld [smem:[#allocation8 + $0x4e]] }
 0x498   : > { %v714_v51 = vadd.f32 %v712_v1, %v706_v34  ;;  %v1247_v6 = vmul.f32 %v1246_v13, %v3350_v35 }
 0x499   : > { %v778_v41 = vpop.permute.xlu1 %777  ;;  %v724_v40 = vpop.permute.xlu0 %723 }
 0x49a   : > { %v783_v53 = vadd.f32 %v778_v41, %v769_v15  ;;  %v1192_v41 = vmul.f32 %v1190_v36, %v3384_v11  ;;  %v728_v23 = vadd.f32 %v724_v40, %v714_v51 }
 0x49b   : > { %1223 = vrot.lane.b32.xlu1 %v1219_v30, %s2596_s14  ;;  %1161 = vrot.lane.b32.xlu0 %v1156_v19, %s2598_s10  ;;  %v1522_v30 = vstv %s3386_s5  ;;  %s3453_s5 = sld [smem:[#allocation8 + $0x4f]] }
 0x49c   : > { %v1523_v15 = vmul.f32 %v1522_v30, %v2960_v20 }
 0x49d   : > { %v792_v43 = vpop.permute.xlu1 %791  ;;  %v738_v18 = vpop.permute.xlu0 %737 }
 0x49e   : > { %v797_v63 = vadd.f32 %v792_v43, %v783_v53  ;;  %v1206_v53 = vmul.f32 %v1204_v14, %v3384_v11  ;;  %v742_v43 = vadd.f32 %v738_v18, %v728_v23  ;;  %v1558_v14 = vstv %s3402_s26  ;;  %s3469_s26 = sld [smem:[#allocation8 + $0x51]] }
 0x49f   : > { %1237 = vrot.lane.b32.xlu1 %v1233_v39, %s2597_s23  ;;  %1183 = vrot.lane.b32.xlu0 %v1178_v10, %s2593_s20  ;;  %v3408_v39 = vld [vmem:[#allocation2 + $0x1b] sm:$0xff]  ;;  %v1544_v10 = vstv %s3395_s11  ;;  %s3462_s11 = sld [smem:[#allocation8 + $0x50]] }
 0x4a0   : > { %v805_v1 = vadd.f32 %v803_v44, %v797_v63  ;;  %v1545_v40 = vmul.f32 %v1544_v10, %v3408_v39  ;;  %v1220_v63 = vmul.f32 %v1218_v57, %v3384_v11  ;;  %v1559_v23 = vmul.f32 %v1558_v14, %v3408_v39 }
 0x4a1   : > { %v814_v52 = vpop.permute.xlu1 %813  ;;  %v752_v34 = vpop.permute.xlu0 %751  ;;  %v1234_v57 = vmul.f32 %v1232_v27, %v3384_v11  ;;  %v1248_v27 = vmul.f32 %v1246_v13, %v3384_v11 }
 0x4a2   : > { %v756_v36 = vadd.f32 %v752_v34, %v742_v43  ;;  %v819_v18 = vadd.f32 %v814_v52, %v805_v1  ;;  %v1572_v43 = vstv %s3411_s29  ;;  %s3473_s29 = sld [smem:[#allocation8 + $0x1c]] }
 0x4a3   : > { %1251 = vrot.lane.b32.xlu1 %v1247_v6, %s2598_s10  ;;  %1197 = vrot.lane.b32.xlu0 %v1192_v41, %s2594_s30 }
 0x4a5   : > { %v828_v0 = vpop.permute.xlu1 %827  ;;  %v766_v19 = vpop.permute.xlu0 %765 }
 0x4a6   : > { %v770_v20 = vadd.f32 %v766_v19, %v756_v36  ;;  %v804_v19 = vmul.f32 %v802_v45, %v3127_v47  ;;  %v1586_v45 = vstv %s3418_s9  ;;  %s3479_s9 = sld [smem:[#allocation8 + $0x52]] }
 0x4a7   : > { %1527 = vrot.lane.b32.xlu1 %v1523_v15, %s2598_s10  ;;  %1211 = vrot.lane.b32.xlu0 %v1206_v53, %s2595_s8  ;;  %v833_v15 = vadd.f32 %v828_v0, %v819_v18  ;;  %v894_v0 = vstv %s3420_s25  ;;  %v1587_v18 = vmul.f32 %v1586_v45, %v3408_v39  ;;  %s3486_s25 = sld [smem:[#allocation8 + $0x53]] }
 0x4a9   : > { %v842_v44 = vpop.permute.xlu1 %841  ;;  %v780_v51 = vpop.permute.xlu0 %779 }
 0x4aa   : > { %v784_v6 = vadd.f32 %v780_v51, %v770_v20  ;;  %v847_v1 = vadd.f32 %v842_v44, %v833_v15 }
 0x4ab   : > { %1549 = vrot.lane.b32.xlu1 %v1545_v40, %s2593_s20  ;;  %1225 = vrot.lane.b32.xlu0 %v1220_v63, %s2596_s14  ;;  %v1573_v40 = vmul.f32 %v1572_v43, %v3408_v39 }
 0x4ad   : > { %v856_v34 = vpop.permute.xlu1 %855  ;;  %v794_v41 = vpop.permute.xlu0 %793 }
 0x4ae   : > { %v798_v53 = vadd.f32 %v794_v41, %v784_v6  ;;  %v861_v47 = vadd.f32 %v856_v34, %v847_v1  ;;  %v1524_v6 = vmul.f32 %v1522_v30, %v2989_v37  ;;  %v895_v41 = vmul.f32 %v894_v0, %v3151_v59 }
 0x4af   : > { %1563 = vrot.lane.b32.xlu1 %v1559_v23, %s2594_s30  ;;  %1239 = vrot.lane.b32.xlu0 %v1234_v57, %s2597_s23  ;;  %v1600_v34 = vstv %s3428_s12  ;;  %v3444_v23 = vld [vmem:[#allocation2 + $0x23] sm:$0xff]  ;;  %v1614_v30 = vstv %s3435_s13  ;;  %s3497_s12 = sld [smem:[#allocation8 + $0x55]]  ;;  %s3504_s13 = sld [smem:[#allocation8 + $0x56]] }
 0x4b0   : > { %v806_v52 = vadd.f32 %v804_v19, %v798_v53  ;;  %v1601_v53 = vmul.f32 %v1600_v34, %v3408_v39  ;;  %v1546_v37 = vmul.f32 %v1544_v10, %v3444_v23 }
 0x4b1   : > { %v870_v36 = vpop.permute.xlu1 %869  ;;  %v816_v51 = vpop.permute.xlu0 %815 }
 0x4b2   : > { %v875_v63 = vadd.f32 %v870_v36, %v861_v47  ;;  %v820_v59 = vadd.f32 %v816_v51, %v806_v52 }
 0x4b3   : > { %1577 = vrot.lane.b32.xlu1 %v1573_v40, %s2595_s8  ;;  %1253 = vrot.lane.b32.xlu0 %v1248_v27, %s2598_s10  ;;  %v1615_v40 = vmul.f32 %v1614_v30, %v3408_v39  ;;  %v1560_v27 = vmul.f32 %v1558_v14, %v3444_v23  ;;  %v1650_v14 = vstv %s3453_s5  ;;  %s3520_s5 = sld [smem:[#allocation8 + $0x58]] }
 0x4b5   : > { %v884_v20 = vpop.permute.xlu1 %883  ;;  %v830_v44 = vpop.permute.xlu0 %829 }
 0x4b6   : > { %v889_v13 = vadd.f32 %v884_v20, %v875_v63  ;;  %v834_v47 = vadd.f32 %v830_v44, %v820_v59  ;;  %v3459_v63 = vld [vmem:[#allocation2 + $0x1c] sm:$0xff]  ;;  %v1636_v20 = vstv %s3446_s22  ;;  %v896_v59 = vmul.f32 %v894_v0, %v3197_v21  ;;  %s3513_s22 = sld [smem:[#allocation8 + $0x57]] }
 0x4b7   : > { %1591 = vrot.lane.b32.xlu1 %v1587_v18, %s2596_s14  ;;  %1529 = vrot.lane.b32.xlu0 %v1524_v6, %s2598_s10  ;;  %v1637_v51 = vmul.f32 %v1636_v20, %v3459_v63  ;;  %v1574_v6 = vmul.f32 %v1572_v43, %v3444_v23  ;;  %v1588_v43 = vmul.f32 %v1586_v45, %v3444_v23  ;;  %v1678_v0 = vstv %s3469_s26  ;;  %s3530_s26 = sld [smem:[#allocation8 + $0x59]] }
 0x4b8   : > { %v897_v57 = vadd.f32 %v895_v41, %v889_v13  ;;  %v1602_v45 = vmul.f32 %v1600_v34, %v3444_v23 }
 0x4b9   : > { %v906_v19 = vpop.permute.xlu1 %905  ;;  %v844_v15 = vpop.permute.xlu0 %843 }
 0x4ba   : > { %v848_v10 = vadd.f32 %v844_v15, %v834_v47  ;;  %v911_v44 = vadd.f32 %v906_v19, %v897_v57 }
 0x4bb   : > { %1605 = vrot.lane.b32.xlu1 %v1601_v53, %s2597_s23  ;;  %1551 = vrot.lane.b32.xlu0 %v1546_v37, %s2593_s20  ;;  %v1651_v37 = vmul.f32 %v1650_v14, %v3459_v63 }
 0x4bd   : > { %v920_v1 = vpop.permute.xlu1 %919  ;;  %v858_v36 = vpop.permute.xlu0 %857 }
 0x4be   : > { %v862_v41 = vadd.f32 %v858_v36, %v848_v10  ;;  %v925_v36 = vadd.f32 %v920_v1, %v911_v44  ;;  %v986_v1 = vstv %s3473_s29  ;;  %v1616_v44 = vmul.f32 %v1614_v30, %v3444_v23  ;;  %s3537_s29 = sld [smem:[#allocation8 + $0x5a]] }
 0x4bf   : > { %1619 = vrot.lane.b32.xlu1 %v1615_v40, %s2598_s10  ;;  %1565 = vrot.lane.b32.xlu0 %v1560_v27, %s2594_s30  ;;  %v1664_v27 = vstv %s3462_s11  ;;  %s3524_s11 = sld [smem:[#allocation8 + $0x23]] }
 0x4c1   : > { %v934_v18 = vpop.permute.xlu1 %933  ;;  %v872_v52 = vpop.permute.xlu0 %871 }
 0x4c2   : > { %v876_v13 = vadd.f32 %v872_v52, %v862_v41  ;;  %v939_v57 = vadd.f32 %v934_v18, %v925_v36  ;;  %v1665_v52 = vmul.f32 %v1664_v27, %v3459_v63  ;;  %v1679_v41 = vmul.f32 %v1678_v0, %v3459_v63 }
 0x4c3   : > { %1641 = vrot.lane.b32.xlu1 %v1637_v51, %s2593_s20  ;;  %1579 = vrot.lane.b32.xlu0 %v1574_v6, %s2595_s8 }
 0x4c5   : > { %v948_v15 = vpop.permute.xlu1 %947  ;;  %v886_v53 = vpop.permute.xlu0 %885 }
 0x4c6   : > { %v890_v40 = vadd.f32 %v886_v53, %v876_v13  ;;  %v953_v21 = vadd.f32 %v948_v15, %v939_v57  ;;  %v987_v13 = vmul.f32 %v986_v1, %v3221_v38  ;;  %v1692_v15 = vstv %s3479_s9  ;;  %v3495_v53 = vld [vmem:[#allocation2 + $0x24] sm:$0xff]  ;;  %s3548_s9 = sld [smem:[#allocation8 + $0x5c]] }
 0x4c7   : > { %1655 = vrot.lane.b32.xlu1 %v1651_v37, %s2594_s30  ;;  %1593 = vrot.lane.b32.xlu0 %v1588_v43, %s2596_s14  ;;  %v1693_v36 = vmul.f32 %v1692_v15, %v3459_v63  ;;  %v1638_v30 = vmul.f32 %v1636_v20, %v3495_v53 }
 0x4c8   : > { %v898_v19 = vadd.f32 %v896_v59, %v890_v40  ;;  %v1706_v40 = vstv %s3486_s25  ;;  %s3555_s25 = sld [smem:[#allocation8 + $0x5d]] }
 0x4c9   : > { %v962_v47 = vpop.permute.xlu1 %961  ;;  %v908_v10 = vpop.permute.xlu0 %907 }
 0x4ca   : > { %v967_v51 = vadd.f32 %v962_v47, %v953_v21  ;;  %v912_v38 = vadd.f32 %v908_v10, %v898_v19 }
 0x4cb   : > { %1669 = vrot.lane.b32.xlu1 %v1665_v52, %s2595_s8  ;;  %1607 = vrot.lane.b32.xlu0 %v1602_v45, %s2597_s23  ;;  %v1707_v52 = vmul.f32 %v1706_v40, %v3459_v63  ;;  %v1652_v45 = vmul.f32 %v1650_v14, %v3495_v53  ;;  %v1742_v14 = vstv %s3504_s13  ;;  %s3571_s13 = sld [smem:[#allocation8 + $0x5f]] }
 0x4cd   : > { %v976_v6 = vpop.permute.xlu1 %975  ;;  %v922_v18 = vpop.permute.xlu0 %921 }
 0x4ce   : > { %v981_v34 = vadd.f32 %v976_v6, %v967_v51  ;;  %v926_v21 = vadd.f32 %v922_v18, %v912_v38  ;;  %v3510_v51 = vld [vmem:[#allocation2 + $0x1d] sm:$0xff]  ;;  %v1728_v6 = vstv %s3497_s12  ;;  %s3564_s12 = sld [smem:[#allocation8 + $0x5e]] }
 0x4cf   : > { %1683 = vrot.lane.b32.xlu1 %v1679_v41, %s2596_s14  ;;  %1621 = vrot.lane.b32.xlu0 %v1616_v44, %s2598_s10  ;;  %v1729_v10 = vmul.f32 %v1728_v6, %v3510_v51  ;;  %v1666_v44 = vmul.f32 %v1664_v27, %v3495_v53  ;;  %v1680_v27 = vmul.f32 %v1678_v0, %v3495_v53 }
 0x4d0   : > { %v989_v37 = vadd.f32 %v987_v13, %v981_v34  ;;  %v1694_v0 = vmul.f32 %v1692_v15, %v3495_v53 }
 0x4d1   : > { %v998_v43 = vpop.permute.xlu1 %997  ;;  %v936_v59 = vpop.permute.xlu0 %935 }
 0x4d2   : > { %v940_v20 = vadd.f32 %v936_v59, %v926_v21  ;;  %v1003_v18 = vadd.f32 %v998_v43, %v989_v37 }
 0x4d3   : > { %1697 = vrot.lane.b32.xlu1 %v1693_v36, %s2597_s23  ;;  %1643 = vrot.lane.b32.xlu0 %v1638_v30, %s2593_s20  ;;  %v1743_v30 = vmul.f32 %v1742_v14, %v3510_v51 }
 0x4d5   : > { %v1012_v57 = vpop.permute.xlu1 %1011  ;;  %v950_v47 = vpop.permute.xlu0 %949 }
 0x4d6   : > { %v954_v13 = vadd.f32 %v950_v47, %v940_v20  ;;  %v1017_v38 = vadd.f32 %v1012_v57, %v1003_v18  ;;  %v988_v47 = vmul.f32 %v986_v1, %v3268_v28  ;;  %v1770_v28 = vstv %s3520_s5  ;;  %s3581_s5 = sld [smem:[#allocation8 + $0x60]] }
 0x4d7   : > { %1711 = vrot.lane.b32.xlu1 %v1707_v52, %s2598_s10  ;;  %1657 = vrot.lane.b32.xlu0 %v1652_v45, %s2594_s30  ;;  %v1756_v45 = vstv %s3513_s22  ;;  %v1078_v1 = vstv %s3524_s11  ;;  %v1708_v18 = vmul.f32 %v1706_v40, %v3495_v53  ;;  %s3575_s22 = sld [smem:[#allocation8 + $0x2a]]  ;;  %s3588_s11 = sld [smem:[#allocation8 + $0x61]] }
 0x4d8   : > { %v1079_v15 = vmul.f32 %v1078_v1, %v3291_v7 }
 0x4d9   : > { %v1026_v41 = vpop.permute.xlu1 %1025  ;;  %v964_v19 = vpop.permute.xlu0 %963 }
 0x4da   : > { %v968_v34 = vadd.f32 %v964_v19, %v954_v13  ;;  %v1031_v37 = vadd.f32 %v1026_v41, %v1017_v38  ;;  %v1757_v19 = vmul.f32 %v1756_v45, %v3510_v51  ;;  %v1771_v13 = vmul.f32 %v1770_v28, %v3510_v51 }
 0x4db   : > { %1733 = vrot.lane.b32.xlu1 %v1729_v10, %s2593_s20  ;;  %1671 = vrot.lane.b32.xlu0 %v1666_v44, %s2595_s8 }
 0x4dd   : > { %v1040_v59 = vpop.permute.xlu1 %1039  ;;  %v978_v36 = vpop.permute.xlu0 %977 }
 0x4de   : > { %v982_v52 = vadd.f32 %v978_v36, %v968_v34  ;;  %v1045_v57 = vadd.f32 %v1040_v59, %v1031_v37  ;;  %v1784_v59 = vstv %s3530_s26  ;;  %v3546_v36 = vld [vmem:[#allocation2 + $0x25] sm:$0xff]  ;;  %s3697_s26 = sld [smem:[#allocation8 + $0x5b]] }
 0x4df   : > { %1747 = vrot.lane.b32.xlu1 %v1743_v30, %s2594_s30  ;;  %1685 = vrot.lane.b32.xlu0 %v1680_v27, %s2596_s14  ;;  %v1730_v40 = vmul.f32 %v1728_v6, %v3546_v36 }
 0x4e0   : > { %v990_v43 = vadd.f32 %v988_v47, %v982_v52  ;;  %v1785_v47 = vmul.f32 %v1784_v59, %v3510_v51  ;;  %v1798_v52 = vstv %s3537_s29  ;;  %s2600_s29 = smov 16  }
 0x4e1   : > { %v1054_v21 = vpop.permute.xlu1 %1053  ;;  %v1000_v20 = vpop.permute.xlu0 %999 }
 0x4e2   : > { %v1059_v10 = vadd.f32 %v1054_v21, %v1045_v57  ;;  %v1004_v7 = vadd.f32 %v1000_v20, %v990_v43 }
 0x4e3   : > { %1761 = vrot.lane.b32.xlu1 %v1757_v19, %s2595_s8  ;;  %1699 = vrot.lane.b32.xlu0 %v1694_v0, %s2597_s23  ;;  %v1799_v19 = vmul.f32 %v1798_v52, %v3510_v51  ;;  %v1744_v0 = vmul.f32 %v1742_v14, %v3546_v36  ;;  %v1834_v14 = vstv %s3555_s25  ;;  %s2602_s25 = smov 64  }
 0x4e5   : > { %v1068_v44 = vpop.permute.xlu1 %1067  ;;  %v1014_v41 = vpop.permute.xlu0 %1013 }
 0x4e6   : > { %v1073_v34 = vadd.f32 %v1068_v44, %v1059_v10  ;;  %v1018_v57 = vadd.f32 %v1014_v41, %v1004_v7  ;;  %v3561_v10 = vld [vmem:[#allocation2 + $0x1e] sm:$0xff]  ;;  %v1820_v44 = vstv %s3548_s9  ;;  %s2601_s9 = smov 32  }
 0x4e7   : > { %1775 = vrot.lane.b32.xlu1 %v1771_v13, %s2596_s14  ;;  %1713 = vrot.lane.b32.xlu0 %v1708_v18, %s2598_s10  ;;  %v1821_v20 = vmul.f32 %v1820_v44, %v3561_v10  ;;  %v1758_v18 = vmul.f32 %v1756_v45, %v3546_v36  ;;  %v1772_v45 = vmul.f32 %v1770_v28, %v3546_v36 }
 0x4e8   : > { %v1081_v30 = vadd.f32 %v1079_v15, %v1073_v34  ;;  %v1786_v28 = vmul.f32 %v1784_v59, %v3546_v36 }
 0x4e9   : > { %v1090_v27 = vpop.permute.xlu1 %1089  ;;  %v1028_v38 = vpop.permute.xlu0 %1027 }
 0x4ea   : > { %v1032_v6 = vadd.f32 %v1028_v38, %v1018_v57  ;;  %v1095_v41 = vadd.f32 %v1090_v27, %v1081_v30 }
 0x4eb   : > { %1789 = vrot.lane.b32.xlu1 %v1785_v47, %s2597_s23  ;;  %1735 = vrot.lane.b32.xlu0 %v1730_v40, %s2593_s20  ;;  %v1835_v40 = vmul.f32 %v1834_v14, %v3561_v10 }
 0x4ed   : > { %v1104_v37 = vpop.permute.xlu1 %1103  ;;  %v1042_v21 = vpop.permute.xlu0 %1041 }
 0x4ee   : > { %v1046_v34 = vadd.f32 %v1042_v21, %v1032_v6  ;;  %v1109_v7 = vadd.f32 %v1104_v37, %v1095_v41  ;;  %v1080_v21 = vmul.f32 %v1078_v1, %v3332_v60  ;;  %v1862_v60 = vstv %s3571_s13  ;;  %s2604_s13 = smov 80  }
 0x4ef   : > { %1803 = vrot.lane.b32.xlu1 %v1799_v19, %s2598_s10  ;;  %1749 = vrot.lane.b32.xlu0 %v1744_v0, %s2594_s30  ;;  %v1848_v0 = vstv %s3564_s12  ;;  %v1170_v1 = vstv %s3575_s22  ;;  %v1800_v41 = vmul.f32 %v1798_v52, %v3546_v36  ;;  %s2603_s12 = smov 48   ;;  %s2605_s22 = smov 96  }
 0x4f1   : > { %v1118_v13 = vpop.permute.xlu1 %1117  ;;  %v1056_v43 = vpop.permute.xlu0 %1055 }
 0x4f2   : > { %v1060_v15 = vadd.f32 %v1056_v43, %v1046_v34  ;;  %v1123_v30 = vadd.f32 %v1118_v13, %v1109_v7  ;;  %v1849_v43 = vmul.f32 %v1848_v0, %v3561_v10  ;;  %v1863_v34 = vmul.f32 %v1862_v60, %v3561_v10 }
 0x4f3   : > { %1825 = vrot.lane.b32.xlu1 %v1821_v20, %s2593_s20  ;;  %1763 = vrot.lane.b32.xlu0 %v1758_v18, %s2595_s8 }
 0x4f5   : > { %v1132_v38 = vpop.permute.xlu1 %1131  ;;  %v1070_v47 = vpop.permute.xlu0 %1069 }
 0x4f6   : > { %v1074_v19 = vadd.f32 %v1070_v47, %v1060_v15  ;;  %v1137_v37 = vadd.f32 %v1132_v38, %v1123_v30  ;;  %v1171_v15 = vmul.f32 %v1170_v1, %v3350_v35  ;;  %v1876_v38 = vstv %s3581_s5  ;;  %v3597_v47 = vld [vmem:[#allocation2 + $0x26] sm:$0xff]  ;;  %s2606_s5 = smov 112  }
 0x4f7   : > { %1839 = vrot.lane.b32.xlu1 %v1835_v40, %s2594_s30  ;;  %1777 = vrot.lane.b32.xlu0 %v1772_v45, %s2596_s14  ;;  %v1890_v30 = vstv %s3588_s11  ;;  %s2337_s11 = sshll.u32 %s2655_s19, 9  ;;  %s2119_s19 = scalar_lea.sflag [#allocation6], %s2761_s6 }
 0x4f8   : > { %v1082_v27 = vadd.f32 %v1080_v21, %v1074_v19  ;;  %v1877_v21 = vmul.f32 %v1876_v38, %v3561_v10  ;;  %v1822_v19 = vmul.f32 %v1820_v44, %v3597_v47 }
 0x4f9   : > { %v1146_v57 = vpop.permute.xlu1 %1145  ;;  %v1092_v6 = vpop.permute.xlu0 %1091 }
 0x4fa   : > { %v1151_v20 = vadd.f32 %v1146_v57, %v1137_v37  ;;  %v1096_v35 = vadd.f32 %v1092_v6, %v1082_v27 }
 0x4fb   : > { %1853 = vrot.lane.b32.xlu1 %v1849_v43, %s2595_s8  ;;  %1791 = vrot.lane.b32.xlu0 %v1786_v28, %s2597_s23  ;;  %v1891_v43 = vmul.f32 %v1890_v30, %v3561_v10  ;;  %v1836_v28 = vmul.f32 %v1834_v14, %v3597_v47 }
 0x4fd   : > { %v1160_v13 = vpop.permute.xlu1 %1159  ;;  %v1106_v18 = vpop.permute.xlu0 %1105 }
 0x4fe   : > { %v1165_v59 = vadd.f32 %v1160_v13, %v1151_v20  ;;  %v1110_v37 = vadd.f32 %v1106_v18, %v1096_v35  ;;  %v1864_v18 = vmul.f32 %v1862_v60, %v3597_v47  ;;  %v1892_v60 = vmul.f32 %v1890_v30, %v3597_v47 }
 0x4ff   : > { %1867 = vrot.lane.b32.xlu1 %v1863_v34, %s2596_s14  ;;  %1805 = vrot.lane.b32.xlu0 %v1800_v41, %s2598_s10  ;;  %v1850_v34 = vmul.f32 %v1848_v0, %v3597_v47 }
 0x500   : > { %v1173_v40 = vadd.f32 %v1171_v15, %v1165_v59 }
 0x501   : > { %v1182_v45 = vpop.permute.xlu1 %1181  ;;  %v1120_v7 = vpop.permute.xlu0 %1119 }
 0x502   : > { %v1124_v20 = vadd.f32 %v1120_v7, %v1110_v37  ;;  %v1187_v27 = vadd.f32 %v1182_v45, %v1173_v40 }
 0x503   : > { %1881 = vrot.lane.b32.xlu1 %v1877_v21, %s2597_s23  ;;  %1827 = vrot.lane.b32.xlu0 %v1822_v19, %s2593_s20  ;;  %s3612_s20 = sld [smem:[#allocation8 + $0x31]]  ;;  %v1172_v21 = vmul.f32 %v1170_v1, %v3384_v11 }
 0x505   : > { %v1196_v52 = vpop.permute.xlu1 %1195  ;;  %v1134_v57 = vpop.permute.xlu0 %1133 }
 0x506   : > { %v1138_v41 = vadd.f32 %v1134_v57, %v1124_v20  ;;  %v1201_v59 = vadd.f32 %v1196_v52, %v1187_v27  ;;  %v2455_v52 = vld [vmem:[#allocation2 + $0x18] sm:$0xff] }
 0x507   : > { %1895 = vrot.lane.b32.xlu1 %v1891_v43, %s2598_s10  ;;  %1841 = vrot.lane.b32.xlu0 %v1836_v28, %s2594_s30  ;;  %v1878_v43 = vmul.f32 %v1876_v38, %v3597_v47  ;;  %s3622_s30 = sld [smem:[#allocation8 + $0x38]] }
 0x509   : > { %v1210_v13 = vpop.permute.xlu1 %1209  ;;  %v1148_v44 = vpop.permute.xlu0 %1147  ;;  %v1262_v40 = vstv %s3612_s20  ;;  %s229_s20 = scalar_lea.vmem [#allocation9], %s2225_s7 }
 0x50a   : > { %v1152_v6 = vadd.f32 %v1148_v44, %v1138_v41  ;;  %v1215_v19 = vadd.f32 %v1210_v13, %v1201_v59  ;;  %v1263_v11 = vmul.f32 %v2455_v52, %v1262_v40 }
 0x50b   : > { %1855 = vrot.lane.b32.xlu0 %v1850_v34, %s2595_s8  ;;  %s3639_s8 = sld [smem:[#allocation8 + $0x3f]] }
 0x50d   : > { %v1224_v15 = vpop.permute.xlu1 %1223  ;;  %v1162_v14 = vpop.permute.xlu0 %1161 }
 0x50e   : > { %v1166_v7 = vadd.f32 %v1162_v14, %v1152_v6  ;;  %v1229_v28 = vadd.f32 %v1224_v15, %v1215_v19 }
 0x50f   : > { %1869 = vrot.lane.b32.xlu0 %v1864_v18, %s2596_s14  ;;  %s3660_s14 = sld [smem:[#allocation8 + $0x46]] }
 0x510   : > { %v1174_v0 = vadd.f32 %v1172_v21, %v1166_v7  ;;  %v1354_v21 = vstv %s3622_s30  ;;  %s2132_s30 = sshll.u32 %s229_s20, 4  ;;  %s3888_s30 = int_to_ptr.vmem [resolvable:$true] %s2132_s30 }
 0x511   : > { %v1238_v35 = vpop.permute.xlu1 %1237  ;;  %v1184_v57 = vpop.permute.xlu0 %1183  ;;  %s2506_s7 = scalar_lea.vmem %s3888_s30, 512 }
 0x512   : > { %v1243_v45 = vadd.f32 %v1238_v35, %v1229_v28  ;;  %v1188_v41 = vadd.f32 %v1184_v57, %v1174_v0  ;;  %p2507_p5 = scmp.ne.s32.totalorder %s3888_s30, %s2506_s7 }
 0x513   : > { %1883 = vrot.lane.b32.xlu0 %v1878_v43, %s2597_s23  ;;  %s3676_s23 = sld [smem:[#allocation8 + $0x4d]] }
 0x514   : > { %p2508_p8 = pnand %p2507_p5, %p4022_p12 }
 0x515   : > { %v1252_v37 = vpop.permute.xlu1 %1251  ;;  %v1198_v20 = vpop.permute.xlu0 %1197 }
 0x516   : > { %v1257_v1 = vadd.f32 %v1252_v37, %v1243_v45  ;;  %v1202_v14 = vadd.f32 %v1198_v20, %v1188_v41  ;;  %v2457_v37 = vld [vmem:[#allocation2 + $0x20] sm:$0xff]  ;;  %p2509_p9 = pneg %p2508_p8 }
 0x517   : > { %1897 = vrot.lane.b32.xlu0 %v1892_v60, %s2598_s10  ;;  %v1264_v20 = vmul.f32 %v2457_v37, %v1262_v40  ;;  %s3690_s10 = sld [smem:[#allocation8 + $0x54]] }
 0x518   : > { %v1265_v13 = vadd.f32 %v1263_v11, %v1257_v1 }
 0x519   : > { %v3624_v44 = vpop.permute.xlu1 %1527  ;;  %v1212_v38 = vpop.permute.xlu0 %1211 }
 0x51a   : > { %v1279_v34 = vadd.f32 %v3096_v25, %v1265_v13  ;;  %v1216_v59 = vadd.f32 %v1212_v38, %v1202_v14  ;;  %v2456_v25 = vld [vmem:[#allocation2 + $0x19] sm:$0xff] }
 0x51b   : > { %v1355_v0 = vmul.f32 %v2456_v25, %v1354_v21 }
 0x51c   : > { %v1293_v27 = vadd.f32 %v3105_v29, %v1279_v34 }
 0x51d   : > { %v3628_v6 = vpop.permute.xlu1 %1549  ;;  %v1226_v30 = vpop.permute.xlu0 %1225 }
 0x51e   : > { %v1307_v15 = vadd.f32 %v3114_v33, %v1293_v27  ;;  %v1230_v43 = vadd.f32 %v1226_v30, %v1216_v59 }
 0x520   : > { %v1321_v18 = vadd.f32 %v3123_v42, %v1307_v15 }
 0x521   : > { %v3633_v7 = vpop.permute.xlu1 %1563  ;;  %v1240_v19 = vpop.permute.xlu0 %1239 }
 0x522   : > { %v1335_v35 = vadd.f32 %v3134_v49, %v1321_v18  ;;  %v1244_v57 = vadd.f32 %v1240_v19, %v1230_v43  ;;  %v2459_v19 = vld [vmem:[#allocation2 + $0x21] sm:$0xff] }
 0x524   : > { %v1349_v29 = vadd.f32 %v3145_v54, %v1335_v35  ;;  %v1356_v35 = vmul.f32 %v2459_v19, %v1354_v21 }
 0x525   : > { %v3637_v28 = vpop.permute.xlu1 %1577  ;;  %v1254_v45 = vpop.permute.xlu0 %1253 }
 0x526   : > { %v1357_v33 = vadd.f32 %v1355_v0, %v1349_v29  ;;  %v1258_v42 = vadd.f32 %v1254_v45, %v1244_v57  ;;  %v1538_v45 = vstv %s3660_s14 }
 0x528   : > { %v1371_v60 = vadd.f32 %v3158_v61, %v1357_v33  ;;  %v1266_v52 = vadd.f32 %v1264_v20, %v1258_v42  ;;  %v1446_v61 = vstv %s3639_s8 }
 0x529   : > { %v1592_v49 = vpop.permute.xlu1 %1591  ;;  %v3642_v11 = vpop.permute.xlu0 %1529 }
 0x52a   : > { %v1385_v1 = vadd.f32 %v3169_v3, %v1371_v60  ;;  %v1280_v54 = vadd.f32 %v3136_v50, %v1266_v52  ;;  %v2458_v50 = vld [vmem:[#allocation2 + $0x1a] sm:$0xff] }
 0x52b   : > { %v1447_v18 = vmul.f32 %v2458_v50, %v1446_v61  ;;  %v3975_v52 = vld [vmem:[#allocation18_spill] sm:$0xff] }
 0x52c   : > { %v1399_v13 = vadd.f32 %v3180_v8, %v1385_v1  ;;  %v1294_v38 = vadd.f32 %v3147_v55, %v1280_v54  ;;  %v2460_v1 = vld [vmem:[#allocation2 + $0x22] sm:$0xff] }
 0x52d   : > { %v1606_v34 = vpop.permute.xlu1 %1605  ;;  %v3648_v40 = vpop.permute.xlu0 %1551 }
 0x52e   : > { %v1413_v41 = vadd.f32 %v3191_v16, %v1399_v13  ;;  %v1308_v27 = vadd.f32 %v3160_v62, %v1294_v38 }
 0x530   : > { %v1427_v30 = vadd.f32 %v3204_v24, %v1413_v41  ;;  %v1322_v15 = vadd.f32 %v3171_v4, %v1308_v27  ;;  %v3977_v41 = vld [vmem:[#allocation20_spill] sm:$0xff] }
 0x531   : > { %v1620_v14 = vpop.permute.xlu1 %1619  ;;  %v3655_v3 = vpop.permute.xlu0 %1565 }
 0x532   : > { %v1441_v8 = vadd.f32 %v3215_v31, %v1427_v30  ;;  %v1336_v55 = vadd.f32 %v3182_v9, %v1322_v15 }
 0x534   : > { %v1449_v59 = vadd.f32 %v1447_v18, %v1441_v8  ;;  %v1350_v16 = vadd.f32 %v3193_v17, %v1336_v55  ;;  %v1630_v8 = vstv %s3676_s23  ;;  %v3979_v55 = vld [vmem:[#allocation22_spill] sm:$0xff]  ;;  %s3882_s23 = scalar_lea.hbm %s3937_s4, %s2337_s11 }
 0x535   : > { %v1642_v62 = vpop.permute.xlu1 %1641  ;;  %v1580_v24 = vpop.permute.xlu0 %1579 }
 0x536   : > { %v1463_v4 = vadd.f32 %v3228_v46, %v1449_v59  ;;  %v1358_v43 = vadd.f32 %v1356_v35, %v1350_v16  ;;  %v3980_v16 = vld [vmem:[#allocation23_spill] sm:$0xff] }
 0x538   : > { %v1477_v25 = vadd.f32 %v3239_v56, %v1463_v4  ;;  %v1372_v0 = vadd.f32 %v3206_v26, %v1358_v43  ;;  %v1539_v26 = vmul.f32 %v1538_v45, %v3408_v39  ;;  %v3976_v39 = vld [vmem:[#allocation19_spill] sm:$0xff]  ;;  %v1631_v43 = vmul.f32 %v1630_v8, %v3459_v63 }
 0x539   : > { %v1656_v31 = vpop.permute.xlu1 %1655  ;;  %v1594_v29 = vpop.permute.xlu0 %1593 }
 0x53a   : > { %v1491_v9 = vadd.f32 %v3250_v2, %v1477_v25  ;;  %v1386_v21 = vadd.f32 %v3217_v32, %v1372_v0  ;;  %v1540_v25 = vmul.f32 %v1538_v45, %v3444_v23 }
 0x53c   : > { %v1505_v17 = vadd.f32 %v3261_v12, %v1491_v9  ;;  %v1400_v57 = vadd.f32 %v3230_v48, %v1386_v21  ;;  %v1448_v48 = vmul.f32 %v2460_v1, %v1446_v61  ;;  %v3978_v61 = vld [vmem:[#allocation21_spill] sm:$0xff] }
 0x53d   : > { %v1670_v33 = vpop.permute.xlu1 %1669  ;;  %v1608_v37 = vpop.permute.xlu0 %1607 }
 0x53e   : > { %v1519_v46 = vadd.f32 %v3274_v22, %v1505_v17  ;;  %v1414_v20 = vadd.f32 %v3241_v58, %v1400_v57 }
 0x540   : > { %v1533_v56 = vadd.f32 %v3624_v44, %v1519_v46  ;;  %v1428_v42 = vadd.f32 %v3252_v5, %v1414_v20 }
 0x541   : > { %v1684_v2 = vpop.permute.xlu1 %1683  ;;  %v1622_v60 = vpop.permute.xlu0 %1621 }
 0x542   : > { %v1541_v32 = vadd.f32 %v1539_v26, %v1533_v56  ;;  %v1442_v12 = vadd.f32 %v3975_v52, %v1428_v42  ;;  %v1722_v26 = vstv %s3690_s10  ;;  %s2607_s10 = smov [#allocation9]  }
 0x543   : > { %v1723_v1 = vmul.f32 %v1722_v26, %v3510_v51 }
 0x544   : > { %v1555_v22 = vadd.f32 %v3628_v6, %v1541_v32  ;;  %v1450_v54 = vadd.f32 %v1448_v48, %v1442_v12 }
 0x545   : > { %v1698_v58 = vpop.permute.xlu1 %1697  ;;  %v1644_v13 = vpop.permute.xlu0 %1643 }
 0x546   : > { %v1569_v44 = vadd.f32 %v3633_v7, %v1555_v22  ;;  %v1464_v38 = vadd.f32 %v3976_v39, %v1450_v54 }
 0x548   : > { %v1583_v5 = vadd.f32 %v3637_v28, %v1569_v44  ;;  %v1478_v27 = vadd.f32 %v3977_v41, %v1464_v38 }
 0x549   : > { %v1712_v30 = vpop.permute.xlu1 %1711  ;;  %v1658_v15 = vpop.permute.xlu0 %1657 }
 0x54a   : > { %v1597_v50 = vadd.f32 %v1592_v49, %v1583_v5  ;;  %v1492_v18 = vadd.f32 %v3978_v61, %v1478_v27  ;;  %v1814_v5 = vstv %s3697_s26  ;;  %s2510_s26 = sshll.u32 %s2607_s10, 4  ;;  %s2511_s26 = int_to_ptr.vmem [resolvable:$false] %s2510_s26 }
 0x54b   : > { %v1815_v61 = vmul.f32 %v1814_v5, %v3561_v10  ;;  %p2513_p10 = scmp.lt.s32.totalorder %s3888_s30, %s2511_s26 }
 0x54c   : > { %v1506_v59 = vadd.f32 %v3979_v55, %v1492_v18  ;;  %v1611_v6 = vadd.f32 %v1606_v34, %v1597_v50 }
 0x54d   : > { %v1734_v19 = vpop.permute.xlu1 %1733  ;;  %v1672_v35 = vpop.permute.xlu0 %1671 }
 0x54e   : > { %v1520_v4 = vadd.f32 %v3980_v16, %v1506_v59  ;;  %v1625_v7 = vadd.f32 %v1620_v14, %v1611_v6 }
 0x550   : > { %v1534_v28 = vadd.f32 %v3642_v11, %v1520_v4  ;;  %v1633_v0 = vadd.f32 %v1631_v43, %v1625_v7 }
 0x551   : > { %v1748_v49 = vpop.permute.xlu1 %1747  ;;  %v1686_v9 = vpop.permute.xlu0 %1685 }
 0x552   : > { %v1542_v21 = vadd.f32 %v1540_v25, %v1534_v28  ;;  %v1647_v17 = vadd.f32 %v1642_v62, %v1633_v0 }
 0x554   : > { %v1556_v34 = vadd.f32 %v3648_v40, %v1542_v21  ;;  %v1661_v57 = vadd.f32 %v1656_v31, %v1647_v17  ;;  %v1632_v31 = vmul.f32 %v1630_v8, %v3495_v53  ;;  %v1724_v8 = vmul.f32 %v1722_v26, %v3546_v36 }
 0x555   : > { %v1762_v46 = vpop.permute.xlu1 %1761  ;;  %v1700_v20 = vpop.permute.xlu0 %1699 }
 0x556   : > { %v1570_v14 = vadd.f32 %v3655_v3, %v1556_v34  ;;  %v1675_v63 = vadd.f32 %v1670_v33, %v1661_v57  ;;  %v1816_v57 = vmul.f32 %v1814_v5, %v3597_v47 }
 0x558   : > { %v1584_v56 = vadd.f32 %v1580_v24, %v1570_v14  ;;  %v1689_v11 = vadd.f32 %v1684_v2, %v1675_v63 }
 0x559   : > { %v1776_v23 = vpop.permute.xlu1 %1775  ;;  %v1714_v45 = vpop.permute.xlu0 %1713 }
 0x55a   : > { %v1598_v42 = vadd.f32 %v1594_v29, %v1584_v56  ;;  %v1703_v32 = vadd.f32 %v1698_v58, %v1689_v11 }
 0x55c   : > { %v1612_v52 = vadd.f32 %v1608_v37, %v1598_v42  ;;  %v1717_v12 = vadd.f32 %v1712_v30, %v1703_v32 }
 0x55d   : > { %v1790_v62 = vpop.permute.xlu1 %1789  ;;  %v1736_v48 = vpop.permute.xlu0 %1735 }
 0x55e   : > { %v1626_v40 = vadd.f32 %v1622_v60, %v1612_v52  ;;  %v1725_v22 = vadd.f32 %v1723_v1, %v1717_v12 }
 0x560   : > { %v1634_v3 = vadd.f32 %v1632_v31, %v1626_v40  ;;  %v1739_v24 = vadd.f32 %v1734_v19, %v1725_v22  ;;  %v3981_v22 = vld [vmem:[#allocation13_spill] sm:$0xff] }
 0x561   : > { %v1804_v33 = vpop.permute.xlu1 %1803  ;;  %v1750_v2 = vpop.permute.xlu0 %1749 }
 0x562   : > { %v1648_v54 = vadd.f32 %v1644_v13, %v1634_v3  ;;  %v1753_v29 = vadd.f32 %v1748_v49, %v1739_v24  ;;  %v3982_v24 = vlaneseq }
 0x564   : > { %v1662_v58 = vadd.f32 %v1658_v15, %v1648_v54  ;;  %v1767_v37 = vadd.f32 %v1762_v46, %v1753_v29  ;;  %vm3705_vm9 = vcmp.lt.s32.totalorder %v3982_v24, 16  ;;  %vm3716_vm10 = vcmp.ge.s32.totalorder %v3982_v24, 16 }
 0x565   : > { %v1826_v44 = vpop.permute.xlu1 %1825  ;;  %v1764_v39 = vpop.permute.xlu0 %1763  ;;  %vm3721_vm11 = vcmp.lt.s32.totalorder %v3982_v24, 32  ;;  %vm3730_vm13 = vcmp.ge.s32.totalorder %v3982_v24, 32  ;;  %vm3735_vm14 = vcmp.lt.s32.totalorder %v3982_v24, 48  ;;  %vm3754_vm0 = vcmp.ge.s32.totalorder %v3982_v24, 48 }
 0x566   : > { %v1676_v51 = vadd.f32 %v1672_v35, %v1662_v58  ;;  %v1781_v38 = vadd.f32 %v1776_v23, %v1767_v37  ;;  %vm1948_vm12 = vmand %vm3716_vm10, %vm3721_vm11  ;;  %vm3759_vm1 = vcmp.lt.s32.totalorder %v3982_v24, 64  ;;  %vm3764_vm2 = vcmp.ge.s32.totalorder %v3982_v24, 64 }
 0x567   : > { %vm3950_vm15 = vmand %vm3730_vm13, %vm3735_vm14  ;;  %vm3769_vm3 = vcmp.lt.s32.totalorder %v3982_v24, 80  ;;  %vm3782_vm6 = vcmp.ge.s32.totalorder %v3982_v24, 80  ;;  %vm3787_vm7 = vcmp.lt.s32.totalorder %v3982_v24, 96 }
 0x568   : > { %v1690_v60 = vadd.f32 %v1686_v9, %v1676_v51  ;;  %v1795_v41 = vadd.f32 %v1790_v62, %v1781_v38  ;;  %v2599_v62 = vmov 1966171168   ;;  %vm3952_vm4 = vmand %vm3754_vm0, %vm3759_vm1 }
 0x569   : > { %v1840_v53 = vpop.permute.xlu1 %1839  ;;  %v1778_v27 = vpop.permute.xlu0 %1777  ;;  %vm3951_vm5 = vmand %vm3764_vm2, %vm3769_vm3 }
 0x56a   : > { %v1704_v30 = vadd.f32 %v1700_v20, %v1690_v60  ;;  %v1809_v50 = vadd.f32 %v1804_v33, %v1795_v41  ;;  %vm2001_vm8 = vmand %vm3782_vm6, %vm3787_vm7 }
 0x56b   : > { %vm4013_vm10 = vmand %vm3730_vm13, %vm3735_vm14 }
 0x56c   : > { %v1718_v18 = vadd.f32 %v1714_v45, %v1704_v30  ;;  %v1817_v13 = vadd.f32 %v1815_v61, %v1809_v50 }
 0x56d   : > { %v1854_v55 = vpop.permute.xlu1 %1853  ;;  %v1792_v15 = vpop.permute.xlu0 %1791 }
 0x56e   : > { %v1726_v59 = vadd.f32 %v1724_v8, %v1718_v18  ;;  %v1831_v6 = vadd.f32 %v1826_v44, %v1817_v13 }
 0x570   : > { %v1740_v19 = vadd.f32 %v1736_v48, %v1726_v59  ;;  %v1845_v35 = vadd.f32 %v1840_v53, %v1831_v6  ;;  %v1922_v48 = vunpack.c.l.s4 %v2599_v62 }
 0x571   : > { %v1868_v16 = vpop.permute.xlu1 %1867  ;;  %v1806_v4 = vpop.permute.xlu0 %1805 }
 0x572   : > { %v1754_v7 = vadd.f32 %v1750_v2, %v1740_v19  ;;  %v1859_v43 = vadd.f32 %v1854_v55, %v1845_v35  ;;  %v1923_v31 = vunpack.c.0.s8 %v1922_v48 }
 0x574   : > { %v1768_v28 = vadd.f32 %v1764_v39, %v1754_v7  ;;  %v1873_v25 = vadd.f32 %v1868_v16, %v1859_v43  ;;  %v1926_v3 = vsub.s32 %v1923_v31, %v3981_v22 }
 0x575   : > { %v1882_v0 = vpop.permute.xlu1 %1881  ;;  %v1828_v49 = vpop.permute.xlu0 %1827 }
 0x576   : > { %v1782_v9 = vadd.f32 %v1778_v27, %v1768_v28  ;;  %v1887_v21 = vadd.f32 %v1882_v0, %v1873_v25 }
 0x578   : > { %v1796_v10 = vadd.f32 %v1792_v15, %v1782_v9 }
 0x579   : > { %v1896_v17 = vpop.permute.xlu1 %1895  ;;  %v1842_v36 = vpop.permute.xlu0 %1841 }
 0x57a   : > { %v1810_v34 = vadd.f32 %v1806_v4, %v1796_v10  ;;  %v1901_v46 = vadd.f32 %v1896_v17, %v1887_v21 }
 0x57c   : > { %v1818_v20 = vadd.f32 %v1816_v57, %v1810_v34  ;;  %v2329_v14 = vmul.f32 -1.442695, %v1901_v46  ;;  %v3999_v57 = vmov 0 }
 0x57d   : > { %v1856_v63 = vpop.permute.xlu0 %1855  ;;  %v4000_v57 = vsel %vm3769_vm3, 4294967295, %v3999_v57  ;;  %vm3835_vm3 = vcmp.lt.s32.totalorder %v3982_v24, 128 }
 0x57e   : > { %v1832_v56 = vadd.f32 %v1828_v49, %v1818_v20  ;;  %2447 = vpow2.f32 %v2329_v14  ;;  %vm4015_vm13 = vnez %v4000_v57 }
 0x57f   : > { %vm4016_vm14 = vmand %vm3764_vm2, %vm4015_vm13 }
 0x580   : > { %v1846_v11 = vadd.f32 %v1842_v36, %v1832_v56 }
 0x581   : > { %v1870_v26 = vpop.permute.xlu0 %1869 }
 0x582   : > { %v1860_v23 = vadd.f32 %v1856_v63, %v1846_v11 }
 0x584   : > { %v1874_v45 = vadd.f32 %v1870_v26, %v1860_v23 }
 0x585   : > { %v1884_v42 = vpop.permute.xlu0 %1883 }
 0x586   : > { %v1888_v52 = vadd.f32 %v1884_v42, %v1874_v45 }
 0x588   : > { %v2448_v32 = vpop.eup %2447 }
 0x589   : > { %v1909_v12 = vadd.f32 1.0, %v2448_v32  ;;  %v1898_v1 = vpop.permute.xlu0 %1897 }
 0x58a   : > { %v1902_v40 = vadd.f32 %v1898_v1, %v1888_v52 }
 0x58b   : > { %2449 = vrcp.f32 %v1909_v12 }
 0x58c   : > { %v2330_v47 = vmul.f32 -1.442695, %v1902_v40 }
 0x58e   : > { %2451 = vpow2.f32 %v2330_v47  ;;  %v2106_v47 = vsub.s32 1, %v3981_v22 }
 0x595   : > { %v2450_v2 = vpop.eup %2449 }
 0x596   : > { %v1927_v54 = vrot.slane %v2450_v2, %v1926_v3  ;;  %1919 = vst.msk [vmem:[#allocation3] sm:$0x1] %vm3705_vm9, %v2450_v2  ;;  %v1966_v51 = vcombine.high %v2450_v2, %v2450_v2  ;;  %v4018_v2 = vld [vmem:[#allocation14_spill] sm:$0xff] }
 0x598   : > { %v2452_v29 = vpop.eup %2451  ;;  %v1928_v58 = vcombine.high %v1927_v54, %v1927_v54  ;;  %v1935_v39 = vrot.slane %v1927_v54, %v1926_v3  ;;  %v1973_v5 = vrot.slane %v1966_v51, %v1926_v3 }
 0x599   : > { %v1910_v37 = vadd.f32 1.0, %v2452_v29  ;;  %v4019_v29 = vld [vmem:[#allocation17_spill] sm:$0xff] }
 0x59a   : > { %v1942_v44 = vrot.slane %v1928_v58, %v1926_v3  ;;  %v1950_v38 = vcombine.high %v1935_v39, %v1935_v39  ;;  %v1980_v60 = vrot.slane %v1973_v5, %v1926_v3  ;;  %v1988_v27 = vcombine.high %v1973_v5, %v1973_v5  ;;  %v4021_v39 = vld [vmem:[#allocation16_spill] sm:$0xff] }
 0x59b   : > { %2453 = vrcp.f32 %v1910_v37  ;;  %v4020_v37 = vld [vmem:[#allocation15_spill] sm:$0xff] }
 0x59c   : > { %1943 = vrot.lane.b32.xlu1 %v1942_v44, %s2600_s29  ;;  %v1958_v53 = vcombine.high %v1942_v44, %v1942_v44  ;;  %v1995_v61 = vrot.slane %v1988_v27, %v1926_v3  ;;  %v2003_v55 = vcombine.high %v1980_v60, %v1980_v60 }
 0x59e   : > { %v2011_v6 = vcombine.high %v1995_v61, %v1995_v61 }
 0x5a0   : > { %1951 = vrot.lane.b32.xlu1 %v1950_v38, %s2601_s9 }
 0x5a4   : > { %1981 = vrot.lane.b32.xlu1 %v1980_v60, %s2602_s25 }
 0x5a5   : > { %v2454_v41 = vpop.eup %2453 }
 0x5a6   : > { %v2027_v30 = vrot.slane %v2454_v41, %v1926_v3  ;;  %2019 = vst.msk [vmem:[#allocation3 + $0x1] sm:$0x1] %vm3705_vm9, %v2454_v41  ;;  %v2057_v13 = vcombine.high %v2454_v41, %v2454_v41  ;;  %vm3806_vm9 = vcmp.ge.s32.totalorder %v3982_v24, 96 }
 0x5a8   : > { %1959 = vrot.lane.b32.xlu1 %v1958_v53, %s2603_s12  ;;  %v2028_v50 = vcombine.high %v2027_v30, %v2027_v30  ;;  %v2035_v8 = vrot.slane %v2027_v30, %v1926_v3  ;;  %v2064_v59 = vrot.slane %v2057_v13, %v1926_v3 }
 0x5aa   : > { %v2042_v18 = vrot.slane %v2028_v50, %v1926_v3  ;;  %v2047_v15 = vcombine.high %v2035_v8, %v2035_v8  ;;  %v2071_v19 = vrot.slane %v2064_v59, %v1926_v3  ;;  %v2076_v16 = vcombine.high %v2064_v59, %v2064_v59 }
 0x5ac   : > { %1996 = vrot.lane.b32.xlu1 %v1995_v61, %s2604_s13  ;;  %2043 = vrot.lane.b32.xlu0 %v2042_v18, %s2600_s29  ;;  %v2052_v35 = vcombine.high %v2042_v18, %v2042_v18  ;;  %v2083_v4 = vrot.slane %v2076_v16, %v1926_v3  ;;  %v2088_v7 = vcombine.high %v2071_v19, %v2071_v19  ;;  %v4017_v3 = vsub.s32 0, %v3981_v22 }
 0x5ae   : > { %v2093_v43 = vcombine.high %v2083_v4, %v2083_v4 }
 0x5b0   : > { %2004 = vrot.lane.b32.xlu1 %v2003_v55, %s2605_s22  ;;  %2048 = vrot.lane.b32.xlu0 %v2047_v15, %s2601_s9  ;;  %s2512_s9 = scalar_lea.vmem %s2511_s26, 1024 }
 0x5b1   : > { %p2514_p1 = scmp.lt.s32.totalorder %s2512_s9, %s2506_s7 }
 0x5b3   : > { %p2515_p4 = por %p2514_p1, %p2513_p10 }
 0x5b4   : > { %2012 = vrot.lane.b32.xlu1 %v2011_v6, %s2606_s5  ;;  %2072 = vrot.lane.b32.xlu0 %v2071_v19, %s2602_s25 }
 0x5b5   : > { %p2516_p11 = pnand %p2515_p4, %p2509_p9 }
 0x5b8   : > { %2053 = vrot.lane.b32.xlu0 %v2052_v35, %s2603_s12 }
 0x5bc   : > { %2084 = vrot.lane.b32.xlu0 %v2083_v4, %s2604_s13 }
 0x5c0   : > { %2089 = vrot.lane.b32.xlu0 %v2088_v7, %s2605_s22 }
 0x5c4   : > { %2094 = vrot.lane.b32.xlu0 %v2093_v43, %s2606_s5 }
 0x60e   : > { %v1944_v9 = vpop.permute.xlu1 %1943 }
 0x60f   : > { %1949 = vst.msk [vmem:[#allocation3] sm:$0x1] %vm1948_vm12, %v1944_v9 }
 0x612   : > { %v1952_v10 = vpop.permute.xlu1 %1951 }
 0x613   : > { %1957 = vst.msk [vmem:[#allocation3] sm:$0x1] %vm3950_vm15, %v1952_v10  ;;  %vm3811_vm15 = vcmp.lt.s32.totalorder %v3982_v24, 112 }
 0x616   : > { %v1982_v36 = vpop.permute.xlu1 %1981 }
 0x61a   : > { %v1960_v14 = vpop.permute.xlu1 %1959 }
 0x61b   : > { %1965 = vst.msk [vmem:[#allocation3] sm:$0x1] %vm3952_vm4, %v1960_v14  ;;  %vm3830_vm4 = vcmp.ge.s32.totalorder %v3982_v24, 112 }
 0x61c   : > { %1987 = vst.msk [vmem:[#allocation3] sm:$0x1] %vm3951_vm5, %v1982_v36  ;;  %vm2009_vm5 = vmand %vm3806_vm9, %vm3811_vm15 }
 0x61d   : > { %vm2017_vm11 = vmand %vm3830_vm4, %vm3835_vm3 }
 0x61e   : > { %v1997_v11 = vpop.permute.xlu1 %1996  ;;  %v2044_v26 = vpop.permute.xlu0 %2043 }
 0x61f   : > { %2002 = vst.msk [vmem:[#allocation3] sm:$0x1] %vm2001_vm8, %v1997_v11 }
 0x620   : > { %2046 = vst.msk [vmem:[#allocation3 + $0x1] sm:$0x1] %vm1948_vm12, %v2044_v26  ;;  %vm4014_vm12 = vmand %vm3754_vm0, %vm3759_vm1 }
 0x622   : > { %v2005_v42 = vpop.permute.xlu1 %2004  ;;  %v2049_v32 = vpop.permute.xlu0 %2048 }
 0x623   : > { %2010 = vst.msk [vmem:[#allocation3] sm:$0x1] %vm2009_vm5, %v2005_v42 }
 0x624   : > { %2051 = vst.msk [vmem:[#allocation3 + $0x1] sm:$0x1] %vm4013_vm10, %v2049_v32 }
 0x626   : > { %v2013_v52 = vpop.permute.xlu1 %2012  ;;  %v2073_v12 = vpop.permute.xlu0 %2072 }
 0x627   : > { %2018 = vst.msk [vmem:[#allocation3] sm:$0x1] %vm2017_vm11, %v2013_v52 }
 0x62a   : > { %v2054_v1 = vpop.permute.xlu0 %2053 }
 0x62b   : > { %2056 = vst.msk [vmem:[#allocation3 + $0x1] sm:$0x1] %vm4014_vm12, %v2054_v1 }
 0x62c   : > { %2075 = vst.msk [vmem:[#allocation3 + $0x1] sm:$0x1] %vm4016_vm14, %v2073_v12 }
 0x62e   : > { %v2085_v62 = vpop.permute.xlu0 %2084 }
 0x62f   : > { %2087 = vst.msk [vmem:[#allocation3 + $0x1] sm:$0x1] %vm2001_vm8, %v2085_v62 }
 0x632   : > { %v2090_v48 = vpop.permute.xlu0 %2089 }
 0x633   : > { %2092 = vst.msk [vmem:[#allocation3 + $0x1] sm:$0x1] %vm2009_vm5, %v2090_v48 }
 0x636   : > { %v2095_v40 = vpop.permute.xlu0 %2094 }
 0x637   : > { %2097 = vst.msk [vmem:[#allocation3 + $0x1] sm:$0x1] %vm2017_vm11, %v2095_v40 }
 0x63e   : > { %v2098_v31 = vld [vmem:[#allocation3] sm:$0x3] }
 0x63f   : > { %v2103_v24 = vrot.slane %v2098_v31, %v4017_v3  ;;  %v2107_v33 = vrot.slane %v2098_v31, %v2106_v47 }
 0x641   : > { %v2110_v54 = vmul.f32 %v2103_v24, %v4018_v2  ;;  %v2111_v58 = vmul.f32 %v2107_v33, %v4019_v29  ;;  %v2112_v44 = vmul.f32 %v2103_v24, %v4020_v37  ;;  %v2113_v51 = vmul.f32 %v2107_v33, %v4021_v39 }
 0x643   : > { %2114 = vst [vmem:[%s229_s20] sm:$0xff] %v2110_v54  ;;  %2115 = vst [vmem:[%s229_s20 + $0x8] sm:$0xff] %v2111_v58 }
 0x644   : > { %2116 = vst [vmem:[%s229_s20 + $0x10] sm:$0xff] %v2112_v44  ;;  %2117 = vst [vmem:[%s229_s20 + $0x18] sm:$0xff] %v2113_v51 }
 0x645   : > { %2519 = shalt.err (!%p2516_p11)
}
 0x646   : > { %s2520_s25 = scalar_lea.hbm %s3882_s23, 512  ;;  %s2524_s22 = scalar_lea.hbm %s3937_s4, 1024 }
 0x647   : > { %p2521_p0 = scmp.ne.s32.totalorder %s3882_s23, %s2520_s25  ;;  %p2525_p6 = scmp.lt.u32.totalorder %s3882_s23, %s3937_s4 }
 0x648   : > { %p2526_p3 = scmp.lt.u32.totalorder %s2524_s22, %s2520_s25  ;;  %p2528_p5 = scmp.lt.u32.totalorder %s2520_s25, %s3882_s23 }
 0x649   : > { %p2522_p2 = pnand %p2521_p0, %p4022_p12 }
 0x64a   : > { %p2527_p13 = por %p2526_p3, %p2525_p6 }
 0x64b   : > { %p2523_p7 = pneg %p2522_p2 }
 0x64c   : > { %p2529_p8 = por %p2528_p5, %p2527_p13 }
 0x64e   : > { %p2530_p9 = pnand %p2529_p8, %p2523_p7 }
 0x650   : > { %2533 = shalt.err (!%p2530_p9)
}
 0x651   : > { %s2608_s20 = smov 256  }
 0x652   : > { %2364 = dma.vmem_to_hbm [thread:$0]  (%p4022_p12), %s3888_s30, 512, %s3882_s23, %s2119_s19, %s2608_s20, %s2608_s20, %s2600_s29  }
 0x653 PF: > { %s2147_s8 = sand.u32 1, %s2564_s15   ;;  %p4023_p10 = scmp.ne.s32.totalorder %s3957_s28, 0 }
 0x654   : > { %p4024_p1 = scmp.ge.s32.totalorder %s2576_s18, 2  ;;  %s2148_s14 = scalar_lea.sflag [#allocation6], %s2147_s8 }
 0x656   : > { %p2375_p4 = pnand %p4024_p1, %p4023_p10 }
 0x658   : > { %2559 = dma.done.wait (!%p2375_p4), %s2148_s14, 512  }
 0x659   : > { %2561 = vsyncadd (!%p2375_p4), %s2148_s14, 4294966784  ;;  %p18_p11 = scmp.ge.s32.totalorder %s2659_s21, 4   ;;  %s4025_s15 = smov %s2568_s16 }
 0x65a   : > { %s4026_s16 = smov %s2572_s17  ;;  %s4027_s17 = smov %s2671_s24 }
 0x65b   : > { %s4028_s18 = smov %s2659_s21  ;;  %20 = sbr.rel (!%p18_p11) target bundleno = 6 (0x6), region = 87 }
 0x662   :  { %2153 = vsyncpa [#allocation5], 1 }
 0x663   :  { %2155 = vsyncpa [#allocation5 + $0x1], 1 }
 0x664   :  { %2156 = vsyncpa [#allocation6], 1 }
 0x665   :  { %2158 = vsyncpa [#allocation6 + $0x1], 1 }
 0x666   :  { %2159 = vsyncpa [#allocation7], 1 }
 0x667   :  { %2161 = vsyncpa [#allocation7 + $0x1], 1 }

</bundles_post_ra>
